<compile_context>
chip_gen: v7x
topology: tpu7x:2x2x1
jax: 0.10.0
libtpu: 0.0.40
codegen_flags: <defaults>
</compile_context>

<pallas_src>
import functools

import jax
import jax.numpy as jnp
from jax.experimental import pallas as pl
from jax.experimental.pallas import tpu as pltpu

BN_EPS = 1e-5
MAX_TM = 512  # row tile cap for the matmul / affine kernels


def _round_up(x, m):
    return ((x + m - 1) // m) * m


# ----------------------------- Pallas kernels ------------------------------ #

def _matmul_stats_kernel(x_ref, w_ref, y_ref, s1_ref, s2_ref):
    # x: (TM, K) bf16, w: (K, N) bf16 -> y: (TM, N) f32, plus per-tile
    # per-channel sum and sum-of-squares (for the fused BatchNorm).
    y = jnp.dot(x_ref[...], w_ref[...], preferred_element_type=jnp.float32)
    y_ref[...] = y
    s1_ref[...] = jnp.sum(y, axis=0, keepdims=True)
    s2_ref[...] = jnp.sum(y * y, axis=0, keepdims=True)


def _affine_relu_kernel(x_ref, s_ref, b_ref, o_ref):
    # o = relu(x * scale + shift), per-column scale/shift (fused BN+ReLU).
    o_ref[...] = jnp.maximum(
        x_ref[...] * s_ref[...] + b_ref[...], 0.0).astype(o_ref.dtype)


def _matmul_bias_relu_kernel(x_ref, w_ref, b_ref, o_ref):
    y = jnp.dot(x_ref[...], w_ref[...], preferred_element_type=jnp.float32)
    o_ref[...] = jnp.maximum(y + b_ref[...], 0.0)


def _latent_head_kernel(x_ref, wm_ref, bm_ref, wv_ref, bv_ref, eps_ref,
                        wp_ref, bp_ref, mean_ref, logvar_ref, proj_ref):
    # Fused: mean linear + var linear + reparameterize + decoder projection.
    x = x_ref[...]
    mean = jnp.dot(x, wm_ref[...], preferred_element_type=jnp.float32) + bm_ref[...]
    logvar = jnp.dot(x, wv_ref[...], preferred_element_type=jnp.float32) + bv_ref[...]
    z = eps_ref[...] * jnp.exp(logvar * 0.5) + mean
    proj = jnp.dot(z, wp_ref[...], preferred_element_type=jnp.float32) + bp_ref[...]
    mean_ref[...] = mean
    logvar_ref[...] = logvar
    proj_ref[...] = proj


# ----------------------------- Pallas wrappers ----------------------------- #

def matmul_stats(x, w):
    """x: (M, K) bf16, w: (K, N) bf16 -> y: (Mp, N) f32 (rows padded),
    plus per-tile channel sums / sum-of-squares (tiles, N)."""
    M, K = x.shape
    N = w.shape[1]
    TM = min(MAX_TM, _round_up(M, 8))
    Mp = _round_up(M, TM)
    if Mp != M:
        x = jnp.pad(x, ((0, Mp - M), (0, 0)))  # zero rows -> contribute 0 stats
    tiles = Mp // TM
    y, s1, s2 = pl.pallas_call(
        _matmul_stats_kernel,
        out_shape=(jax.ShapeDtypeStruct((Mp, N), jnp.float32),
                   jax.ShapeDtypeStruct((tiles, N), jnp.float32),
                   jax.ShapeDtypeStruct((tiles, N), jnp.float32)),
        grid=(tiles,),
        in_specs=[pl.BlockSpec((TM, K), lambda i: (i, 0)),
                  pl.BlockSpec((K, N), lambda i: (0, 0))],
        out_specs=[pl.BlockSpec((TM, N), lambda i: (i, 0)),
                   pl.BlockSpec((1, N), lambda i: (i, 0)),
                   pl.BlockSpec((1, N), lambda i: (i, 0))],
        compiler_params=pltpu.CompilerParams(
            dimension_semantics=("parallel",)),
    )(x, w)
    return y, s1, s2


def affine_relu(y, scale, shift, out_dtype=jnp.bfloat16):
    """y: (M, N) f32 (M already tile-aligned) -> relu(y*scale+shift) in bf16."""
    M, N = y.shape
    TM = min(MAX_TM, M)
    return pl.pallas_call(
        _affine_relu_kernel,
        out_shape=jax.ShapeDtypeStruct((M, N), out_dtype),
        grid=(M // TM,),
        in_specs=[pl.BlockSpec((TM, N), lambda i: (i, 0)),
                  pl.BlockSpec((1, N), lambda i: (0, 0)),
                  pl.BlockSpec((1, N), lambda i: (0, 0))],
        out_specs=pl.BlockSpec((TM, N), lambda i: (i, 0)),
        compiler_params=pltpu.CompilerParams(
            dimension_semantics=("parallel",)),
    )(y, scale.reshape(1, N), shift.reshape(1, N))


def matmul_bias_relu(x, w, b):
    """x: (M, K) bf16, w: (K, N) bf16, b: (N,) f32 -> relu(x@w + b) f32."""
    M, K = x.shape
    N = w.shape[1]
    TM = min(MAX_TM, _round_up(M, 8))
    Mp = _round_up(M, TM)
    if Mp != M:
        x = jnp.pad(x, ((0, Mp - M), (0, 0)))
    out = pl.pallas_call(
        _matmul_bias_relu_kernel,
        out_shape=jax.ShapeDtypeStruct((Mp, N), jnp.float32),
        grid=(Mp // TM,),
        in_specs=[pl.BlockSpec((TM, K), lambda i: (i, 0)),
                  pl.BlockSpec((K, N), lambda i: (0, 0)),
                  pl.BlockSpec((1, N), lambda i: (0, 0))],
        out_specs=pl.BlockSpec((TM, N), lambda i: (i, 0)),
        compiler_params=pltpu.CompilerParams(
            dimension_semantics=("parallel",)),
    )(x, w, b.reshape(1, N).astype(jnp.float32))
    return out[:M]


def latent_head(enc_flat, wm, bm, wv, bv, eps, wp, bp):
    """Fused mean/var linears + reparameterization + decoder projection."""
    Nb, F = enc_flat.shape
    L = wm.shape[1]
    Np = _round_up(Nb, 8)
    if Np != Nb:
        enc_flat = jnp.pad(enc_flat, ((0, Np - Nb), (0, 0)))
        eps = jnp.pad(eps, ((0, Np - Nb), (0, 0)))
    mean, logvar, proj = pl.pallas_call(
        _latent_head_kernel,
        out_shape=(jax.ShapeDtypeStruct((Np, L), jnp.float32),
                   jax.ShapeDtypeStruct((Np, L), jnp.float32),
                   jax.ShapeDtypeStruct((Np, F), jnp.float32)),
    )(enc_flat, wm, bm.reshape(1, L), wv, bv.reshape(1, L), eps,
      wp, bp.reshape(1, F))
    return mean[:Nb], logvar[:Nb], proj[:Nb]


# ------------------------------ glue (plain JAX) --------------------------- #

def _extract_patches(xp, k, stride, Ho, Wo):
    """xp: padded (N, Hp, Wp, C) -> (N, Ho, Wo, k*k*C), tap-major (kh, kw, c)."""
    cols = []
    for di in range(k):
        for dj in range(k):
            cols.append(xp[:, di:di + stride * (Ho - 1) + 1:stride,
                           dj:dj + stride * (Wo - 1) + 1:stride, :])
    return jnp.concatenate(cols, axis=-1)


def _bn_scale_shift(sum_c, sumsq_c, count, gamma, beta):
    # Training-mode BatchNorm (biased variance, eps=1e-5) folded into a single
    # per-channel affine (O(C) work done in XLA; the heavy passes are Pallas).
    mean = sum_c / count
    var = jnp.maximum(sumsq_c / count - mean * mean, 0.0)
    scale = gamma * jax.lax.rsqrt(var + BN_EPS)
    shift = beta - mean * scale
    return scale, shift


def conv2d_bn_relu(x, w, gamma, beta, stride, padding):
    """x: (N,H,W,Cin) NHWC bf16; w: (Cout,Cin,k,k).  Conv (no bias: it cancels
    under the following training-mode BN) + BatchNorm + ReLU."""
    N, H, W, Cin = x.shape
    Cout, _, k, _ = w.shape
    Ho = (H + 2 * padding - k) // stride + 1
    Wo = (W + 2 * padding - k) // stride + 1
    xpad = jnp.pad(x, ((0, 0), (padding, padding), (padding, padding), (0, 0)))
    patches = _extract_patches(xpad, k, stride, Ho, Wo).reshape(
        N * Ho * Wo, k * k * Cin).astype(jnp.bfloat16)
    wm = jnp.transpose(w, (2, 3, 1, 0)).reshape(k * k * Cin, Cout).astype(
        jnp.bfloat16)
    M = N * Ho * Wo
    y, s1, s2 = matmul_stats(patches, wm)
    scale, shift = _bn_scale_shift(jnp.sum(s1, 0), jnp.sum(s2, 0), float(M),
                                   gamma, beta)
    out = affine_relu(y, scale, shift)[:M]
    return out.reshape(N, Ho, Wo, Cout)


def conv_transpose2d_bn_relu(x, w, gamma, beta):
    """ConvTranspose2d(k=3, stride=2, padding=1, output_padding=1) + BN + ReLU,
    via the subpixel decomposition: a single stride-1 matmul over the 2x2 tap
    neighborhood of the (high-side padded) input against a combined
    (4*Cin, 4*Cout) weight, followed by depth-to-space interleaving.
    Bias omitted (cancels under the following training-mode BN)."""
    N, H, W, Cin = x.shape
    Cout = w.shape[1]
    xpad = jnp.pad(x, ((0, 0), (0, 1), (0, 1), (0, 0)))
    taps = jnp.concatenate([
        xpad[:, 0:H, 0:W, :], xpad[:, 0:H, 1:W + 1, :],
        xpad[:, 1:H + 1, 0:W, :], xpad[:, 1:H + 1, 1:W + 1, :]], axis=-1)
    patches = taps.reshape(N * H * W, 4 * Cin).astype(jnp.bfloat16)

    # Combined weight: rows = taps [x(m,p), x(m,p+1), x(m+1,p), x(m+1,p+1)],
    # cols = output phases [(0,0), (0,1), (1,0), (1,1)];  w[a,b] = w[:,:,a,b].
    z = jnp.zeros((Cin, Cout), w.dtype)
    wc = jnp.concatenate([
        jnp.concatenate([w[:, :, 1, 1], w[:, :, 1, 2], w[:, :, 2, 1], w[:, :, 2, 2]], axis=1),
        jnp.concatenate([z,             w[:, :, 1, 0], z,             w[:, :, 2, 0]], axis=1),
        jnp.concatenate([z,             z,             w[:, :, 0, 1], w[:, :, 0, 2]], axis=1),
        jnp.concatenate([z,             z,             z,             w[:, :, 0, 0]], axis=1),
    ], axis=0).astype(jnp.bfloat16)

    M = N * H * W
    y, s1, s2 = matmul_stats(patches, wc)                  # (Mp, 4*Cout)
    # Fold the per-tile stats over tiles and over the 4 phases per channel.
    sum_c = jnp.sum(s1, 0).reshape(4, Cout).sum(0)
    sumsq_c = jnp.sum(s2, 0).reshape(4, Cout).sum(0)
    scale, shift = _bn_scale_shift(sum_c, sumsq_c, 4.0 * M, gamma, beta)
    out = affine_relu(y, jnp.tile(scale, 4), jnp.tile(shift, 4))[:M]
    # depth-to-space: (N,H,W,2,2,Cout) -> (N,2H,2W,Cout)
    out = out.reshape(N, H, W, 2, 2, Cout)
    out = jnp.transpose(out, (0, 1, 3, 2, 4, 5)).reshape(N, 2 * H, 2 * W, Cout)
    return out


def conv2d_bias_relu(x, w, b, padding=1):
    """Final Conv2d(k=3, stride=1, padding=1) + bias + ReLU (no BN)."""
    N, H, W, Cin = x.shape
    Cout, _, k, _ = w.shape
    xpad = jnp.pad(x, ((0, 0), (padding, padding), (padding, padding), (0, 0)))
    patches = _extract_patches(xpad, k, 1, H, W).reshape(
        N * H * W, k * k * Cin).astype(jnp.bfloat16)
    wm = jnp.transpose(w, (2, 3, 1, 0)).reshape(k * k * Cin, Cout).astype(
        jnp.bfloat16)
    y = matmul_bias_relu(patches, wm, b)
    return y.reshape(N, H, W, Cout)


# ------------------------------ parameters --------------------------------- #

def init_params(key, hiddens, latent_dim, img_length):
    keys = iter(jax.random.split(key, 64))
    params = {}
    prev, L = 3, img_length
    enc = []
    for c in hiddens:
        w = 0.1 * jax.random.normal(next(keys), (c, prev, 3, 3), jnp.float32)
        # (weight, bn_gamma, bn_beta); conv bias omitted (cancels under BN).
        enc.append((w, jnp.ones((c,), jnp.float32), jnp.zeros((c,), jnp.float32)))
        prev = c
        L //= 2
    params["encoder"] = enc
    flat = prev * L * L
    params["decoder_input_chw"] = (prev, L, L)
    # Linear weights stored matmul-ready: (in_features, out_features).
    params["mean_w"] = 0.1 * jax.random.normal(next(keys), (flat, latent_dim), jnp.float32)
    params["mean_b"] = jnp.zeros((latent_dim,), jnp.float32)
    params["var_w"] = 0.1 * jax.random.normal(next(keys), (flat, latent_dim), jnp.float32)
    params["var_b"] = jnp.zeros((latent_dim,), jnp.float32)
    params["proj_w"] = 0.1 * jax.random.normal(next(keys), (latent_dim, flat), jnp.float32)
    params["proj_b"] = jnp.zeros((flat,), jnp.float32)

    dec = []
    for i in range(len(hiddens) - 1, 0, -1):
        cin, cout = hiddens[i], hiddens[i - 1]
        w = 0.1 * jax.random.normal(next(keys), (cin, cout, 3, 3), jnp.float32)
        dec.append((w, jnp.ones((cout,), jnp.float32), jnp.zeros((cout,), jnp.float32)))
    c0 = hiddens[0]
    w = 0.1 * jax.random.normal(next(keys), (c0, c0, 3, 3), jnp.float32)
    dec.append((w, jnp.ones((c0,), jnp.float32), jnp.zeros((c0,), jnp.float32)))
    params["decoder_tblocks"] = dec
    params["final_conv_w"] = 0.1 * jax.random.normal(next(keys), (3, c0, 3, 3), jnp.float32)
    params["final_conv_b"] = jnp.zeros((3,), jnp.float32)
    return params


# ------------------------------ forward pass -------------------------------- #

def vae_forward(params, x_nchw, eps):
    x = jnp.transpose(x_nchw, (0, 2, 3, 1)).astype(jnp.bfloat16)  # NCHW -> NHWC
    for (w, g, b) in params["encoder"]:
        x = conv2d_bn_relu(x, w, g, b, stride=2, padding=1)
    N = x.shape[0]
    # flatten exactly as torch.flatten on NCHW (channel-major order)
    enc_flat = jnp.transpose(x, (0, 3, 1, 2)).reshape(N, -1).astype(jnp.float32)
    mean, logvar, proj = latent_head(
        enc_flat, params["mean_w"], params["mean_b"],
        params["var_w"], params["var_b"], eps,
        params["proj_w"], params["proj_b"])
    C, H, W = params["decoder_input_chw"]
    x = jnp.transpose(proj.reshape(N, C, H, W), (0, 2, 3, 1)).astype(jnp.bfloat16)
    for (w, g, b) in params["decoder_tblocks"]:
        x = conv_transpose2d_bn_relu(x, w, g, b)
    x = conv2d_bias_relu(x, params["final_conv_w"], params["final_conv_b"])
    decoded = jnp.transpose(x, (0, 3, 1, 2))  # back to NCHW, f32
    return decoded, mean, logvar


# ---------------------------------- main ------------------------------------ #

if __name__ == "__main__":
    # Scaled-down config consistent with the module's structure:
    # input (2, 3, 16, 16); encoder halves spatial per block: 16->8->4->2->1.
    hiddens = [4, 8, 16, 32]
    latent_dim = 16
    img_length = 16

    key = jax.random.PRNGKey(0)
    pkey, xkey, ekey = jax.random.split(key, 3)
    params = init_params(pkey, hiddens, latent_dim, img_length)

    x = jax.random.normal(xkey, (2, 3, img_length, img_length), jnp.float32)
    # eps replaces torch.randn_like(logvar): standard normal, generated here.
    eps = jax.random.normal(ekey, (2, latent_dim), jnp.float32)

    fwd = jax.jit(functools.partial(vae_forward, params))
    decoded, mean, logvar = fwd(x, eps)
    jax.block_until_ready((decoded, mean, logvar))

    assert decoded.shape == x.shape, decoded.shape
    assert mean.shape == (2, latent_dim) and logvar.shape == (2, latent_dim)
    assert bool(jnp.all(decoded >= 0.0))  # final ReLU
    print("KERNEL_OK")
</pallas_src>

<mosaic_0001>
module attributes {stable_mosaic.version = 11 : i64} {
  func.func @_matmul_stats_kernel(%arg0: i32, %arg1: memref<128x27xbf16, #tpu.memory_space<vmem>>, %arg2: memref<27x4xbf16, #tpu.memory_space<vmem>>, %arg3: memref<128x4xf32, #tpu.memory_space<vmem>>, %arg4: memref<1x4xf32, #tpu.memory_space<vmem>>, %arg5: memref<1x4xf32, #tpu.memory_space<vmem>>) attributes {dimension_semantics = [#tpu.dimension_semantics<parallel>], iteration_bounds = array<i64: 1>, scalar_prefetch = 0 : i64, scratch_operands = 0 : i64, tpu.core_type = #tpu.core_type<tc>, window_params = [{transform_indices = @transform_0, window_bounds = array<i64: 128, 27>}, {pipeline_mode = #tpu.pipeline_mode<synchronous>, transform_indices = @transform_1, window_bounds = array<i64: 27, 4>}, {transform_indices = @transform_2, window_bounds = array<i64: 128, 4>}, {transform_indices = @transform_3, window_bounds = array<i64: 1, 4>}, {transform_indices = @transform_4, window_bounds = array<i64: 1, 4>}]} {
    %c0 = arith.constant 0 : index
    %c0_0 = arith.constant 0 : index
    %0 = vector.load %arg1[%c0, %c0_0] : memref<128x27xbf16, #tpu.memory_space<vmem>>, vector<128x27xbf16>
    %c0_1 = arith.constant 0 : index
    %c0_2 = arith.constant 0 : index
    %1 = vector.load %arg2[%c0_1, %c0_2] : memref<27x4xbf16, #tpu.memory_space<vmem>>, vector<27x4xbf16>
    %cst = arith.constant dense<0.000000e+00> : vector<128x4xf32>
    %2 = tpu.matmul %0, %1, %cst {dimension_numbers = #tpu.dot_dimension_numbers<[1], [0], [0], [1], [0, 0, 1, 1], [], []>} : vector<128x27xbf16>, vector<27x4xbf16>, vector<128x4xf32> -> vector<128x4xf32>
    %c0_3 = arith.constant 0 : index
    %c0_4 = arith.constant 0 : index
    %3 = vector.load %arg3[%c0_3, %c0_4] : memref<128x4xf32, #tpu.memory_space<vmem>>, vector<128x4xf32>
    tpu.vector_store %arg3[%c0_3, %c0_4], %2 {strides = array<i32>} : memref<128x4xf32, #tpu.memory_space<vmem>>, vector<128x4xf32>,
    %cst_5 = arith.constant dense<0.000000e+00> : vector<4xf32>
    %4 = vector.multi_reduction <add>, %2, %cst_5 [0] : vector<128x4xf32> to vector<4xf32>
    %5 = vector.shape_cast %4 : vector<4xf32> to vector<1x4xf32>
    %c0_6 = arith.constant 0 : index
    %c0_7 = arith.constant 0 : index
    %6 = vector.load %arg4[%c0_6, %c0_7] : memref<1x4xf32, #tpu.memory_space<vmem>>, vector<1x4xf32>
    tpu.vector_store %arg4[%c0_6, %c0_7], %5 {strides = array<i32>} : memref<1x4xf32, #tpu.memory_space<vmem>>, vector<1x4xf32>,
    %7 = arith.mulf %2, %2 : vector<128x4xf32>
    %cst_8 = arith.constant dense<0.000000e+00> : vector<4xf32>
    %8 = vector.multi_reduction <add>, %7, %cst_8 [0] : vector<128x4xf32> to vector<4xf32>
    %9 = vector.shape_cast %8 : vector<4xf32> to vector<1x4xf32>
    %c0_9 = arith.constant 0 : index
    %c0_10 = arith.constant 0 : index
    %10 = vector.load %arg5[%c0_9, %c0_10] : memref<1x4xf32, #tpu.memory_space<vmem>>, vector<1x4xf32>
    tpu.vector_store %arg5[%c0_9, %c0_10], %9 {strides = array<i32>} : memref<1x4xf32, #tpu.memory_space<vmem>>, vector<1x4xf32>,
    return
  }
  func.func @transform_0(%arg0: i32) -> (i32, i32) {
    %c0_i32 = arith.constant 0 : i32
    %c0_i32_0 = arith.constant 0 : i32
    return %arg0, %c0_i32 : i32, i32
  }
  func.func @transform_1(%arg0: i32) -> (i32, i32) {
    %c0_i32 = arith.constant 0 : i32
    %c0_i32_0 = arith.constant 0 : i32
    %c0_i32_1 = arith.constant 0 : i32
    return %c0_i32, %c0_i32_0 : i32, i32
  }
  func.func @transform_2(%arg0: i32) -> (i32, i32) {
    %c0_i32 = arith.constant 0 : i32
    %c0_i32_0 = arith.constant 0 : i32
    return %arg0, %c0_i32 : i32, i32
  }
  func.func @transform_3(%arg0: i32) -> (i32, i32) {
    %c0_i32 = arith.constant 0 : i32
    %c0_i32_0 = arith.constant 0 : i32
    return %arg0, %c0_i32 : i32, i32
  }
  func.func @transform_4(%arg0: i32) -> (i32, i32) {
    %c0_i32 = arith.constant 0 : i32
    %c0_i32_0 = arith.constant 0 : i32
    return %arg0, %c0_i32 : i32, i32
  }
}

module attributes {stable_mosaic.version = 11 : i64} {
  func.func @_affine_relu_kernel(%arg0: i32, %arg1: memref<128x4xf32, #tpu.memory_space<vmem>>, %arg2: memref<1x4xf32, #tpu.memory_space<vmem>>, %arg3: memref<1x4xf32, #tpu.memory_space<vmem>>, %arg4: memref<128x4xbf16, #tpu.memory_space<vmem>>) attributes {dimension_semantics = [#tpu.dimension_semantics<parallel>], iteration_bounds = array<i64: 1>, scalar_prefetch = 0 : i64, scratch_operands = 0 : i64, tpu.core_type = #tpu.core_type<tc>, window_params = [{transform_indices = @transform_0, window_bounds = array<i64: 128, 4>}, {pipeline_mode = #tpu.pipeline_mode<synchronous>, transform_indices = @transform_1, window_bounds = array<i64: 1, 4>}, {pipeline_mode = #tpu.pipeline_mode<synchronous>, transform_indices = @transform_2, window_bounds = array<i64: 1, 4>}, {transform_indices = @transform_3, window_bounds = array<i64: 128, 4>}]} {
    %c0 = arith.constant 0 : index
    %c0_0 = arith.constant 0 : index
    %0 = vector.load %arg1[%c0, %c0_0] : memref<128x4xf32, #tpu.memory_space<vmem>>, vector<128x4xf32>
    %c0_1 = arith.constant 0 : index
    %c0_2 = arith.constant 0 : index
    %1 = vector.load %arg2[%c0_1, %c0_2] : memref<1x4xf32, #tpu.memory_space<vmem>>, vector<1x4xf32>
    %2 = vector.broadcast %1 : vector<1x4xf32> to vector<128x4xf32>
    %3 = arith.mulf %0, %2 : vector<128x4xf32>
    %c0_3 = arith.constant 0 : index
    %c0_4 = arith.constant 0 : index
    %4 = vector.load %arg3[%c0_3, %c0_4] : memref<1x4xf32, #tpu.memory_space<vmem>>, vector<1x4xf32>
    %5 = vector.broadcast %4 : vector<1x4xf32> to vector<128x4xf32>
    %6 = arith.addf %3, %5 : vector<128x4xf32>
    %cst = arith.constant 0.000000e+00 : f32
    %7 = vector.broadcast %cst : f32 to vector<128x4xf32>
    %8 = arith.maximumf %6, %7 : vector<128x4xf32>
    %9 = arith.truncf %8 : vector<128x4xf32> to vector<128x4xbf16>
    %c0_5 = arith.constant 0 : index
    %c0_6 = arith.constant 0 : index
    %10 = vector.load %arg4[%c0_5, %c0_6] : memref<128x4xbf16, #tpu.memory_space<vmem>>, vector<128x4xbf16>
    tpu.vector_store %arg4[%c0_5, %c0_6], %9 {strides = array<i32>} : memref<128x4xbf16, #tpu.memory_space<vmem>>, vector<128x4xbf16>,
    return
  }
  func.func @transform_0(%arg0: i32) -> (i32, i32) {
    %c0_i32 = arith.constant 0 : i32
    %c0_i32_0 = arith.constant 0 : i32
    return %arg0, %c0_i32 : i32, i32
  }
  func.func @transform_1(%arg0: i32) -> (i32, i32) {
    %c0_i32 = arith.constant 0 : i32
    %c0_i32_0 = arith.constant 0 : i32
    %c0_i32_1 = arith.constant 0 : i32
    return %c0_i32, %c0_i32_0 : i32, i32
  }
  func.func @transform_2(%arg0: i32) -> (i32, i32) {
    %c0_i32 = arith.constant 0 : i32
    %c0_i32_0 = arith.constant 0 : i32
    %c0_i32_1 = arith.constant 0 : i32
    return %c0_i32, %c0_i32_0 : i32, i32
  }
  func.func @transform_3(%arg0: i32) -> (i32, i32) {
    %c0_i32 = arith.constant 0 : i32
    %c0_i32_0 = arith.constant 0 : i32
    return %arg0, %c0_i32 : i32, i32
  }
}

module attributes {stable_mosaic.version = 11 : i64} {
  func.func @_matmul_stats_kernel(%arg0: i32, %arg1: memref<32x36xbf16, #tpu.memory_space<vmem>>, %arg2: memref<36x8xbf16, #tpu.memory_space<vmem>>, %arg3: memref<32x8xf32, #tpu.memory_space<vmem>>, %arg4: memref<1x8xf32, #tpu.memory_space<vmem>>, %arg5: memref<1x8xf32, #tpu.memory_space<vmem>>) attributes {dimension_semantics = [#tpu.dimension_semantics<parallel>], iteration_bounds = array<i64: 1>, scalar_prefetch = 0 : i64, scratch_operands = 0 : i64, tpu.core_type = #tpu.core_type<tc>, window_params = [{transform_indices = @transform_0, window_bounds = array<i64: 32, 36>}, {pipeline_mode = #tpu.pipeline_mode<synchronous>, transform_indices = @transform_1, window_bounds = array<i64: 36, 8>}, {transform_indices = @transform_2, window_bounds = array<i64: 32, 8>}, {transform_indices = @transform_3, window_bounds = array<i64: 1, 8>}, {transform_indices = @transform_4, window_bounds = array<i64: 1, 8>}]} {
    %c0 = arith.constant 0 : index
    %c0_0 = arith.constant 0 : index
    %0 = vector.load %arg1[%c0, %c0_0] : memref<32x36xbf16, #tpu.memory_space<vmem>>, vector<32x36xbf16>
    %c0_1 = arith.constant 0 : index
    %c0_2 = arith.constant 0 : index
    %1 = vector.load %arg2[%c0_1, %c0_2] : memref<36x8xbf16, #tpu.memory_space<vmem>>, vector<36x8xbf16>
    %cst = arith.constant dense<0.000000e+00> : vector<32x8xf32>
    %2 = tpu.matmul %0, %1, %cst {dimension_numbers = #tpu.dot_dimension_numbers<[1], [0], [0], [1], [0, 0, 1, 1], [], []>} : vector<32x36xbf16>, vector<36x8xbf16>, vector<32x8xf32> -> vector<32x8xf32>
    %c0_3 = arith.constant 0 : index
    %c0_4 = arith.constant 0 : index
    %3 = vector.load %arg3[%c0_3, %c0_4] : memref<32x8xf32, #tpu.memory_space<vmem>>, vector<32x8xf32>
    tpu.vector_store %arg3[%c0_3, %c0_4], %2 {strides = array<i32>} : memref<32x8xf32, #tpu.memory_space<vmem>>, vector<32x8xf32>,
    %cst_5 = arith.constant dense<0.000000e+00> : vector<8xf32>
    %4 = vector.multi_reduction <add>, %2, %cst_5 [0] : vector<32x8xf32> to vector<8xf32>
    %5 = vector.shape_cast %4 : vector<8xf32> to vector<1x8xf32>
    %c0_6 = arith.constant 0 : index
    %c0_7 = arith.constant 0 : index
    %6 = vector.load %arg4[%c0_6, %c0_7] : memref<1x8xf32, #tpu.memory_space<vmem>>, vector<1x8xf32>
    tpu.vector_store %arg4[%c0_6, %c0_7], %5 {strides = array<i32>} : memref<1x8xf32, #tpu.memory_space<vmem>>, vector<1x8xf32>,
    %7 = arith.mulf %2, %2 : vector<32x8xf32>
    %cst_8 = arith.constant dense<0.000000e+00> : vector<8xf32>
    %8 = vector.multi_reduction <add>, %7, %cst_8 [0] : vector<32x8xf32> to vector<8xf32>
    %9 = vector.shape_cast %8 : vector<8xf32> to vector<1x8xf32>
    %c0_9 = arith.constant 0 : index
    %c0_10 = arith.constant 0 : index
    %10 = vector.load %arg5[%c0_9, %c0_10] : memref<1x8xf32, #tpu.memory_space<vmem>>, vector<1x8xf32>
    tpu.vector_store %arg5[%c0_9, %c0_10], %9 {strides = array<i32>} : memref<1x8xf32, #tpu.memory_space<vmem>>, vector<1x8xf32>,
    return
  }
  func.func @transform_0(%arg0: i32) -> (i32, i32) {
    %c0_i32 = arith.constant 0 : i32
    %c0_i32_0 = arith.constant 0 : i32
    return %arg0, %c0_i32 : i32, i32
  }
  func.func @transform_1(%arg0: i32) -> (i32, i32) {
    %c0_i32 = arith.constant 0 : i32
    %c0_i32_0 = arith.constant 0 : i32
    %c0_i32_1 = arith.constant 0 : i32
    return %c0_i32, %c0_i32_0 : i32, i32
  }
  func.func @transform_2(%arg0: i32) -> (i32, i32) {
    %c0_i32 = arith.constant 0 : i32
    %c0_i32_0 = arith.constant 0 : i32
    return %arg0, %c0_i32 : i32, i32
  }
  func.func @transform_3(%arg0: i32) -> (i32, i32) {
    %c0_i32 = arith.constant 0 : i32
    %c0_i32_0 = arith.constant 0 : i32
    return %arg0, %c0_i32 : i32, i32
  }
  func.func @transform_4(%arg0: i32) -> (i32, i32) {
    %c0_i32 = arith.constant 0 : i32
    %c0_i32_0 = arith.constant 0 : i32
    return %arg0, %c0_i32 : i32, i32
  }
}

module attributes {stable_mosaic.version = 11 : i64} {
  func.func @_affine_relu_kernel(%arg0: i32, %arg1: memref<32x8xf32, #tpu.memory_space<vmem>>, %arg2: memref<1x8xf32, #tpu.memory_space<vmem>>, %arg3: memref<1x8xf32, #tpu.memory_space<vmem>>, %arg4: memref<32x8xbf16, #tpu.memory_space<vmem>>) attributes {dimension_semantics = [#tpu.dimension_semantics<parallel>], iteration_bounds = array<i64: 1>, scalar_prefetch = 0 : i64, scratch_operands = 0 : i64, tpu.core_type = #tpu.core_type<tc>, window_params = [{transform_indices = @transform_0, window_bounds = array<i64: 32, 8>}, {pipeline_mode = #tpu.pipeline_mode<synchronous>, transform_indices = @transform_1, window_bounds = array<i64: 1, 8>}, {pipeline_mode = #tpu.pipeline_mode<synchronous>, transform_indices = @transform_2, window_bounds = array<i64: 1, 8>}, {transform_indices = @transform_3, window_bounds = array<i64: 32, 8>}]} {
    %c0 = arith.constant 0 : index
    %c0_0 = arith.constant 0 : index
    %0 = vector.load %arg1[%c0, %c0_0] : memref<32x8xf32, #tpu.memory_space<vmem>>, vector<32x8xf32>
    %c0_1 = arith.constant 0 : index
    %c0_2 = arith.constant 0 : index
    %1 = vector.load %arg2[%c0_1, %c0_2] : memref<1x8xf32, #tpu.memory_space<vmem>>, vector<1x8xf32>
    %2 = vector.broadcast %1 : vector<1x8xf32> to vector<32x8xf32>
    %3 = arith.mulf %0, %2 : vector<32x8xf32>
    %c0_3 = arith.constant 0 : index
    %c0_4 = arith.constant 0 : index
    %4 = vector.load %arg3[%c0_3, %c0_4] : memref<1x8xf32, #tpu.memory_space<vmem>>, vector<1x8xf32>
    %5 = vector.broadcast %4 : vector<1x8xf32> to vector<32x8xf32>
    %6 = arith.addf %3, %5 : vector<32x8xf32>
    %cst = arith.constant 0.000000e+00 : f32
    %7 = vector.broadcast %cst : f32 to vector<32x8xf32>
    %8 = arith.maximumf %6, %7 : vector<32x8xf32>
    %9 = arith.truncf %8 : vector<32x8xf32> to vector<32x8xbf16>
    %c0_5 = arith.constant 0 : index
    %c0_6 = arith.constant 0 : index
    %10 = vector.load %arg4[%c0_5, %c0_6] : memref<32x8xbf16, #tpu.memory_space<vmem>>, vector<32x8xbf16>
    tpu.vector_store %arg4[%c0_5, %c0_6], %9 {strides = array<i32>} : memref<32x8xbf16, #tpu.memory_space<vmem>>, vector<32x8xbf16>,
    return
  }
  func.func @transform_0(%arg0: i32) -> (i32, i32) {
    %c0_i32 = arith.constant 0 : i32
    %c0_i32_0 = arith.constant 0 : i32
    return %arg0, %c0_i32 : i32, i32
  }
  func.func @transform_1(%arg0: i32) -> (i32, i32) {
    %c0_i32 = arith.constant 0 : i32
    %c0_i32_0 = arith.constant 0 : i32
    %c0_i32_1 = arith.constant 0 : i32
    return %c0_i32, %c0_i32_0 : i32, i32
  }
  func.func @transform_2(%arg0: i32) -> (i32, i32) {
    %c0_i32 = arith.constant 0 : i32
    %c0_i32_0 = arith.constant 0 : i32
    %c0_i32_1 = arith.constant 0 : i32
    return %c0_i32, %c0_i32_0 : i32, i32
  }
  func.func @transform_3(%arg0: i32) -> (i32, i32) {
    %c0_i32 = arith.constant 0 : i32
    %c0_i32_0 = arith.constant 0 : i32
    return %arg0, %c0_i32 : i32, i32
  }
}

module attributes {stable_mosaic.version = 11 : i64} {
  func.func @_matmul_stats_kernel(%arg0: i32, %arg1: memref<8x72xbf16, #tpu.memory_space<vmem>>, %arg2: memref<72x16xbf16, #tpu.memory_space<vmem>>, %arg3: memref<8x16xf32, #tpu.memory_space<vmem>>, %arg4: memref<1x16xf32, #tpu.memory_space<vmem>>, %arg5: memref<1x16xf32, #tpu.memory_space<vmem>>) attributes {dimension_semantics = [#tpu.dimension_semantics<parallel>], iteration_bounds = array<i64: 1>, scalar_prefetch = 0 : i64, scratch_operands = 0 : i64, tpu.core_type = #tpu.core_type<tc>, window_params = [{transform_indices = @transform_0, window_bounds = array<i64: 8, 72>}, {pipeline_mode = #tpu.pipeline_mode<synchronous>, transform_indices = @transform_1, window_bounds = array<i64: 72, 16>}, {transform_indices = @transform_2, window_bounds = array<i64: 8, 16>}, {transform_indices = @transform_3, window_bounds = array<i64: 1, 16>}, {transform_indices = @transform_4, window_bounds = array<i64: 1, 16>}]} {
    %c0 = arith.constant 0 : index
    %c0_0 = arith.constant 0 : index
    %0 = vector.load %arg1[%c0, %c0_0] : memref<8x72xbf16, #tpu.memory_space<vmem>>, vector<8x72xbf16>
    %c0_1 = arith.constant 0 : index
    %c0_2 = arith.constant 0 : index
    %1 = vector.load %arg2[%c0_1, %c0_2] : memref<72x16xbf16, #tpu.memory_space<vmem>>, vector<72x16xbf16>
    %cst = arith.constant dense<0.000000e+00> : vector<8x16xf32>
    %2 = tpu.matmul %0, %1, %cst {dimension_numbers = #tpu.dot_dimension_numbers<[1], [0], [0], [1], [0, 0, 1, 1], [], []>} : vector<8x72xbf16>, vector<72x16xbf16>, vector<8x16xf32> -> vector<8x16xf32>
    %c0_3 = arith.constant 0 : index
    %c0_4 = arith.constant 0 : index
    %3 = vector.load %arg3[%c0_3, %c0_4] : memref<8x16xf32, #tpu.memory_space<vmem>>, vector<8x16xf32>
    tpu.vector_store %arg3[%c0_3, %c0_4], %2 {strides = array<i32>} : memref<8x16xf32, #tpu.memory_space<vmem>>, vector<8x16xf32>,
    %cst_5 = arith.constant dense<0.000000e+00> : vector<16xf32>
    %4 = vector.multi_reduction <add>, %2, %cst_5 [0] : vector<8x16xf32> to vector<16xf32>
    %5 = vector.shape_cast %4 : vector<16xf32> to vector<1x16xf32>
    %c0_6 = arith.constant 0 : index
    %c0_7 = arith.constant 0 : index
    %6 = vector.load %arg4[%c0_6, %c0_7] : memref<1x16xf32, #tpu.memory_space<vmem>>, vector<1x16xf32>
    tpu.vector_store %arg4[%c0_6, %c0_7], %5 {strides = array<i32>} : memref<1x16xf32, #tpu.memory_space<vmem>>, vector<1x16xf32>,
    %7 = arith.mulf %2, %2 : vector<8x16xf32>
    %cst_8 = arith.constant dense<0.000000e+00> : vector<16xf32>
    %8 = vector.multi_reduction <add>, %7, %cst_8 [0] : vector<8x16xf32> to vector<16xf32>
    %9 = vector.shape_cast %8 : vector<16xf32> to vector<1x16xf32>
    %c0_9 = arith.constant 0 : index
    %c0_10 = arith.constant 0 : index
    %10 = vector.load %arg5[%c0_9, %c0_10] : memref<1x16xf32, #tpu.memory_space<vmem>>, vector<1x16xf32>
    tpu.vector_store %arg5[%c0_9, %c0_10], %9 {strides = array<i32>} : memref<1x16xf32, #tpu.memory_space<vmem>>, vector<1x16xf32>,
    return
  }
  func.func @transform_0(%arg0: i32) -> (i32, i32) {
    %c0_i32 = arith.constant 0 : i32
    %c0_i32_0 = arith.constant 0 : i32
    return %arg0, %c0_i32 : i32, i32
  }
  func.func @transform_1(%arg0: i32) -> (i32, i32) {
    %c0_i32 = arith.constant 0 : i32
    %c0_i32_0 = arith.constant 0 : i32
    %c0_i32_1 = arith.constant 0 : i32
    return %c0_i32, %c0_i32_0 : i32, i32
  }
  func.func @transform_2(%arg0: i32) -> (i32, i32) {
    %c0_i32 = arith.constant 0 : i32
    %c0_i32_0 = arith.constant 0 : i32
    return %arg0, %c0_i32 : i32, i32
  }
  func.func @transform_3(%arg0: i32) -> (i32, i32) {
    %c0_i32 = arith.constant 0 : i32
    %c0_i32_0 = arith.constant 0 : i32
    return %arg0, %c0_i32 : i32, i32
  }
  func.func @transform_4(%arg0: i32) -> (i32, i32) {
    %c0_i32 = arith.constant 0 : i32
    %c0_i32_0 = arith.constant 0 : i32
    return %arg0, %c0_i32 : i32, i32
  }
}

module attributes {stable_mosaic.version = 11 : i64} {
  func.func @_affine_relu_kernel(%arg0: i32, %arg1: memref<8x16xf32, #tpu.memory_space<vmem>>, %arg2: memref<1x16xf32, #tpu.memory_space<vmem>>, %arg3: memref<1x16xf32, #tpu.memory_space<vmem>>, %arg4: memref<8x16xbf16, #tpu.memory_space<vmem>>) attributes {dimension_semantics = [#tpu.dimension_semantics<parallel>], iteration_bounds = array<i64: 1>, scalar_prefetch = 0 : i64, scratch_operands = 0 : i64, tpu.core_type = #tpu.core_type<tc>, window_params = [{transform_indices = @transform_0, window_bounds = array<i64: 8, 16>}, {pipeline_mode = #tpu.pipeline_mode<synchronous>, transform_indices = @transform_1, window_bounds = array<i64: 1, 16>}, {pipeline_mode = #tpu.pipeline_mode<synchronous>, transform_indices = @transform_2, window_bounds = array<i64: 1, 16>}, {transform_indices = @transform_3, window_bounds = array<i64: 8, 16>}]} {
    %c0 = arith.constant 0 : index
    %c0_0 = arith.constant 0 : index
    %0 = vector.load %arg1[%c0, %c0_0] : memref<8x16xf32, #tpu.memory_space<vmem>>, vector<8x16xf32>
    %c0_1 = arith.constant 0 : index
    %c0_2 = arith.constant 0 : index
    %1 = vector.load %arg2[%c0_1, %c0_2] : memref<1x16xf32, #tpu.memory_space<vmem>>, vector<1x16xf32>
    %2 = vector.broadcast %1 : vector<1x16xf32> to vector<8x16xf32>
    %3 = arith.mulf %0, %2 : vector<8x16xf32>
    %c0_3 = arith.constant 0 : index
    %c0_4 = arith.constant 0 : index
    %4 = vector.load %arg3[%c0_3, %c0_4] : memref<1x16xf32, #tpu.memory_space<vmem>>, vector<1x16xf32>
    %5 = vector.broadcast %4 : vector<1x16xf32> to vector<8x16xf32>
    %6 = arith.addf %3, %5 : vector<8x16xf32>
    %cst = arith.constant 0.000000e+00 : f32
    %7 = vector.broadcast %cst : f32 to vector<8x16xf32>
    %8 = arith.maximumf %6, %7 : vector<8x16xf32>
    %9 = arith.truncf %8 : vector<8x16xf32> to vector<8x16xbf16>
    %c0_5 = arith.constant 0 : index
    %c0_6 = arith.constant 0 : index
    %10 = vector.load %arg4[%c0_5, %c0_6] : memref<8x16xbf16, #tpu.memory_space<vmem>>, vector<8x16xbf16>
    tpu.vector_store %arg4[%c0_5, %c0_6], %9 {strides = array<i32>} : memref<8x16xbf16, #tpu.memory_space<vmem>>, vector<8x16xbf16>,
    return
  }
  func.func @transform_0(%arg0: i32) -> (i32, i32) {
    %c0_i32 = arith.constant 0 : i32
    %c0_i32_0 = arith.constant 0 : i32
    return %arg0, %c0_i32 : i32, i32
  }
  func.func @transform_1(%arg0: i32) -> (i32, i32) {
    %c0_i32 = arith.constant 0 : i32
    %c0_i32_0 = arith.constant 0 : i32
    %c0_i32_1 = arith.constant 0 : i32
    return %c0_i32, %c0_i32_0 : i32, i32
  }
  func.func @transform_2(%arg0: i32) -> (i32, i32) {
    %c0_i32 = arith.constant 0 : i32
    %c0_i32_0 = arith.constant 0 : i32
    %c0_i32_1 = arith.constant 0 : i32
    return %c0_i32, %c0_i32_0 : i32, i32
  }
  func.func @transform_3(%arg0: i32) -> (i32, i32) {
    %c0_i32 = arith.constant 0 : i32
    %c0_i32_0 = arith.constant 0 : i32
    return %arg0, %c0_i32 : i32, i32
  }
}

module attributes {stable_mosaic.version = 11 : i64} {
  func.func @_matmul_stats_kernel(%arg0: i32, %arg1: memref<8x144xbf16, #tpu.memory_space<vmem>>, %arg2: memref<144x32xbf16, #tpu.memory_space<vmem>>, %arg3: memref<8x32xf32, #tpu.memory_space<vmem>>, %arg4: memref<1x32xf32, #tpu.memory_space<vmem>>, %arg5: memref<1x32xf32, #tpu.memory_space<vmem>>) attributes {dimension_semantics = [#tpu.dimension_semantics<parallel>], iteration_bounds = array<i64: 1>, scalar_prefetch = 0 : i64, scratch_operands = 0 : i64, tpu.core_type = #tpu.core_type<tc>, window_params = [{transform_indices = @transform_0, window_bounds = array<i64: 8, 144>}, {pipeline_mode = #tpu.pipeline_mode<synchronous>, transform_indices = @transform_1, window_bounds = array<i64: 144, 32>}, {transform_indices = @transform_2, window_bounds = array<i64: 8, 32>}, {transform_indices = @transform_3, window_bounds = array<i64: 1, 32>}, {transform_indices = @transform_4, window_bounds = array<i64: 1, 32>}]} {
    %c0 = arith.constant 0 : index
    %c0_0 = arith.constant 0 : index
    %0 = vector.load %arg1[%c0, %c0_0] : memref<8x144xbf16, #tpu.memory_space<vmem>>, vector<8x144xbf16>
    %c0_1 = arith.constant 0 : index
    %c0_2 = arith.constant 0 : index
    %1 = vector.load %arg2[%c0_1, %c0_2] : memref<144x32xbf16, #tpu.memory_space<vmem>>, vector<144x32xbf16>
    %cst = arith.constant dense<0.000000e+00> : vector<8x32xf32>
    %2 = tpu.matmul %0, %1, %cst {dimension_numbers = #tpu.dot_dimension_numbers<[1], [0], [0], [1], [0, 0, 1, 1], [], []>} : vector<8x144xbf16>, vector<144x32xbf16>, vector<8x32xf32> -> vector<8x32xf32>
    %c0_3 = arith.constant 0 : index
    %c0_4 = arith.constant 0 : index
    %3 = vector.load %arg3[%c0_3, %c0_4] : memref<8x32xf32, #tpu.memory_space<vmem>>, vector<8x32xf32>
    tpu.vector_store %arg3[%c0_3, %c0_4], %2 {strides = array<i32>} : memref<8x32xf32, #tpu.memory_space<vmem>>, vector<8x32xf32>,
    %cst_5 = arith.constant dense<0.000000e+00> : vector<32xf32>
    %4 = vector.multi_reduction <add>, %2, %cst_5 [0] : vector<8x32xf32> to vector<32xf32>
    %5 = vector.shape_cast %4 : vector<32xf32> to vector<1x32xf32>
    %c0_6 = arith.constant 0 : index
    %c0_7 = arith.constant 0 : index
    %6 = vector.load %arg4[%c0_6, %c0_7] : memref<1x32xf32, #tpu.memory_space<vmem>>, vector<1x32xf32>
    tpu.vector_store %arg4[%c0_6, %c0_7], %5 {strides = array<i32>} : memref<1x32xf32, #tpu.memory_space<vmem>>, vector<1x32xf32>,
    %7 = arith.mulf %2, %2 : vector<8x32xf32>
    %cst_8 = arith.constant dense<0.000000e+00> : vector<32xf32>
    %8 = vector.multi_reduction <add>, %7, %cst_8 [0] : vector<8x32xf32> to vector<32xf32>
    %9 = vector.shape_cast %8 : vector<32xf32> to vector<1x32xf32>
    %c0_9 = arith.constant 0 : index
    %c0_10 = arith.constant 0 : index
    %10 = vector.load %arg5[%c0_9, %c0_10] : memref<1x32xf32, #tpu.memory_space<vmem>>, vector<1x32xf32>
    tpu.vector_store %arg5[%c0_9, %c0_10], %9 {strides = array<i32>} : memref<1x32xf32, #tpu.memory_space<vmem>>, vector<1x32xf32>,
    return
  }
  func.func @transform_0(%arg0: i32) -> (i32, i32) {
    %c0_i32 = arith.constant 0 : i32
    %c0_i32_0 = arith.constant 0 : i32
    return %arg0, %c0_i32 : i32, i32
  }
  func.func @transform_1(%arg0: i32) -> (i32, i32) {
    %c0_i32 = arith.constant 0 : i32
    %c0_i32_0 = arith.constant 0 : i32
    %c0_i32_1 = arith.constant 0 : i32
    return %c0_i32, %c0_i32_0 : i32, i32
  }
  func.func @transform_2(%arg0: i32) -> (i32, i32) {
    %c0_i32 = arith.constant 0 : i32
    %c0_i32_0 = arith.constant 0 : i32
    return %arg0, %c0_i32 : i32, i32
  }
  func.func @transform_3(%arg0: i32) -> (i32, i32) {
    %c0_i32 = arith.constant 0 : i32
    %c0_i32_0 = arith.constant 0 : i32
    return %arg0, %c0_i32 : i32, i32
  }
  func.func @transform_4(%arg0: i32) -> (i32, i32) {
    %c0_i32 = arith.constant 0 : i32
    %c0_i32_0 = arith.constant 0 : i32
    return %arg0, %c0_i32 : i32, i32
  }
}

module attributes {stable_mosaic.version = 11 : i64} {
  func.func @_affine_relu_kernel(%arg0: i32, %arg1: memref<8x32xf32, #tpu.memory_space<vmem>>, %arg2: memref<1x32xf32, #tpu.memory_space<vmem>>, %arg3: memref<1x32xf32, #tpu.memory_space<vmem>>, %arg4: memref<8x32xbf16, #tpu.memory_space<vmem>>) attributes {dimension_semantics = [#tpu.dimension_semantics<parallel>], iteration_bounds = array<i64: 1>, scalar_prefetch = 0 : i64, scratch_operands = 0 : i64, tpu.core_type = #tpu.core_type<tc>, window_params = [{transform_indices = @transform_0, window_bounds = array<i64: 8, 32>}, {pipeline_mode = #tpu.pipeline_mode<synchronous>, transform_indices = @transform_1, window_bounds = array<i64: 1, 32>}, {pipeline_mode = #tpu.pipeline_mode<synchronous>, transform_indices = @transform_2, window_bounds = array<i64: 1, 32>}, {transform_indices = @transform_3, window_bounds = array<i64: 8, 32>}]} {
    %c0 = arith.constant 0 : index
    %c0_0 = arith.constant 0 : index
    %0 = vector.load %arg1[%c0, %c0_0] : memref<8x32xf32, #tpu.memory_space<vmem>>, vector<8x32xf32>
    %c0_1 = arith.constant 0 : index
    %c0_2 = arith.constant 0 : index
    %1 = vector.load %arg2[%c0_1, %c0_2] : memref<1x32xf32, #tpu.memory_space<vmem>>, vector<1x32xf32>
    %2 = vector.broadcast %1 : vector<1x32xf32> to vector<8x32xf32>
    %3 = arith.mulf %0, %2 : vector<8x32xf32>
    %c0_3 = arith.constant 0 : index
    %c0_4 = arith.constant 0 : index
    %4 = vector.load %arg3[%c0_3, %c0_4] : memref<1x32xf32, #tpu.memory_space<vmem>>, vector<1x32xf32>
    %5 = vector.broadcast %4 : vector<1x32xf32> to vector<8x32xf32>
    %6 = arith.addf %3, %5 : vector<8x32xf32>
    %cst = arith.constant 0.000000e+00 : f32
    %7 = vector.broadcast %cst : f32 to vector<8x32xf32>
    %8 = arith.maximumf %6, %7 : vector<8x32xf32>
    %9 = arith.truncf %8 : vector<8x32xf32> to vector<8x32xbf16>
    %c0_5 = arith.constant 0 : index
    %c0_6 = arith.constant 0 : index
    %10 = vector.load %arg4[%c0_5, %c0_6] : memref<8x32xbf16, #tpu.memory_space<vmem>>, vector<8x32xbf16>
    tpu.vector_store %arg4[%c0_5, %c0_6], %9 {strides = array<i32>} : memref<8x32xbf16, #tpu.memory_space<vmem>>, vector<8x32xbf16>,
    return
  }
  func.func @transform_0(%arg0: i32) -> (i32, i32) {
    %c0_i32 = arith.constant 0 : i32
    %c0_i32_0 = arith.constant 0 : i32
    return %arg0, %c0_i32 : i32, i32
  }
  func.func @transform_1(%arg0: i32) -> (i32, i32) {
    %c0_i32 = arith.constant 0 : i32
    %c0_i32_0 = arith.constant 0 : i32
    %c0_i32_1 = arith.constant 0 : i32
    return %c0_i32, %c0_i32_0 : i32, i32
  }
  func.func @transform_2(%arg0: i32) -> (i32, i32) {
    %c0_i32 = arith.constant 0 : i32
    %c0_i32_0 = arith.constant 0 : i32
    %c0_i32_1 = arith.constant 0 : i32
    return %c0_i32, %c0_i32_0 : i32, i32
  }
  func.func @transform_3(%arg0: i32) -> (i32, i32) {
    %c0_i32 = arith.constant 0 : i32
    %c0_i32_0 = arith.constant 0 : i32
    return %arg0, %c0_i32 : i32, i32
  }
}

module attributes {stable_mosaic.version = 11 : i64} {
  func.func @_latent_head_kernel(%arg0: memref<8x32xf32, #tpu.memory_space<vmem>>, %arg1: memref<32x16xf32, #tpu.memory_space<vmem>>, %arg2: memref<1x16xf32, #tpu.memory_space<vmem>>, %arg3: memref<32x16xf32, #tpu.memory_space<vmem>>, %arg4: memref<1x16xf32, #tpu.memory_space<vmem>>, %arg5: memref<8x16xf32, #tpu.memory_space<vmem>>, %arg6: memref<16x32xf32, #tpu.memory_space<vmem>>, %arg7: memref<1x32xf32, #tpu.memory_space<vmem>>, %arg8: memref<8x16xf32, #tpu.memory_space<vmem>>, %arg9: memref<8x16xf32, #tpu.memory_space<vmem>>, %arg10: memref<8x32xf32, #tpu.memory_space<vmem>>) attributes {dimension_semantics = [], scalar_prefetch = 0 : i64, scratch_operands = 0 : i64, tpu.core_type = #tpu.core_type<tc>} {
    %c0 = arith.constant 0 : index
    %c0_0 = arith.constant 0 : index
    %0 = vector.load %arg0[%c0, %c0_0] : memref<8x32xf32, #tpu.memory_space<vmem>>, vector<8x32xf32>
    %c0_1 = arith.constant 0 : index
    %c0_2 = arith.constant 0 : index
    %1 = vector.load %arg1[%c0_1, %c0_2] : memref<32x16xf32, #tpu.memory_space<vmem>>, vector<32x16xf32>
    %cst = arith.constant dense<0.000000e+00> : vector<8x16xf32>
    %2 = tpu.matmul %0, %1, %cst {dimension_numbers = #tpu.dot_dimension_numbers<[1], [0], [0], [1], [0, 0, 1, 1], [], []>} : vector<8x32xf32>, vector<32x16xf32>, vector<8x16xf32> -> vector<8x16xf32>
    %c0_3 = arith.constant 0 : index
    %c0_4 = arith.constant 0 : index
    %3 = vector.load %arg2[%c0_3, %c0_4] : memref<1x16xf32, #tpu.memory_space<vmem>>, vector<1x16xf32>
    %4 = vector.broadcast %3 : vector<1x16xf32> to vector<8x16xf32>
    %5 = arith.addf %2, %4 : vector<8x16xf32>
    %c0_5 = arith.constant 0 : index
    %c0_6 = arith.constant 0 : index
    %6 = vector.load %arg3[%c0_5, %c0_6] : memref<32x16xf32, #tpu.memory_space<vmem>>, vector<32x16xf32>
    %cst_7 = arith.constant dense<0.000000e+00> : vector<8x16xf32>
    %7 = tpu.matmul %0, %6, %cst_7 {dimension_numbers = #tpu.dot_dimension_numbers<[1], [0], [0], [1], [0, 0, 1, 1], [], []>} : vector<8x32xf32>, vector<32x16xf32>, vector<8x16xf32> -> vector<8x16xf32>
    %c0_8 = arith.constant 0 : index
    %c0_9 = arith.constant 0 : index
    %8 = vector.load %arg4[%c0_8, %c0_9] : memref<1x16xf32, #tpu.memory_space<vmem>>, vector<1x16xf32>
    %9 = vector.broadcast %8 : vector<1x16xf32> to vector<8x16xf32>
    %10 = arith.addf %7, %9 : vector<8x16xf32>
    %c0_10 = arith.constant 0 : index
    %c0_11 = arith.constant 0 : index
    %11 = vector.load %arg5[%c0_10, %c0_11] : memref<8x16xf32, #tpu.memory_space<vmem>>, vector<8x16xf32>
    %cst_12 = arith.constant 5.000000e-01 : f32
    %12 = vector.broadcast %cst_12 : f32 to vector<8x16xf32>
    %13 = arith.mulf %10, %12 : vector<8x16xf32>
    %14 = math.exp %13 : vector<8x16xf32>
    %15 = arith.mulf %11, %14 : vector<8x16xf32>
    %16 = arith.addf %15, %5 : vector<8x16xf32>
    %c0_13 = arith.constant 0 : index
    %c0_14 = arith.constant 0 : index
    %17 = vector.load %arg6[%c0_13, %c0_14] : memref<16x32xf32, #tpu.memory_space<vmem>>, vector<16x32xf32>
    %cst_15 = arith.constant dense<0.000000e+00> : vector<8x32xf32>
    %18 = tpu.matmul %16, %17, %cst_15 {dimension_numbers = #tpu.dot_dimension_numbers<[1], [0], [0], [1], [0, 0, 1, 1], [], []>} : vector<8x16xf32>, vector<16x32xf32>, vector<8x32xf32> -> vector<8x32xf32>
    %c0_16 = arith.constant 0 : index
    %c0_17 = arith.constant 0 : index
    %19 = vector.load %arg7[%c0_16, %c0_17] : memref<1x32xf32, #tpu.memory_space<vmem>>, vector<1x32xf32>
    %20 = vector.broadcast %19 : vector<1x32xf32> to vector<8x32xf32>
    %21 = arith.addf %18, %20 : vector<8x32xf32>
    %c0_18 = arith.constant 0 : index
    %c0_19 = arith.constant 0 : index
    %22 = vector.load %arg8[%c0_18, %c0_19] : memref<8x16xf32, #tpu.memory_space<vmem>>, vector<8x16xf32>
    tpu.vector_store %arg8[%c0_18, %c0_19], %5 {strides = array<i32>} : memref<8x16xf32, #tpu.memory_space<vmem>>, vector<8x16xf32>,
    %c0_20 = arith.constant 0 : index
    %c0_21 = arith.constant 0 : index
    %23 = vector.load %arg9[%c0_20, %c0_21] : memref<8x16xf32, #tpu.memory_space<vmem>>, vector<8x16xf32>
    tpu.vector_store %arg9[%c0_20, %c0_21], %10 {strides = array<i32>} : memref<8x16xf32, #tpu.memory_space<vmem>>, vector<8x16xf32>,
    %c0_22 = arith.constant 0 : index
    %c0_23 = arith.constant 0 : index
    %24 = vector.load %arg10[%c0_22, %c0_23] : memref<8x32xf32, #tpu.memory_space<vmem>>, vector<8x32xf32>
    tpu.vector_store %arg10[%c0_22, %c0_23], %21 {strides = array<i32>} : memref<8x32xf32, #tpu.memory_space<vmem>>, vector<8x32xf32>,
    return
  }
}

module attributes {stable_mosaic.version = 11 : i64} {
  func.func @_matmul_stats_kernel(%arg0: i32, %arg1: memref<8x128xbf16, #tpu.memory_space<vmem>>, %arg2: memref<128x64xbf16, #tpu.memory_space<vmem>>, %arg3: memref<8x64xf32, #tpu.memory_space<vmem>>, %arg4: memref<1x64xf32, #tpu.memory_space<vmem>>, %arg5: memref<1x64xf32, #tpu.memory_space<vmem>>) attributes {dimension_semantics = [#tpu.dimension_semantics<parallel>], iteration_bounds = array<i64: 1>, scalar_prefetch = 0 : i64, scratch_operands = 0 : i64, tpu.core_type = #tpu.core_type<tc>, window_params = [{transform_indices = @transform_0, window_bounds = array<i64: 8, 128>}, {pipeline_mode = #tpu.pipeline_mode<synchronous>, transform_indices = @transform_1, window_bounds = array<i64: 128, 64>}, {transform_indices = @transform_2, window_bounds = array<i64: 8, 64>}, {transform_indices = @transform_3, window_bounds = array<i64: 1, 64>}, {transform_indices = @transform_4, window_bounds = array<i64: 1, 64>}]} {
    %c0 = arith.constant 0 : index
    %c0_0 = arith.constant 0 : index
    %0 = vector.load %arg1[%c0, %c0_0] : memref<8x128xbf16, #tpu.memory_space<vmem>>, vector<8x128xbf16>
    %c0_1 = arith.constant 0 : index
    %c0_2 = arith.constant 0 : index
    %1 = vector.load %arg2[%c0_1, %c0_2] : memref<128x64xbf16, #tpu.memory_space<vmem>>, vector<128x64xbf16>
    %cst = arith.constant dense<0.000000e+00> : vector<8x64xf32>
    %2 = tpu.matmul %0, %1, %cst {dimension_numbers = #tpu.dot_dimension_numbers<[1], [0], [0], [1], [0, 0, 1, 1], [], []>} : vector<8x128xbf16>, vector<128x64xbf16>, vector<8x64xf32> -> vector<8x64xf32>
    %c0_3 = arith.constant 0 : index
    %c0_4 = arith.constant 0 : index
    %3 = vector.load %arg3[%c0_3, %c0_4] : memref<8x64xf32, #tpu.memory_space<vmem>>, vector<8x64xf32>
    tpu.vector_store %arg3[%c0_3, %c0_4], %2 {strides = array<i32>} : memref<8x64xf32, #tpu.memory_space<vmem>>, vector<8x64xf32>,
    %cst_5 = arith.constant dense<0.000000e+00> : vector<64xf32>
    %4 = vector.multi_reduction <add>, %2, %cst_5 [0] : vector<8x64xf32> to vector<64xf32>
    %5 = vector.shape_cast %4 : vector<64xf32> to vector<1x64xf32>
    %c0_6 = arith.constant 0 : index
    %c0_7 = arith.constant 0 : index
    %6 = vector.load %arg4[%c0_6, %c0_7] : memref<1x64xf32, #tpu.memory_space<vmem>>, vector<1x64xf32>
    tpu.vector_store %arg4[%c0_6, %c0_7], %5 {strides = array<i32>} : memref<1x64xf32, #tpu.memory_space<vmem>>, vector<1x64xf32>,
    %7 = arith.mulf %2, %2 : vector<8x64xf32>
    %cst_8 = arith.constant dense<0.000000e+00> : vector<64xf32>
    %8 = vector.multi_reduction <add>, %7, %cst_8 [0] : vector<8x64xf32> to vector<64xf32>
    %9 = vector.shape_cast %8 : vector<64xf32> to vector<1x64xf32>
    %c0_9 = arith.constant 0 : index
    %c0_10 = arith.constant 0 : index
    %10 = vector.load %arg5[%c0_9, %c0_10] : memref<1x64xf32, #tpu.memory_space<vmem>>, vector<1x64xf32>
    tpu.vector_store %arg5[%c0_9, %c0_10], %9 {strides = array<i32>} : memref<1x64xf32, #tpu.memory_space<vmem>>, vector<1x64xf32>,
    return
  }
  func.func @transform_0(%arg0: i32) -> (i32, i32) {
    %c0_i32 = arith.constant 0 : i32
    %c0_i32_0 = arith.constant 0 : i32
    return %arg0, %c0_i32 : i32, i32
  }
  func.func @transform_1(%arg0: i32) -> (i32, i32) {
    %c0_i32 = arith.constant 0 : i32
    %c0_i32_0 = arith.constant 0 : i32
    %c0_i32_1 = arith.constant 0 : i32
    return %c0_i32, %c0_i32_0 : i32, i32
  }
  func.func @transform_2(%arg0: i32) -> (i32, i32) {
    %c0_i32 = arith.constant 0 : i32
    %c0_i32_0 = arith.constant 0 : i32
    return %arg0, %c0_i32 : i32, i32
  }
  func.func @transform_3(%arg0: i32) -> (i32, i32) {
    %c0_i32 = arith.constant 0 : i32
    %c0_i32_0 = arith.constant 0 : i32
    return %arg0, %c0_i32 : i32, i32
  }
  func.func @transform_4(%arg0: i32) -> (i32, i32) {
    %c0_i32 = arith.constant 0 : i32
    %c0_i32_0 = arith.constant 0 : i32
    return %arg0, %c0_i32 : i32, i32
  }
}

module attributes {stable_mosaic.version = 11 : i64} {
  func.func @_affine_relu_kernel(%arg0: i32, %arg1: memref<8x64xf32, #tpu.memory_space<vmem>>, %arg2: memref<1x64xf32, #tpu.memory_space<vmem>>, %arg3: memref<1x64xf32, #tpu.memory_space<vmem>>, %arg4: memref<8x64xbf16, #tpu.memory_space<vmem>>) attributes {dimension_semantics = [#tpu.dimension_semantics<parallel>], iteration_bounds = array<i64: 1>, scalar_prefetch = 0 : i64, scratch_operands = 0 : i64, tpu.core_type = #tpu.core_type<tc>, window_params = [{transform_indices = @transform_0, window_bounds = array<i64: 8, 64>}, {pipeline_mode = #tpu.pipeline_mode<synchronous>, transform_indices = @transform_1, window_bounds = array<i64: 1, 64>}, {pipeline_mode = #tpu.pipeline_mode<synchronous>, transform_indices = @transform_2, window_bounds = array<i64: 1, 64>}, {transform_indices = @transform_3, window_bounds = array<i64: 8, 64>}]} {
    %c0 = arith.constant 0 : index
    %c0_0 = arith.constant 0 : index
    %0 = vector.load %arg1[%c0, %c0_0] : memref<8x64xf32, #tpu.memory_space<vmem>>, vector<8x64xf32>
    %c0_1 = arith.constant 0 : index
    %c0_2 = arith.constant 0 : index
    %1 = vector.load %arg2[%c0_1, %c0_2] : memref<1x64xf32, #tpu.memory_space<vmem>>, vector<1x64xf32>
    %2 = vector.broadcast %1 : vector<1x64xf32> to vector<8x64xf32>
    %3 = arith.mulf %0, %2 : vector<8x64xf32>
    %c0_3 = arith.constant 0 : index
    %c0_4 = arith.constant 0 : index
    %4 = vector.load %arg3[%c0_3, %c0_4] : memref<1x64xf32, #tpu.memory_space<vmem>>, vector<1x64xf32>
    %5 = vector.broadcast %4 : vector<1x64xf32> to vector<8x64xf32>
    %6 = arith.addf %3, %5 : vector<8x64xf32>
    %cst = arith.constant 0.000000e+00 : f32
    %7 = vector.broadcast %cst : f32 to vector<8x64xf32>
    %8 = arith.maximumf %6, %7 : vector<8x64xf32>
    %9 = arith.truncf %8 : vector<8x64xf32> to vector<8x64xbf16>
    %c0_5 = arith.constant 0 : index
    %c0_6 = arith.constant 0 : index
    %10 = vector.load %arg4[%c0_5, %c0_6] : memref<8x64xbf16, #tpu.memory_space<vmem>>, vector<8x64xbf16>
    tpu.vector_store %arg4[%c0_5, %c0_6], %9 {strides = array<i32>} : memref<8x64xbf16, #tpu.memory_space<vmem>>, vector<8x64xbf16>,
    return
  }
  func.func @transform_0(%arg0: i32) -> (i32, i32) {
    %c0_i32 = arith.constant 0 : i32
    %c0_i32_0 = arith.constant 0 : i32
    return %arg0, %c0_i32 : i32, i32
  }
  func.func @transform_1(%arg0: i32) -> (i32, i32) {
    %c0_i32 = arith.constant 0 : i32
    %c0_i32_0 = arith.constant 0 : i32
    %c0_i32_1 = arith.constant 0 : i32
    return %c0_i32, %c0_i32_0 : i32, i32
  }
  func.func @transform_2(%arg0: i32) -> (i32, i32) {
    %c0_i32 = arith.constant 0 : i32
    %c0_i32_0 = arith.constant 0 : i32
    %c0_i32_1 = arith.constant 0 : i32
    return %c0_i32, %c0_i32_0 : i32, i32
  }
  func.func @transform_3(%arg0: i32) -> (i32, i32) {
    %c0_i32 = arith.constant 0 : i32
    %c0_i32_0 = arith.constant 0 : i32
    return %arg0, %c0_i32 : i32, i32
  }
}

module attributes {stable_mosaic.version = 11 : i64} {
  func.func @_matmul_stats_kernel(%arg0: i32, %arg1: memref<8x64xbf16, #tpu.memory_space<vmem>>, %arg2: memref<64x32xbf16, #tpu.memory_space<vmem>>, %arg3: memref<8x32xf32, #tpu.memory_space<vmem>>, %arg4: memref<1x32xf32, #tpu.memory_space<vmem>>, %arg5: memref<1x32xf32, #tpu.memory_space<vmem>>) attributes {dimension_semantics = [#tpu.dimension_semantics<parallel>], iteration_bounds = array<i64: 1>, scalar_prefetch = 0 : i64, scratch_operands = 0 : i64, tpu.core_type = #tpu.core_type<tc>, window_params = [{transform_indices = @transform_0, window_bounds = array<i64: 8, 64>}, {pipeline_mode = #tpu.pipeline_mode<synchronous>, transform_indices = @transform_1, window_bounds = array<i64: 64, 32>}, {transform_indices = @transform_2, window_bounds = array<i64: 8, 32>}, {transform_indices = @transform_3, window_bounds = array<i64: 1, 32>}, {transform_indices = @transform_4, window_bounds = array<i64: 1, 32>}]} {
    %c0 = arith.constant 0 : index
    %c0_0 = arith.constant 0 : index
    %0 = vector.load %arg1[%c0, %c0_0] : memref<8x64xbf16, #tpu.memory_space<vmem>>, vector<8x64xbf16>
    %c0_1 = arith.constant 0 : index
    %c0_2 = arith.constant 0 : index
    %1 = vector.load %arg2[%c0_1, %c0_2] : memref<64x32xbf16, #tpu.memory_space<vmem>>, vector<64x32xbf16>
    %cst = arith.constant dense<0.000000e+00> : vector<8x32xf32>
    %2 = tpu.matmul %0, %1, %cst {dimension_numbers = #tpu.dot_dimension_numbers<[1], [0], [0], [1], [0, 0, 1, 1], [], []>} : vector<8x64xbf16>, vector<64x32xbf16>, vector<8x32xf32> -> vector<8x32xf32>
    %c0_3 = arith.constant 0 : index
    %c0_4 = arith.constant 0 : index
    %3 = vector.load %arg3[%c0_3, %c0_4] : memref<8x32xf32, #tpu.memory_space<vmem>>, vector<8x32xf32>
    tpu.vector_store %arg3[%c0_3, %c0_4], %2 {strides = array<i32>} : memref<8x32xf32, #tpu.memory_space<vmem>>, vector<8x32xf32>,
    %cst_5 = arith.constant dense<0.000000e+00> : vector<32xf32>
    %4 = vector.multi_reduction <add>, %2, %cst_5 [0] : vector<8x32xf32> to vector<32xf32>
    %5 = vector.shape_cast %4 : vector<32xf32> to vector<1x32xf32>
    %c0_6 = arith.constant 0 : index
    %c0_7 = arith.constant 0 : index
    %6 = vector.load %arg4[%c0_6, %c0_7] : memref<1x32xf32, #tpu.memory_space<vmem>>, vector<1x32xf32>
    tpu.vector_store %arg4[%c0_6, %c0_7], %5 {strides = array<i32>} : memref<1x32xf32, #tpu.memory_space<vmem>>, vector<1x32xf32>,
    %7 = arith.mulf %2, %2 : vector<8x32xf32>
    %cst_8 = arith.constant dense<0.000000e+00> : vector<32xf32>
    %8 = vector.multi_reduction <add>, %7, %cst_8 [0] : vector<8x32xf32> to vector<32xf32>
    %9 = vector.shape_cast %8 : vector<32xf32> to vector<1x32xf32>
    %c0_9 = arith.constant 0 : index
    %c0_10 = arith.constant 0 : index
    %10 = vector.load %arg5[%c0_9, %c0_10] : memref<1x32xf32, #tpu.memory_space<vmem>>, vector<1x32xf32>
    tpu.vector_store %arg5[%c0_9, %c0_10], %9 {strides = array<i32>} : memref<1x32xf32, #tpu.memory_space<vmem>>, vector<1x32xf32>,
    return
  }
  func.func @transform_0(%arg0: i32) -> (i32, i32) {
    %c0_i32 = arith.constant 0 : i32
    %c0_i32_0 = arith.constant 0 : i32
    return %arg0, %c0_i32 : i32, i32
  }
  func.func @transform_1(%arg0: i32) -> (i32, i32) {
    %c0_i32 = arith.constant 0 : i32
    %c0_i32_0 = arith.constant 0 : i32
    %c0_i32_1 = arith.constant 0 : i32
    return %c0_i32, %c0_i32_0 : i32, i32
  }
  func.func @transform_2(%arg0: i32) -> (i32, i32) {
    %c0_i32 = arith.constant 0 : i32
    %c0_i32_0 = arith.constant 0 : i32
    return %arg0, %c0_i32 : i32, i32
  }
  func.func @transform_3(%arg0: i32) -> (i32, i32) {
    %c0_i32 = arith.constant 0 : i32
    %c0_i32_0 = arith.constant 0 : i32
    return %arg0, %c0_i32 : i32, i32
  }
  func.func @transform_4(%arg0: i32) -> (i32, i32) {
    %c0_i32 = arith.constant 0 : i32
    %c0_i32_0 = arith.constant 0 : i32
    return %arg0, %c0_i32 : i32, i32
  }
}

module attributes {stable_mosaic.version = 11 : i64} {
  func.func @_matmul_stats_kernel(%arg0: i32, %arg1: memref<32x32xbf16, #tpu.memory_space<vmem>>, %arg2: memref<32x16xbf16, #tpu.memory_space<vmem>>, %arg3: memref<32x16xf32, #tpu.memory_space<vmem>>, %arg4: memref<1x16xf32, #tpu.memory_space<vmem>>, %arg5: memref<1x16xf32, #tpu.memory_space<vmem>>) attributes {dimension_semantics = [#tpu.dimension_semantics<parallel>], iteration_bounds = array<i64: 1>, scalar_prefetch = 0 : i64, scratch_operands = 0 : i64, tpu.core_type = #tpu.core_type<tc>, window_params = [{transform_indices = @transform_0, window_bounds = array<i64: 32, 32>}, {pipeline_mode = #tpu.pipeline_mode<synchronous>, transform_indices = @transform_1, window_bounds = array<i64: 32, 16>}, {transform_indices = @transform_2, window_bounds = array<i64: 32, 16>}, {transform_indices = @transform_3, window_bounds = array<i64: 1, 16>}, {transform_indices = @transform_4, window_bounds = array<i64: 1, 16>}]} {
    %c0 = arith.constant 0 : index
    %c0_0 = arith.constant 0 : index
    %0 = vector.load %arg1[%c0, %c0_0] : memref<32x32xbf16, #tpu.memory_space<vmem>>, vector<32x32xbf16>
    %c0_1 = arith.constant 0 : index
    %c0_2 = arith.constant 0 : index
    %1 = vector.load %arg2[%c0_1, %c0_2] : memref<32x16xbf16, #tpu.memory_space<vmem>>, vector<32x16xbf16>
    %cst = arith.constant dense<0.000000e+00> : vector<32x16xf32>
    %2 = tpu.matmul %0, %1, %cst {dimension_numbers = #tpu.dot_dimension_numbers<[1], [0], [0], [1], [0, 0, 1, 1], [], []>} : vector<32x32xbf16>, vector<32x16xbf16>, vector<32x16xf32> -> vector<32x16xf32>
    %c0_3 = arith.constant 0 : index
    %c0_4 = arith.constant 0 : index
    %3 = vector.load %arg3[%c0_3, %c0_4] : memref<32x16xf32, #tpu.memory_space<vmem>>, vector<32x16xf32>
    tpu.vector_store %arg3[%c0_3, %c0_4], %2 {strides = array<i32>} : memref<32x16xf32, #tpu.memory_space<vmem>>, vector<32x16xf32>,
    %cst_5 = arith.constant dense<0.000000e+00> : vector<16xf32>
    %4 = vector.multi_reduction <add>, %2, %cst_5 [0] : vector<32x16xf32> to vector<16xf32>
    %5 = vector.shape_cast %4 : vector<16xf32> to vector<1x16xf32>
    %c0_6 = arith.constant 0 : index
    %c0_7 = arith.constant 0 : index
    %6 = vector.load %arg4[%c0_6, %c0_7] : memref<1x16xf32, #tpu.memory_space<vmem>>, vector<1x16xf32>
    tpu.vector_store %arg4[%c0_6, %c0_7], %5 {strides = array<i32>} : memref<1x16xf32, #tpu.memory_space<vmem>>, vector<1x16xf32>,
    %7 = arith.mulf %2, %2 : vector<32x16xf32>
    %cst_8 = arith.constant dense<0.000000e+00> : vector<16xf32>
    %8 = vector.multi_reduction <add>, %7, %cst_8 [0] : vector<32x16xf32> to vector<16xf32>
    %9 = vector.shape_cast %8 : vector<16xf32> to vector<1x16xf32>
    %c0_9 = arith.constant 0 : index
    %c0_10 = arith.constant 0 : index
    %10 = vector.load %arg5[%c0_9, %c0_10] : memref<1x16xf32, #tpu.memory_space<vmem>>, vector<1x16xf32>
    tpu.vector_store %arg5[%c0_9, %c0_10], %9 {strides = array<i32>} : memref<1x16xf32, #tpu.memory_space<vmem>>, vector<1x16xf32>,
    return
  }
  func.func @transform_0(%arg0: i32) -> (i32, i32) {
    %c0_i32 = arith.constant 0 : i32
    %c0_i32_0 = arith.constant 0 : i32
    return %arg0, %c0_i32 : i32, i32
  }
  func.func @transform_1(%arg0: i32) -> (i32, i32) {
    %c0_i32 = arith.constant 0 : i32
    %c0_i32_0 = arith.constant 0 : i32
    %c0_i32_1 = arith.constant 0 : i32
    return %c0_i32, %c0_i32_0 : i32, i32
  }
  func.func @transform_2(%arg0: i32) -> (i32, i32) {
    %c0_i32 = arith.constant 0 : i32
    %c0_i32_0 = arith.constant 0 : i32
    return %arg0, %c0_i32 : i32, i32
  }
  func.func @transform_3(%arg0: i32) -> (i32, i32) {
    %c0_i32 = arith.constant 0 : i32
    %c0_i32_0 = arith.constant 0 : i32
    return %arg0, %c0_i32 : i32, i32
  }
  func.func @transform_4(%arg0: i32) -> (i32, i32) {
    %c0_i32 = arith.constant 0 : i32
    %c0_i32_0 = arith.constant 0 : i32
    return %arg0, %c0_i32 : i32, i32
  }
}

module attributes {stable_mosaic.version = 11 : i64} {
  func.func @_affine_relu_kernel(%arg0: i32, %arg1: memref<32x16xf32, #tpu.memory_space<vmem>>, %arg2: memref<1x16xf32, #tpu.memory_space<vmem>>, %arg3: memref<1x16xf32, #tpu.memory_space<vmem>>, %arg4: memref<32x16xbf16, #tpu.memory_space<vmem>>) attributes {dimension_semantics = [#tpu.dimension_semantics<parallel>], iteration_bounds = array<i64: 1>, scalar_prefetch = 0 : i64, scratch_operands = 0 : i64, tpu.core_type = #tpu.core_type<tc>, window_params = [{transform_indices = @transform_0, window_bounds = array<i64: 32, 16>}, {pipeline_mode = #tpu.pipeline_mode<synchronous>, transform_indices = @transform_1, window_bounds = array<i64: 1, 16>}, {pipeline_mode = #tpu.pipeline_mode<synchronous>, transform_indices = @transform_2, window_bounds = array<i64: 1, 16>}, {transform_indices = @transform_3, window_bounds = array<i64: 32, 16>}]} {
    %c0 = arith.constant 0 : index
    %c0_0 = arith.constant 0 : index
    %0 = vector.load %arg1[%c0, %c0_0] : memref<32x16xf32, #tpu.memory_space<vmem>>, vector<32x16xf32>
    %c0_1 = arith.constant 0 : index
    %c0_2 = arith.constant 0 : index
    %1 = vector.load %arg2[%c0_1, %c0_2] : memref<1x16xf32, #tpu.memory_space<vmem>>, vector<1x16xf32>
    %2 = vector.broadcast %1 : vector<1x16xf32> to vector<32x16xf32>
    %3 = arith.mulf %0, %2 : vector<32x16xf32>
    %c0_3 = arith.constant 0 : index
    %c0_4 = arith.constant 0 : index
    %4 = vector.load %arg3[%c0_3, %c0_4] : memref<1x16xf32, #tpu.memory_space<vmem>>, vector<1x16xf32>
    %5 = vector.broadcast %4 : vector<1x16xf32> to vector<32x16xf32>
    %6 = arith.addf %3, %5 : vector<32x16xf32>
    %cst = arith.constant 0.000000e+00 : f32
    %7 = vector.broadcast %cst : f32 to vector<32x16xf32>
    %8 = arith.maximumf %6, %7 : vector<32x16xf32>
    %9 = arith.truncf %8 : vector<32x16xf32> to vector<32x16xbf16>
    %c0_5 = arith.constant 0 : index
    %c0_6 = arith.constant 0 : index
    %10 = vector.load %arg4[%c0_5, %c0_6] : memref<32x16xbf16, #tpu.memory_space<vmem>>, vector<32x16xbf16>
    tpu.vector_store %arg4[%c0_5, %c0_6], %9 {strides = array<i32>} : memref<32x16xbf16, #tpu.memory_space<vmem>>, vector<32x16xbf16>,
    return
  }
  func.func @transform_0(%arg0: i32) -> (i32, i32) {
    %c0_i32 = arith.constant 0 : i32
    %c0_i32_0 = arith.constant 0 : i32
    return %arg0, %c0_i32 : i32, i32
  }
  func.func @transform_1(%arg0: i32) -> (i32, i32) {
    %c0_i32 = arith.constant 0 : i32
    %c0_i32_0 = arith.constant 0 : i32
    %c0_i32_1 = arith.constant 0 : i32
    return %c0_i32, %c0_i32_0 : i32, i32
  }
  func.func @transform_2(%arg0: i32) -> (i32, i32) {
    %c0_i32 = arith.constant 0 : i32
    %c0_i32_0 = arith.constant 0 : i32
    %c0_i32_1 = arith.constant 0 : i32
    return %c0_i32, %c0_i32_0 : i32, i32
  }
  func.func @transform_3(%arg0: i32) -> (i32, i32) {
    %c0_i32 = arith.constant 0 : i32
    %c0_i32_0 = arith.constant 0 : i32
    return %arg0, %c0_i32 : i32, i32
  }
}

module attributes {stable_mosaic.version = 11 : i64} {
  func.func @_affine_relu_kernel(%arg0: i32, %arg1: memref<128x16xf32, #tpu.memory_space<vmem>>, %arg2: memref<1x16xf32, #tpu.memory_space<vmem>>, %arg3: memref<1x16xf32, #tpu.memory_space<vmem>>, %arg4: memref<128x16xbf16, #tpu.memory_space<vmem>>) attributes {dimension_semantics = [#tpu.dimension_semantics<parallel>], iteration_bounds = array<i64: 1>, scalar_prefetch = 0 : i64, scratch_operands = 0 : i64, tpu.core_type = #tpu.core_type<tc>, window_params = [{transform_indices = @transform_0, window_bounds = array<i64: 128, 16>}, {pipeline_mode = #tpu.pipeline_mode<synchronous>, transform_indices = @transform_1, window_bounds = array<i64: 1, 16>}, {pipeline_mode = #tpu.pipeline_mode<synchronous>, transform_indices = @transform_2, window_bounds = array<i64: 1, 16>}, {transform_indices = @transform_3, window_bounds = array<i64: 128, 16>}]} {
    %c0 = arith.constant 0 : index
    %c0_0 = arith.constant 0 : index
    %0 = vector.load %arg1[%c0, %c0_0] : memref<128x16xf32, #tpu.memory_space<vmem>>, vector<128x16xf32>
    %c0_1 = arith.constant 0 : index
    %c0_2 = arith.constant 0 : index
    %1 = vector.load %arg2[%c0_1, %c0_2] : memref<1x16xf32, #tpu.memory_space<vmem>>, vector<1x16xf32>
    %2 = vector.broadcast %1 : vector<1x16xf32> to vector<128x16xf32>
    %3 = arith.mulf %0, %2 : vector<128x16xf32>
    %c0_3 = arith.constant 0 : index
    %c0_4 = arith.constant 0 : index
    %4 = vector.load %arg3[%c0_3, %c0_4] : memref<1x16xf32, #tpu.memory_space<vmem>>, vector<1x16xf32>
    %5 = vector.broadcast %4 : vector<1x16xf32> to vector<128x16xf32>
    %6 = arith.addf %3, %5 : vector<128x16xf32>
    %cst = arith.constant 0.000000e+00 : f32
    %7 = vector.broadcast %cst : f32 to vector<128x16xf32>
    %8 = arith.maximumf %6, %7 : vector<128x16xf32>
    %9 = arith.truncf %8 : vector<128x16xf32> to vector<128x16xbf16>
    %c0_5 = arith.constant 0 : index
    %c0_6 = arith.constant 0 : index
    %10 = vector.load %arg4[%c0_5, %c0_6] : memref<128x16xbf16, #tpu.memory_space<vmem>>, vector<128x16xbf16>
    tpu.vector_store %arg4[%c0_5, %c0_6], %9 {strides = array<i32>} : memref<128x16xbf16, #tpu.memory_space<vmem>>, vector<128x16xbf16>,
    return
  }
  func.func @transform_0(%arg0: i32) -> (i32, i32) {
    %c0_i32 = arith.constant 0 : i32
    %c0_i32_0 = arith.constant 0 : i32
    return %arg0, %c0_i32 : i32, i32
  }
  func.func @transform_1(%arg0: i32) -> (i32, i32) {
    %c0_i32 = arith.constant 0 : i32
    %c0_i32_0 = arith.constant 0 : i32
    %c0_i32_1 = arith.constant 0 : i32
    return %c0_i32, %c0_i32_0 : i32, i32
  }
  func.func @transform_2(%arg0: i32) -> (i32, i32) {
    %c0_i32 = arith.constant 0 : i32
    %c0_i32_0 = arith.constant 0 : i32
    %c0_i32_1 = arith.constant 0 : i32
    return %c0_i32, %c0_i32_0 : i32, i32
  }
  func.func @transform_3(%arg0: i32) -> (i32, i32) {
    %c0_i32 = arith.constant 0 : i32
    %c0_i32_0 = arith.constant 0 : i32
    return %arg0, %c0_i32 : i32, i32
  }
}

module attributes {stable_mosaic.version = 11 : i64} {
  func.func @_matmul_stats_kernel(%arg0: i32, %arg1: memref<128x16xbf16, #tpu.memory_space<vmem>>, %arg2: memref<16x16xbf16, #tpu.memory_space<vmem>>, %arg3: memref<128x16xf32, #tpu.memory_space<vmem>>, %arg4: memref<1x16xf32, #tpu.memory_space<vmem>>, %arg5: memref<1x16xf32, #tpu.memory_space<vmem>>) attributes {dimension_semantics = [#tpu.dimension_semantics<parallel>], iteration_bounds = array<i64: 1>, scalar_prefetch = 0 : i64, scratch_operands = 0 : i64, tpu.core_type = #tpu.core_type<tc>, window_params = [{transform_indices = @transform_0, window_bounds = array<i64: 128, 16>}, {pipeline_mode = #tpu.pipeline_mode<synchronous>, transform_indices = @transform_1, window_bounds = array<i64: 16, 16>}, {transform_indices = @transform_2, window_bounds = array<i64: 128, 16>}, {transform_indices = @transform_3, window_bounds = array<i64: 1, 16>}, {transform_indices = @transform_4, window_bounds = array<i64: 1, 16>}]} {
    %c0 = arith.constant 0 : index
    %c0_0 = arith.constant 0 : index
    %0 = vector.load %arg1[%c0, %c0_0] : memref<128x16xbf16, #tpu.memory_space<vmem>>, vector<128x16xbf16>
    %c0_1 = arith.constant 0 : index
    %c0_2 = arith.constant 0 : index
    %1 = vector.load %arg2[%c0_1, %c0_2] : memref<16x16xbf16, #tpu.memory_space<vmem>>, vector<16x16xbf16>
    %cst = arith.constant dense<0.000000e+00> : vector<128x16xf32>
    %2 = tpu.matmul %0, %1, %cst {dimension_numbers = #tpu.dot_dimension_numbers<[1], [0], [0], [1], [0, 0, 1, 1], [], []>} : vector<128x16xbf16>, vector<16x16xbf16>, vector<128x16xf32> -> vector<128x16xf32>
    %c0_3 = arith.constant 0 : index
    %c0_4 = arith.constant 0 : index
    %3 = vector.load %arg3[%c0_3, %c0_4] : memref<128x16xf32, #tpu.memory_space<vmem>>, vector<128x16xf32>
    tpu.vector_store %arg3[%c0_3, %c0_4], %2 {strides = array<i32>} : memref<128x16xf32, #tpu.memory_space<vmem>>, vector<128x16xf32>,
    %cst_5 = arith.constant dense<0.000000e+00> : vector<16xf32>
    %4 = vector.multi_reduction <add>, %2, %cst_5 [0] : vector<128x16xf32> to vector<16xf32>
    %5 = vector.shape_cast %4 : vector<16xf32> to vector<1x16xf32>
    %c0_6 = arith.constant 0 : index
    %c0_7 = arith.constant 0 : index
    %6 = vector.load %arg4[%c0_6, %c0_7] : memref<1x16xf32, #tpu.memory_space<vmem>>, vector<1x16xf32>
    tpu.vector_store %arg4[%c0_6, %c0_7], %5 {strides = array<i32>} : memref<1x16xf32, #tpu.memory_space<vmem>>, vector<1x16xf32>,
    %7 = arith.mulf %2, %2 : vector<128x16xf32>
    %cst_8 = arith.constant dense<0.000000e+00> : vector<16xf32>
    %8 = vector.multi_reduction <add>, %7, %cst_8 [0] : vector<128x16xf32> to vector<16xf32>
    %9 = vector.shape_cast %8 : vector<16xf32> to vector<1x16xf32>
    %c0_9 = arith.constant 0 : index
    %c0_10 = arith.constant 0 : index
    %10 = vector.load %arg5[%c0_9, %c0_10] : memref<1x16xf32, #tpu.memory_space<vmem>>, vector<1x16xf32>
    tpu.vector_store %arg5[%c0_9, %c0_10], %9 {strides = array<i32>} : memref<1x16xf32, #tpu.memory_space<vmem>>, vector<1x16xf32>,
    return
  }
  func.func @transform_0(%arg0: i32) -> (i32, i32) {
    %c0_i32 = arith.constant 0 : i32
    %c0_i32_0 = arith.constant 0 : i32
    return %arg0, %c0_i32 : i32, i32
  }
  func.func @transform_1(%arg0: i32) -> (i32, i32) {
    %c0_i32 = arith.constant 0 : i32
    %c0_i32_0 = arith.constant 0 : i32
    %c0_i32_1 = arith.constant 0 : i32
    return %c0_i32, %c0_i32_0 : i32, i32
  }
  func.func @transform_2(%arg0: i32) -> (i32, i32) {
    %c0_i32 = arith.constant 0 : i32
    %c0_i32_0 = arith.constant 0 : i32
    return %arg0, %c0_i32 : i32, i32
  }
  func.func @transform_3(%arg0: i32) -> (i32, i32) {
    %c0_i32 = arith.constant 0 : i32
    %c0_i32_0 = arith.constant 0 : i32
    return %arg0, %c0_i32 : i32, i32
  }
  func.func @transform_4(%arg0: i32) -> (i32, i32) {
    %c0_i32 = arith.constant 0 : i32
    %c0_i32_0 = arith.constant 0 : i32
    return %arg0, %c0_i32 : i32, i32
  }
}

module attributes {stable_mosaic.version = 11 : i64} {
  func.func @_matmul_bias_relu_kernel(%arg0: i32, %arg1: memref<512x36xbf16, #tpu.memory_space<vmem>>, %arg2: memref<36x3xbf16, #tpu.memory_space<vmem>>, %arg3: memref<1x3xf32, #tpu.memory_space<vmem>>, %arg4: memref<512x3xf32, #tpu.memory_space<vmem>>) attributes {dimension_semantics = [#tpu.dimension_semantics<parallel>], iteration_bounds = array<i64: 1>, scalar_prefetch = 0 : i64, scratch_operands = 0 : i64, tpu.core_type = #tpu.core_type<tc>, window_params = [{transform_indices = @transform_0, window_bounds = array<i64: 512, 36>}, {pipeline_mode = #tpu.pipeline_mode<synchronous>, transform_indices = @transform_1, window_bounds = array<i64: 36, 3>}, {pipeline_mode = #tpu.pipeline_mode<synchronous>, transform_indices = @transform_2, window_bounds = array<i64: 1, 3>}, {transform_indices = @transform_3, window_bounds = array<i64: 512, 3>}]} {
    %c0 = arith.constant 0 : index
    %c0_0 = arith.constant 0 : index
    %0 = vector.load %arg1[%c0, %c0_0] : memref<512x36xbf16, #tpu.memory_space<vmem>>, vector<512x36xbf16>
    %c0_1 = arith.constant 0 : index
    %c0_2 = arith.constant 0 : index
    %1 = vector.load %arg2[%c0_1, %c0_2] : memref<36x3xbf16, #tpu.memory_space<vmem>>, vector<36x3xbf16>
    %cst = arith.constant dense<0.000000e+00> : vector<512x3xf32>
    %2 = tpu.matmul %0, %1, %cst {dimension_numbers = #tpu.dot_dimension_numbers<[1], [0], [0], [1], [0, 0, 1, 1], [], []>} : vector<512x36xbf16>, vector<36x3xbf16>, vector<512x3xf32> -> vector<512x3xf32>
    %c0_3 = arith.constant 0 : index
    %c0_4 = arith.constant 0 : index
    %3 = vector.load %arg3[%c0_3, %c0_4] : memref<1x3xf32, #tpu.memory_space<vmem>>, vector<1x3xf32>
    %4 = vector.broadcast %3 : vector<1x3xf32> to vector<512x3xf32>
    %5 = arith.addf %2, %4 : vector<512x3xf32>
    %cst_5 = arith.constant 0.000000e+00 : f32
    %6 = vector.broadcast %cst_5 : f32 to vector<512x3xf32>
    %7 = arith.maximumf %5, %6 : vector<512x3xf32>
    %c0_6 = arith.constant 0 : index
    %c0_7 = arith.constant 0 : index
    %8 = vector.load %arg4[%c0_6, %c0_7] : memref<512x3xf32, #tpu.memory_space<vmem>>, vector<512x3xf32>
    tpu.vector_store %arg4[%c0_6, %c0_7], %7 {strides = array<i32>} : memref<512x3xf32, #tpu.memory_space<vmem>>, vector<512x3xf32>,
    return
  }
  func.func @transform_0(%arg0: i32) -> (i32, i32) {
    %c0_i32 = arith.constant 0 : i32
    %c0_i32_0 = arith.constant 0 : i32
    return %arg0, %c0_i32 : i32, i32
  }
  func.func @transform_1(%arg0: i32) -> (i32, i32) {
    %c0_i32 = arith.constant 0 : i32
    %c0_i32_0 = arith.constant 0 : i32
    %c0_i32_1 = arith.constant 0 : i32
    return %c0_i32, %c0_i32_0 : i32, i32
  }
  func.func @transform_2(%arg0: i32) -> (i32, i32) {
    %c0_i32 = arith.constant 0 : i32
    %c0_i32_0 = arith.constant 0 : i32
    %c0_i32_1 = arith.constant 0 : i32
    return %c0_i32, %c0_i32_0 : i32, i32
  }
  func.func @transform_3(%arg0: i32) -> (i32, i32) {
    %c0_i32 = arith.constant 0 : i32
    %c0_i32_0 = arith.constant 0 : i32
    return %arg0, %c0_i32 : i32, i32
  }
}

</mosaic_0001>

<bundles_post_ra>
// kernel: vae_forward.20
= control target key start
LH: loop header
LB: loop body
LE: loop exit
PB: predicated region body
PF: predicated region fallthrough
CT: control target
= control target key end

     0   :  { %vm49_vm0 = vcmask 293888   ;;  %vm56_vm1 = vcmask 1041408   ;;  %vm109_vm2 = vcmask 64512   ;;  %vm127_vm3 = vcmask 57344   ;;  %s257_s1 = inlined_call_operand.vmem [shape: bf16[36,8], index: 1, kind: input, shape index: {}]   ;;  %s258_s0 = inlined_call_operand.vmem [shape: bf16[32,36], index: 0, kind: input, shape index: {}]   ;;  %s259_s2 = inlined_call_operand.vmem [shape: f32[32,8], index: 2, kind: output, shape index: {0}]   ;;  %s260_s3 = inlined_call_operand.vmem [shape: f32[1,8], index: 3, kind: output, shape index: {1}]   ;;  %s261_s4 = inlined_call_operand.vmem [shape: f32[1,8], index: 4, kind: output, shape index: {2}]  }
   0x1   :  { %v182_v0 = vld [vmem:[%s257_s1] sm:$0xff]   ;;  %v183_v1 = vld [vmem:[%s257_s1 + $0x8] sm:$0xff]   ;;  %v184_v3 = vld [vmem:[%s257_s1 + $0x10] ss:$0 sps:$4 sm:$0x33]  }
   0x2   :  { %171 = vmatprep.subr.bf16.mxu0 %v182_v0  ;;  %v185_v2 = vld [vmem:[%s258_s0] sm:$0xff]   ;;  %v58_v4 = vsel %vm56_vm1, %v184_v3, 0  ;;  %v186_v5 = vld [vmem:[%s258_s0 + $0x8] sm:$0xff]  }
   0x3   :  { %172 = vmatpush3.bf16.msra.mxu0 %v182_v0  ;;  %177 = vmatprep.mubr.msk.bf16.mxu0 %vm49_vm0, %v185_v2 }
   0x4   :  { %173 = vmatprep.subr.bf16.mxu0 %v183_v1 }
   0x7   :  { %174 = vmatpush3.bf16.msra.mxu0 %v183_v1 }
   0x8   :  { %181 = vmatprep.subr.msk.bf16.mxu0 %vm56_vm1, %v184_v3 }
   0xb   :  { %176 = vmatpush3.bf16.msra.mxu0 %v58_v4 }
   0xe   :  { %178 = vmatmul.mubr.msk.bf16.vlgmr.msra.gmra.mrb[0].mxu0 %vm49_vm0, %v186_v5 }
  0xe1   :  { %v179_v6 = vpop.f32.mrb[0].mxu0 }
  0xe2   :  { %112 = vst.msk [vmem:[%s259_s2 + $0x10] sm:$0xff] %vm109_vm2, %v179_v6  ;;  %v94_v7 = vpop.f32.mrb[1].mxu0  ;;  %v131_v11 = vmul.f32 %v179_v6, %v179_v6  ;;  %v117_v16 = vsel %vm109_vm2, %v179_v6, 0.0 }
  0xe3   :  { %110 = vst.msk [vmem:[%s259_s2] sm:$0xff] %vm109_vm2, %v94_v7  ;;  %v129_v8 = vmul.f32 %v94_v7, %v94_v7  ;;  %v180_v9 = vpop.f32.mrb[2].mxu0  ;;  %v114_v12 = vsel %vm109_vm2, %v94_v7, 0.0 }
  0xe4   :  { %113 = vst.msk [vmem:[%s259_s2 + $0x18] sm:$0xff] %vm109_vm2, %v180_v9  ;;  %v97_v10 = vpop.f32.mrb[3].mxu0  ;;  %v132_v18 = vmul.f32 %v180_v9, %v180_v9  ;;  %v136_v22 = vsel %vm109_vm2, %v131_v11, 0.0  ;;  %v119_v23 = vsel %vm109_vm2, %v180_v9, 0.0 }
  0xe5   :  { %111 = vst.msk [vmem:[%s259_s2 + $0x8] sm:$0xff] %vm109_vm2, %v97_v10  ;;  %v115_v13 = vsel %vm109_vm2, %v97_v10, 0.0  ;;  %v130_v14 = vmul.f32 %v97_v10, %v97_v10  ;;  %v133_v17 = vsel %vm109_vm2, %v129_v8, 0.0 }
  0xe6   :  { %v116_v15 = vadd.f32 %v115_v13, %v114_v12  ;;  %v138_v26 = vsel %vm109_vm2, %v132_v18, 0.0 }
  0xe7   :  { %v134_v19 = vsel %vm109_vm2, %v130_v14, 0.0 }
  0xe8   :  { %v118_v20 = vadd.f32 %v117_v16, %v116_v15  ;;  %v135_v21 = vadd.f32 %v134_v19, %v133_v17 }
  0xea   :  { %v120_v24 = vadd.f32 %v119_v23, %v118_v20  ;;  %v137_v25 = vadd.f32 %v136_v22, %v135_v21 }
  0xec   :  { %v121_v27 = vrot.slane %v120_v24, 4  ;;  %v139_v28 = vadd.f32 %v138_v26, %v137_v25 }
  0xee   :  { %v122_v29 = vadd.f32 %v121_v27, %v120_v24  ;;  %v140_v30 = vrot.slane %v139_v28, 4 }
  0xf0   :  { %v123_v31 = vrot.slane %v122_v29, 2  ;;  %v141_v32 = vadd.f32 %v140_v30, %v139_v28 }
  0xf2   :  { %v124_v33 = vadd.f32 %v123_v31, %v122_v29  ;;  %v142_v34 = vrot.slane %v141_v32, 2 }
  0xf4   :  { %v125_v35 = vrot.slane %v124_v33, 1  ;;  %v143_v36 = vadd.f32 %v142_v34, %v141_v32 }
  0xf6   :  { %v126_v37 = vadd.f32 %v125_v35, %v124_v33  ;;  %v144_v38 = vrot.slane %v143_v36, 1 }
  0xf8   :  { %128 = vst.msk [vmem:[%s260_s3] sm:$0x1] %vm127_vm3, %v126_v37  ;;  %v145_v39 = vadd.f32 %v144_v38, %v143_v36 }
  0xfa   :  { %146 = vst.msk [vmem:[%s261_s4] sm:$0x1] %vm127_vm3, %v145_v39 }

// kernel: vae_forward.19
= control target key start
LH: loop header
LB: loop body
LE: loop exit
PB: predicated region body
PF: predicated region fallthrough
CT: control target
= control target key end

     0   :  { %vm156_vm0 = vcmask 27648   ;;  %s385_s0 = inlined_call_operand.vmem [shape: f32[128,4], index: 0, kind: input, shape index: {}]   ;;  %s386_s1 = inlined_call_operand.vmem [shape: f32[1,4], index: 1, kind: input, shape index: {}]   ;;  %s387_s2 = inlined_call_operand.vmem [shape: f32[1,4], index: 2, kind: input, shape index: {}]   ;;  %s388_s3 = inlined_call_operand.vmem [shape: bf16[128,4], index: 3, kind: output, shape index: {}]  }
   0x1   :  { %v14_v0 = vld [vmem:[%s385_s0] sm:$0xff]  ;;  %v15_v4 = vld [vmem:[%s385_s0 + $0x8] sm:$0xff]  ;;  %v16_v5 = vld [vmem:[%s385_s0 + $0x10] sm:$0xff] }
   0x2   :  { %v237_v1 = vld [vmem:[%s386_s1] ss:$0 sm:$0xff]  ;;  %v17_v6 = vld [vmem:[%s385_s0 + $0x18] sm:$0xff]  ;;  %v19_v11 = vld [vmem:[%s385_s0 + $0x28] sm:$0xff] }
   0x3   :  { %v242_v2 = vld [vmem:[%s387_s2] ss:$0 sm:$0xff]  ;;  %v37_v3 = vmul.f32 %v237_v1, %v14_v0  ;;  %v38_v7 = vmul.f32 %v237_v1, %v15_v4  ;;  %v39_v8 = vmul.f32 %v237_v1, %v16_v5  ;;  %v40_v9 = vmul.f32 %v237_v1, %v17_v6  ;;  %v20_v12 = vld [vmem:[%s385_s0 + $0x30] sm:$0xff]  ;;  %v21_v17 = vld [vmem:[%s385_s0 + $0x38] sm:$0xff] }
   0x4   :  { %v18_v10 = vld [vmem:[%s385_s0 + $0x20] sm:$0xff]  ;;  %v42_v15 = vmul.f32 %v237_v1, %v19_v11  ;;  %v43_v16 = vmul.f32 %v237_v1, %v20_v12  ;;  %v44_v21 = vmul.f32 %v237_v1, %v21_v17  ;;  %v23_v35 = vld [vmem:[%s385_s0 + $0x48] sm:$0xff]  ;;  %v24_v36 = vld [vmem:[%s385_s0 + $0x50] sm:$0xff] }
   0x5   :  { %v60_v13 = vadd.f32 %v242_v2, %v37_v3  ;;  %v41_v14 = vmul.f32 %v237_v1, %v18_v10  ;;  %v61_v18 = vadd.f32 %v242_v2, %v38_v7  ;;  %v62_v19 = vadd.f32 %v242_v2, %v39_v8  ;;  %v22_v30 = vld [vmem:[%s385_s0 + $0x40] sm:$0xff]  ;;  %v25_v37 = vld [vmem:[%s385_s0 + $0x58] sm:$0xff]  ;;  %v27_v43 = vld [vmem:[%s385_s0 + $0x68] sm:$0xff] }
   0x6   :  { %v63_v20 = vadd.f32 %v242_v2, %v40_v9  ;;  %v65_v24 = vadd.f32 %v242_v2, %v42_v15  ;;  %v66_v25 = vadd.f32 %v242_v2, %v43_v16  ;;  %v67_v29 = vadd.f32 %v242_v2, %v44_v21  ;;  %v26_v42 = vld [vmem:[%s385_s0 + $0x60] sm:$0xff]  ;;  %v28_v44 = vld [vmem:[%s385_s0 + $0x70] sm:$0xff]  ;;  %v29_v49 = vld [vmem:[%s385_s0 + $0x78] sm:$0xff] }
   0x7   :  { %v76_v22 = vmax.f32 %v60_v13, 0.0  ;;  %v64_v23 = vadd.f32 %v242_v2, %v41_v14  ;;  %v77_v26 = vmax.f32 %v61_v18, 0.0  ;;  %v78_v27 = vmax.f32 %v62_v19, 0.0 }
   0x8   :  { %v79_v28 = vmax.f32 %v63_v20, 0.0  ;;  %v81_v33 = vmax.f32 %v65_v24, 0.0  ;;  %v82_v34 = vmax.f32 %v66_v25, 0.0  ;;  %v83_v41 = vmax.f32 %v67_v29, 0.0 }
   0x9   :  { %v195_v31 = vpack.c.bf16 %v76_v22, %v76_v22  ;;  %v80_v32 = vmax.f32 %v64_v23, 0.0  ;;  %v196_v38 = vpack.c.bf16 %v77_v26, %v77_v26  ;;  %v197_v39 = vpack.c.bf16 %v78_v27, %v78_v27 }
   0xa   :  { %v198_v40 = vpack.c.bf16 %v79_v28, %v79_v28  ;;  %v200_v46 = vpack.c.bf16 %v81_v33, %v81_v33  ;;  %v201_v47 = vpack.c.bf16 %v82_v34, %v82_v34  ;;  %v45_v48 = vmul.f32 %v237_v1, %v22_v30 }
   0xb   :  { %157 = vst.msk [vmem:[%s388_s3] sm:$0xf] %vm156_vm0, %v195_v31  ;;  %v199_v45 = vpack.c.bf16 %v80_v32, %v80_v32  ;;  %158 = vst.msk [vmem:[%s388_s3 + $0x4] sm:$0xf] %vm156_vm0, %v196_v38  ;;  %v202_v50 = vpack.c.bf16 %v83_v41, %v83_v41  ;;  %v46_v51 = vmul.f32 %v237_v1, %v23_v35 }
   0xc   :  { %159 = vst.msk [vmem:[%s388_s3 + $0x8] sm:$0xf] %vm156_vm0, %v197_v39  ;;  %160 = vst.msk [vmem:[%s388_s3 + $0xc] sm:$0xf] %vm156_vm0, %v198_v40  ;;  %v47_v52 = vmul.f32 %v237_v1, %v24_v36  ;;  %v48_v53 = vmul.f32 %v237_v1, %v25_v37  ;;  %v68_v54 = vadd.f32 %v242_v2, %v45_v48 }
   0xd   :  { %161 = vst.msk [vmem:[%s388_s3 + $0x10] sm:$0xf] %vm156_vm0, %v199_v45  ;;  %162 = vst.msk [vmem:[%s388_s3 + $0x14] sm:$0xf] %vm156_vm0, %v200_v46  ;;  %v49_v55 = vmul.f32 %v237_v1, %v26_v42  ;;  %v50_v56 = vmul.f32 %v237_v1, %v27_v43  ;;  %v51_v57 = vmul.f32 %v237_v1, %v28_v44 }
   0xe   :  { %163 = vst.msk [vmem:[%s388_s3 + $0x18] sm:$0xf] %vm156_vm0, %v201_v47  ;;  %164 = vst.msk [vmem:[%s388_s3 + $0x1c] sm:$0xf] %vm156_vm0, %v202_v50  ;;  %v69_v58 = vadd.f32 %v242_v2, %v46_v51  ;;  %v70_v59 = vadd.f32 %v242_v2, %v47_v52  ;;  %v71_v60 = vadd.f32 %v242_v2, %v48_v53  ;;  %v84_v62 = vmax.f32 %v68_v54, 0.0 }
   0xf   :  { %v52_v61 = vmul.f32 %v237_v1, %v29_v49  ;;  %v72_v63 = vadd.f32 %v242_v2, %v49_v55  ;;  %v73_v0 = vadd.f32 %v242_v2, %v50_v56  ;;  %v74_v3 = vadd.f32 %v242_v2, %v51_v57 }
  0x10   :  { %v85_v4 = vmax.f32 %v69_v58, 0.0  ;;  %v86_v5 = vmax.f32 %v70_v59, 0.0  ;;  %v87_v6 = vmax.f32 %v71_v60, 0.0  ;;  %v203_v8 = vpack.c.bf16 %v84_v62, %v84_v62 }
  0x11   :  { %v75_v7 = vadd.f32 %v242_v2, %v52_v61  ;;  %v88_v9 = vmax.f32 %v72_v63, 0.0  ;;  %v89_v10 = vmax.f32 %v73_v0, 0.0  ;;  %v90_v11 = vmax.f32 %v74_v3, 0.0 }
  0x12   :  { %v204_v12 = vpack.c.bf16 %v85_v4, %v85_v4  ;;  %v205_v13 = vpack.c.bf16 %v86_v5, %v86_v5  ;;  %v206_v14 = vpack.c.bf16 %v87_v6, %v87_v6  ;;  %165 = vst.msk [vmem:[%s388_s3 + $0x20] sm:$0xf] %vm156_vm0, %v203_v8 }
  0x13   :  { %v91_v1 = vmax.f32 %v75_v7, 0.0  ;;  %v207_v15 = vpack.c.bf16 %v88_v9, %v88_v9  ;;  %v208_v16 = vpack.c.bf16 %v89_v10, %v89_v10  ;;  %v209_v17 = vpack.c.bf16 %v90_v11, %v90_v11 }
  0x14   :  { %166 = vst.msk [vmem:[%s388_s3 + $0x24] sm:$0xf] %vm156_vm0, %v204_v12  ;;  %167 = vst.msk [vmem:[%s388_s3 + $0x28] sm:$0xf] %vm156_vm0, %v205_v13 }
  0x15   :  { %168 = vst.msk [vmem:[%s388_s3 + $0x2c] sm:$0xf] %vm156_vm0, %v206_v14  ;;  %v210_v2 = vpack.c.bf16 %v91_v1, %v91_v1  ;;  %169 = vst.msk [vmem:[%s388_s3 + $0x30] sm:$0xf] %vm156_vm0, %v207_v15 }
  0x16   :  { %170 = vst.msk [vmem:[%s388_s3 + $0x34] sm:$0xf] %vm156_vm0, %v208_v16  ;;  %171 = vst.msk [vmem:[%s388_s3 + $0x38] sm:$0xf] %vm156_vm0, %v209_v17 }
  0x17   :  { %172 = vst.msk [vmem:[%s388_s3 + $0x3c] sm:$0xf] %vm156_vm0, %v210_v2 }

// kernel: vae_forward.18
= control target key start
LH: loop header
LB: loop body
LE: loop exit
PB: predicated region body
PF: predicated region fallthrough
CT: control target
= control target key end

     0   :  { %vm111_vm0 = vcmask 1044480   ;;  %vm112_vm1 = vcmask 1045504   ;;  %vm86_vm2 = vcmask 220160   ;;  %v400_v1 = vmov 65535   ;;  %s584_s1 = inlined_call_operand.vmem [shape: bf16[27,4], index: 1, kind: input, shape index: {}]   ;;  %s585_s0 = inlined_call_operand.vmem [shape: bf16[128,27], index: 0, kind: input, shape index: {}]   ;;  %s586_s2 = inlined_call_operand.vmem [shape: f32[128,4], index: 2, kind: output, shape index: {0}]   ;;  %s587_s3 = inlined_call_operand.vmem [shape: f32[1,4], index: 3, kind: output, shape index: {1}]   ;;  %s588_s4 = inlined_call_operand.vmem [shape: f32[1,4], index: 4, kind: output, shape index: {2}]  }
   0x1   :  { %v390_v0 = vld [vmem:[%s584_s1] sm:$0xff]   ;;  %v113_v2 = vsel %vm111_vm0, 4294967295, %v400_v1  ;;  %v391_v3 = vld [vmem:[%s584_s1 + $0x8] sm:$0x3f]   ;;  %v394_v8 = vld [vmem:[%s585_s0 + $0x10] sm:$0xff]   ;;  %vm215_vm3 = vcmask 31744  }
   0x2   :  { %365 = vmatprep.subr.bf16.mxu0 %v390_v0  ;;  %v114_v4 = vsel %vm112_vm1, %v113_v2, 0  ;;  %v392_v5 = vld [vmem:[%s585_s0] sm:$0xff]   ;;  %385 = vmatprep.subr.bf16.mxu1 %v390_v0  ;;  %v393_v7 = vld [vmem:[%s585_s0 + $0x8] sm:$0xff]   ;;  %v398_v11 = vld [vmem:[%s585_s0 + $0x30] sm:$0xff]   ;;  %vm269_vm4 = vcmask 24576  }
   0x3   :  { %366 = vmatpush3.bf16.msra.mxu0 %v390_v0  ;;  %v116_v6 = vand.u32 %v391_v3, %v114_v4  ;;  %387 = vmatpush3.bf16.msra.mxu1 %v390_v0  ;;  %v396_v9 = vld [vmem:[%s585_s0 + $0x20] sm:$0xff]   ;;  %v397_v10 = vld [vmem:[%s585_s0 + $0x28] sm:$0xff]   ;;  %v395_v12 = vld [vmem:[%s585_s0 + $0x18] sm:$0xff]  }
   0x4   :  { %369 = vmatprep.mubr.msk.bf16.mxu0 %vm86_vm2, %v392_v5  ;;  %377 = vmatprep.mubr.msk.bf16.mxu1 %vm86_vm2, %v396_v9  ;;  %v399_v13 = vld [vmem:[%s585_s0 + $0x38] sm:$0xff]  }
   0x5   :  { %367 = vmatprep.subr.bf16.mxu0 %v116_v6  ;;  %386 = vmatprep.subr.bf16.mxu1 %v116_v6 }
   0x7   :  { %368 = vmatpush3.bf16.msra.mxu0 %v116_v6  ;;  %388 = vmatpush3.bf16.msra.mxu1 %v116_v6 }
   0xa   :  { %370 = vmatmul.mubr.msk.bf16.vlgmr.msra.gmra.mrb[0].mxu0 %vm86_vm2, %v393_v7  ;;  %378 = vmatmul.mubr.msk.bf16.vlgmr.msra.gmra.mrb[0].mxu1 %vm86_vm2, %v397_v10 }
   0xb   :  { %373 = vmatprep.mubr.msk.bf16.mxu0 %vm86_vm2, %v394_v8  ;;  %381 = vmatprep.mubr.msk.bf16.mxu1 %vm86_vm2, %v398_v11 }
  0x12   :  { %374 = vmatmul.mubr.msk.bf16.gmra.mrb[4].mxu0 %vm86_vm2, %v395_v12  ;;  %382 = vmatmul.mubr.msk.bf16.gmra.mrb[4].mxu1 %vm86_vm2, %v399_v13 }
  0xdd   :  { %v371_v14 = vpop.f32.mrb[0].mxu0  ;;  %v464_v15 = vpop.f32.mrb[0].mxu1 }
  0xde   :  { %218 = vst.msk [vmem:[%s586_s2 + $0x10] sm:$0xff] %vm215_vm3, %v371_v14  ;;  %v152_v16 = vpop.f32.mrb[1].mxu0  ;;  %226 = vst.msk [vmem:[%s586_s2 + $0x50] sm:$0xff] %vm215_vm3, %v464_v15  ;;  %v184_v17 = vpop.f32.mrb[1].mxu1  ;;  %v273_v23 = vmul.f32 %v371_v14, %v371_v14  ;;  %v235_v28 = vsel %vm215_vm3, %v371_v14, 0.0  ;;  %v281_v9 = vmul.f32 %v464_v15, %v464_v15  ;;  %v251_v13 = vsel %vm215_vm3, %v464_v15, 0.0 }
  0xdf   :  { %216 = vst.msk [vmem:[%s586_s2] sm:$0xff] %vm215_vm3, %v152_v16  ;;  %v271_v18 = vmul.f32 %v152_v16, %v152_v16  ;;  %v372_v19 = vpop.f32.mrb[2].mxu0  ;;  %224 = vst.msk [vmem:[%s586_s2 + $0x40] sm:$0xff] %vm215_vm3, %v184_v17  ;;  %v483_v20 = vpop.f32.mrb[2].mxu1  ;;  %v232_v24 = vsel %vm215_vm3, %v152_v16, 0.0  ;;  %v279_v60 = vmul.f32 %v184_v17, %v184_v17  ;;  %v247_v1 = vsel %vm215_vm3, %v184_v17, 0.0 }
  0xe0   :  { %219 = vst.msk [vmem:[%s586_s2 + $0x18] sm:$0xff] %vm215_vm3, %v372_v19  ;;  %v155_v21 = vpop.f32.mrb[3].mxu0  ;;  %227 = vst.msk [vmem:[%s586_s2 + $0x58] sm:$0xff] %vm215_vm3, %v483_v20  ;;  %v187_v22 = vpop.f32.mrb[3].mxu1  ;;  %v274_v30 = vmul.f32 %v372_v19, %v372_v19  ;;  %v290_v34 = vsel %vm215_vm3, %v273_v23, 0.0  ;;  %v237_v35 = vsel %vm215_vm3, %v372_v19, 0.0  ;;  %v282_v14 = vmul.f32 %v483_v20, %v483_v20 }
  0xe1   :  { %217 = vst.msk [vmem:[%s586_s2 + $0x8] sm:$0xff] %vm215_vm3, %v155_v21  ;;  %v233_v25 = vsel %vm215_vm3, %v155_v21, 0.0  ;;  %v272_v26 = vmul.f32 %v155_v21, %v155_v21  ;;  %225 = vst.msk [vmem:[%s586_s2 + $0x48] sm:$0xff] %vm215_vm3, %v187_v22  ;;  %v287_v29 = vsel %vm215_vm3, %v271_v18, 0.0  ;;  %v302_v5 = vsel %vm215_vm3, %v279_v60, 0.0 }
  0xe2   :  { %v234_v27 = vadd.f32 %v233_v25, %v232_v24  ;;  %v292_v42 = vsel %vm215_vm3, %v274_v30, 0.0  ;;  %v280_v6 = vmul.f32 %v187_v22, %v187_v22  ;;  %v249_v10 = vsel %vm215_vm3, %v187_v22, 0.0 }
  0xe3   :  { %v288_v31 = vsel %vm215_vm3, %v272_v26, 0.0  ;;  %v306_v21 = vsel %vm215_vm3, %v281_v9, 0.0  ;;  %v253_v23 = vsel %vm215_vm3, %v483_v20, 0.0  ;;  %v308_v26 = vsel %vm215_vm3, %v282_v14, 0.0 }
  0xe4   :  { %v236_v32 = vadd.f32 %v235_v28, %v234_v27  ;;  %v289_v33 = vadd.f32 %v288_v31, %v287_v29  ;;  %v304_v16 = vsel %vm215_vm3, %v280_v6, 0.0 }
  0xe5   :  { %v375_v36 = vpop.f32.mrb[4].mxu0  ;;  %v509_v37 = vpop.f32.mrb[4].mxu1 }
  0xe6   :  { %v291_v38 = vadd.f32 %v290_v34, %v289_v33  ;;  %222 = vst.msk [vmem:[%s586_s2 + $0x30] sm:$0xff] %vm215_vm3, %v375_v36  ;;  %v168_v39 = vpop.f32.mrb[5].mxu0  ;;  %v238_v40 = vadd.f32 %v237_v35, %v236_v32  ;;  %230 = vst.msk [vmem:[%s586_s2 + $0x70] sm:$0xff] %vm215_vm3, %v509_v37  ;;  %v200_v41 = vpop.f32.mrb[5].mxu1  ;;  %v277_v51 = vmul.f32 %v375_v36, %v375_v36  ;;  %v243_v57 = vsel %vm215_vm3, %v375_v36, 0.0 }
  0xe7   :  { %220 = vst.msk [vmem:[%s586_s2 + $0x20] sm:$0xff] %vm215_vm3, %v168_v39  ;;  %v239_v43 = vsel %vm215_vm3, %v168_v39, 0.0  ;;  %v275_v44 = vmul.f32 %v168_v39, %v168_v39  ;;  %v376_v45 = vpop.f32.mrb[6].mxu0  ;;  %228 = vst.msk [vmem:[%s586_s2 + $0x60] sm:$0xff] %vm215_vm3, %v200_v41  ;;  %v384_v46 = vpop.f32.mrb[6].mxu1  ;;  %v283_v17 = vmul.f32 %v200_v41, %v200_v41  ;;  %v255_v22 = vsel %vm215_vm3, %v200_v41, 0.0 }
  0xe8   :  { %v240_v47 = vadd.f32 %v239_v43, %v238_v40  ;;  %v293_v48 = vadd.f32 %v292_v42, %v291_v38  ;;  %223 = vst.msk [vmem:[%s586_s2 + $0x38] sm:$0xff] %vm215_vm3, %v376_v45  ;;  %v171_v49 = vpop.f32.mrb[7].mxu0  ;;  %231 = vst.msk [vmem:[%s586_s2 + $0x78] sm:$0xff] %vm215_vm3, %v384_v46  ;;  %v203_v50 = vpop.f32.mrb[7].mxu1  ;;  %v278_v58 = vmul.f32 %v376_v45, %v376_v45  ;;  %v298_v63 = vsel %vm215_vm3, %v277_v51, 0.0 }
  0xe9   :  { %v294_v52 = vsel %vm215_vm3, %v275_v44, 0.0  ;;  %221 = vst.msk [vmem:[%s586_s2 + $0x28] sm:$0xff] %vm215_vm3, %v171_v49  ;;  %v241_v53 = vsel %vm215_vm3, %v171_v49, 0.0  ;;  %v276_v54 = vmul.f32 %v171_v49, %v171_v49  ;;  %229 = vst.msk [vmem:[%s586_s2 + $0x68] sm:$0xff] %vm215_vm3, %v203_v50  ;;  %v245_v0 = vsel %vm215_vm3, %v376_v45, 0.0 }
  0xea   :  { %v295_v55 = vadd.f32 %v294_v52, %v293_v48  ;;  %v242_v56 = vadd.f32 %v241_v53, %v240_v47  ;;  %v300_v4 = vsel %vm215_vm3, %v278_v58, 0.0  ;;  %v310_v15 = vsel %vm215_vm3, %v283_v17, 0.0 }
  0xeb   :  { %v296_v59 = vsel %vm215_vm3, %v276_v54, 0.0  ;;  %v284_v27 = vmul.f32 %v203_v50, %v203_v50  ;;  %v285_v30 = vmul.f32 %v509_v37, %v509_v37  ;;  %v257_v31 = vsel %vm215_vm3, %v203_v50, 0.0 }
  0xec   :  { %v244_v61 = vadd.f32 %v243_v57, %v242_v56  ;;  %v297_v62 = vadd.f32 %v296_v59, %v295_v55  ;;  %v259_v20 = vsel %vm215_vm3, %v509_v37, 0.0  ;;  %v286_v34 = vmul.f32 %v384_v46, %v384_v46 }
  0xed   :  { %v312_v35 = vsel %vm215_vm3, %v284_v27, 0.0  ;;  %v314_v39 = vsel %vm215_vm3, %v285_v30, 0.0  ;;  %v261_v40 = vsel %vm215_vm3, %v384_v46, 0.0 }
  0xee   :  { %v299_v2 = vadd.f32 %v298_v63, %v297_v62  ;;  %v246_v3 = vadd.f32 %v245_v0, %v244_v61  ;;  %v316_v43 = vsel %vm215_vm3, %v286_v34, 0.0 }
  0xf0   :  { %v248_v7 = vadd.f32 %v247_v1, %v246_v3  ;;  %v301_v8 = vadd.f32 %v300_v4, %v299_v2 }
  0xf2   :  { %v303_v11 = vadd.f32 %v302_v5, %v301_v8  ;;  %v250_v12 = vadd.f32 %v249_v10, %v248_v7 }
  0xf4   :  { %v252_v18 = vadd.f32 %v251_v13, %v250_v12  ;;  %v305_v19 = vadd.f32 %v304_v16, %v303_v11 }
  0xf6   :  { %v307_v24 = vadd.f32 %v306_v21, %v305_v19  ;;  %v254_v25 = vadd.f32 %v253_v23, %v252_v18 }
  0xf8   :  { %v256_v28 = vadd.f32 %v255_v22, %v254_v25  ;;  %v309_v29 = vadd.f32 %v308_v26, %v307_v24 }
  0xfa   :  { %v311_v32 = vadd.f32 %v310_v15, %v309_v29  ;;  %v258_v33 = vadd.f32 %v257_v31, %v256_v28 }
  0xfc   :  { %v260_v36 = vadd.f32 %v259_v20, %v258_v33  ;;  %v313_v38 = vadd.f32 %v312_v35, %v311_v32 }
  0xfe   :  { %v262_v41 = vadd.f32 %v261_v40, %v260_v36  ;;  %v315_v42 = vadd.f32 %v314_v39, %v313_v38 }
 0x100   :  { %v263_v44 = vrot.slane %v262_v41, 4  ;;  %v317_v45 = vadd.f32 %v316_v43, %v315_v42 }
 0x102   :  { %v264_v47 = vadd.f32 %v263_v44, %v262_v41  ;;  %v318_v48 = vrot.slane %v317_v45, 4 }
 0x104   :  { %v265_v49 = vrot.slane %v264_v47, 2  ;;  %v319_v50 = vadd.f32 %v318_v48, %v317_v45 }
 0x106   :  { %v266_v37 = vadd.f32 %v265_v49, %v264_v47  ;;  %v320_v51 = vrot.slane %v319_v50, 2 }
 0x108   :  { %v267_v52 = vrot.slane %v266_v37, 1  ;;  %v321_v53 = vadd.f32 %v320_v51, %v319_v50 }
 0x10a   :  { %v268_v54 = vadd.f32 %v267_v52, %v266_v37  ;;  %v322_v55 = vrot.slane %v321_v53, 1 }
 0x10c   :  { %270 = vst.msk [vmem:[%s587_s3] sm:$0x1] %vm269_vm4, %v268_v54  ;;  %v323_v46 = vadd.f32 %v322_v55, %v321_v53 }
 0x10e   :  { %324 = vst.msk [vmem:[%s588_s4] sm:$0x1] %vm269_vm4, %v323_v46 }

// kernel: vae_forward.21
= control target key start
LH: loop header
LB: loop body
LE: loop exit
PB: predicated region body
PF: predicated region fallthrough
CT: control target
= control target key end

     0   :  { %vm60_vm0 = vcmask 60416   ;;  %s129_s0 = inlined_call_operand.vmem [shape: f32[32,8], index: 0, kind: input, shape index: {}]   ;;  %s130_s1 = inlined_call_operand.vmem [shape: f32[1,8], index: 1, kind: input, shape index: {}]   ;;  %s131_s2 = inlined_call_operand.vmem [shape: f32[1,8], index: 2, kind: input, shape index: {}]   ;;  %s132_s3 = inlined_call_operand.vmem [shape: bf16[32,8], index: 3, kind: output, shape index: {}]  }
   0x1   :  { %v14_v0 = vld [vmem:[%s129_s0] sm:$0xff]  ;;  %v15_v4 = vld [vmem:[%s129_s0 + $0x8] sm:$0xff]  ;;  %v16_v5 = vld [vmem:[%s129_s0 + $0x10] sm:$0xff] }
   0x2   :  { %v69_v1 = vld [vmem:[%s130_s1] ss:$0 sm:$0xff]  ;;  %v17_v6 = vld [vmem:[%s129_s0 + $0x18] sm:$0xff] }
   0x3   :  { %v70_v2 = vld [vmem:[%s131_s2] ss:$0 sm:$0xff]  ;;  %v25_v3 = vmul.f32 %v69_v1, %v14_v0  ;;  %v26_v7 = vmul.f32 %v69_v1, %v15_v4  ;;  %v27_v8 = vmul.f32 %v69_v1, %v16_v5  ;;  %v28_v9 = vmul.f32 %v69_v1, %v17_v6 }
   0x5   :  { %v36_v10 = vadd.f32 %v70_v2, %v25_v3  ;;  %v37_v11 = vadd.f32 %v70_v2, %v26_v7  ;;  %v38_v12 = vadd.f32 %v70_v2, %v27_v8  ;;  %v39_v13 = vadd.f32 %v70_v2, %v28_v9 }
   0x7   :  { %v40_v14 = vmax.f32 %v36_v10, 0.0  ;;  %v41_v15 = vmax.f32 %v37_v11, 0.0  ;;  %v42_v16 = vmax.f32 %v38_v12, 0.0  ;;  %v43_v17 = vmax.f32 %v39_v13, 0.0 }
   0x9   :  { %v75_v18 = vpack.c.bf16 %v40_v14, %v40_v14  ;;  %v76_v19 = vpack.c.bf16 %v41_v15, %v41_v15  ;;  %v77_v20 = vpack.c.bf16 %v42_v16, %v42_v16  ;;  %v78_v21 = vpack.c.bf16 %v43_v17, %v43_v17 }
   0xb   :  { %61 = vst.msk [vmem:[%s132_s3] sm:$0xf] %vm60_vm0, %v75_v18  ;;  %62 = vst.msk [vmem:[%s132_s3 + $0x4] sm:$0xf] %vm60_vm0, %v76_v19 }
   0xc   :  { %63 = vst.msk [vmem:[%s132_s3 + $0x8] sm:$0xf] %vm60_vm0, %v77_v20  ;;  %64 = vst.msk [vmem:[%s132_s3 + $0xc] sm:$0xf] %vm60_vm0, %v78_v21 }

// kernel: vae_forward.22
= control target key start
LH: loop header
LB: loop body
LE: loop exit
PB: predicated region body
PF: predicated region fallthrough
CT: control target
= control target key end

     0   :  { %v165_v0 = vmov 0.0   ;;  %vm166_vm0 = vmmov 0   ;;  %vm56_vm1 = vcmask 1043456   ;;  %vm52_vm2 = vcmask 588800   ;;  %s219_s1 = inlined_call_operand.vmem [shape: bf16[72,16], index: 1, kind: input, shape index: {}]   ;;  %s220_s0 = inlined_call_operand.vmem [shape: bf16[8,72], index: 0, kind: input, shape index: {}]   ;;  %s221_s2 = inlined_call_operand.vmem [shape: f32[8,16], index: 2, kind: output, shape index: {0}]   ;;  %s222_s3 = inlined_call_operand.vmem [shape: f32[1,16], index: 3, kind: output, shape index: {1}]   ;;  %s223_s4 = inlined_call_operand.vmem [shape: f32[1,16], index: 4, kind: output, shape index: {2}]  }
   0x1   :  { %144 = vmatprep.subr.bf16.mxu0 %v165_v0  ;;  %v160_v1 = vld [vmem:[%s219_s1] sm:$0xff]   ;;  %154 = vmatprep.mubr.msk.bf16.mxu0 %vm166_vm0, %v165_v0  ;;  %v161_v2 = vld [vmem:[%s219_s1 + $0x8] sm:$0xff]   ;;  %v162_v3 = vld [vmem:[%s219_s1 + $0x10] sm:$0xff]   ;;  %vm100_vm3 = vcmask 130048   ;;  %vm109_vm4 = vcmask 122880  }
   0x2   :  { %145 = vmatpush3.bf16.msra.mxu0 %v160_v1  ;;  %v163_v4 = vld [vmem:[%s219_s1 + $0x18] sm:$0xff]   ;;  %v164_v5 = vld [vmem:[%s219_s1 + $0x20] ss:$0 sps:$4 sm:$0xff]  }
   0x3   :  { %146 = vmatprep.subr.bf16.mxu0 %v165_v0  ;;  %v58_v6 = vsel %vm56_vm1, %v164_v5, 0  ;;  %v15_v7 = vld [vmem:[%s220_s0] sm:$0xf] }
   0x6   :  { %147 = vmatpush3.bf16.msra.mxu0 %v161_v2 }
   0x7   :  { %148 = vmatprep.subr.bf16.mxu0 %v165_v0 }
   0xa   :  { %149 = vmatpush3.bf16.msra.mxu0 %v162_v3 }
   0xb   :  { %150 = vmatprep.subr.bf16.mxu0 %v165_v0 }
   0xe   :  { %151 = vmatpush3.bf16.msra.mxu0 %v163_v4 }
   0xf   :  { %152 = vmatprep.subr.bf16.mxu0 %v165_v0 }
  0x12   :  { %153 = vmatpush3.bf16.msra.mxu0 %v58_v6 }
  0x15   :  { %155 = vmatmul.mubr.msk.bf16.vlgmr.msra.gmra.mrb[0].mxu0 %vm52_vm2, %v15_v7 }
  0xe8   :  { %v94_v8 = vpop.f32.mrb[0].mxu0 }
  0xe9   :  { %101 = vst.msk [vmem:[%s221_s2] sm:$0xff] %vm100_vm3, %v94_v8  ;;  %v102_v9 = vsel %vm100_vm3, %v94_v8, 0.0  ;;  %v111_v10 = vmul.f32 %v94_v8, %v94_v8  ;;  %v156_v11 = vpop.f32.mrb[1].mxu0 }
  0xea   :  { %v103_v12 = vrot.slane %v102_v9, 4  ;;  %v97_v13 = vpop.f32.mrb[2].mxu0 }
  0xeb   :  { %v112_v14 = vsel %vm100_vm3, %v111_v10, 0.0  ;;  %v157_v15 = vpop.f32.mrb[3].mxu0 }
  0xec   :  { %v104_v16 = vadd.f32 %v103_v12, %v102_v9  ;;  %v113_v17 = vrot.slane %v112_v14, 4 }
  0xee   :  { %v105_v18 = vrot.slane %v104_v16, 2  ;;  %v114_v19 = vadd.f32 %v113_v17, %v112_v14 }
  0xf0   :  { %v106_v20 = vadd.f32 %v105_v18, %v104_v16  ;;  %v115_v21 = vrot.slane %v114_v19, 2 }
  0xf2   :  { %v107_v22 = vrot.slane %v106_v20, 1  ;;  %v116_v23 = vadd.f32 %v115_v21, %v114_v19 }
  0xf4   :  { %v108_v24 = vadd.f32 %v107_v22, %v106_v20  ;;  %v117_v25 = vrot.slane %v116_v23, 1 }
  0xf6   :  { %110 = vst.msk [vmem:[%s222_s3] sm:$0x1] %vm109_vm4, %v108_v24  ;;  %v118_v26 = vadd.f32 %v117_v25, %v116_v23 }
  0xf8   :  { %119 = vst.msk [vmem:[%s223_s4] sm:$0x1] %vm109_vm4, %v118_v26 }

// kernel: vae_forward.23
= control target key start
LH: loop header
LB: loop body
LE: loop exit
PB: predicated region body
PF: predicated region fallthrough
CT: control target
= control target key end

     0   :  { %vm33_vm0 = vcmask 125952   ;;  %s73_s0 = inlined_call_operand.vmem [shape: f32[8,16], index: 0, kind: input, shape index: {}]   ;;  %s74_s1 = inlined_call_operand.vmem [shape: f32[1,16], index: 1, kind: input, shape index: {}]   ;;  %s75_s2 = inlined_call_operand.vmem [shape: f32[1,16], index: 2, kind: input, shape index: {}]   ;;  %s76_s3 = inlined_call_operand.vmem [shape: bf16[8,16], index: 3, kind: output, shape index: {}]  }
   0x1   :  { %v14_v0 = vld [vmem:[%s73_s0] sm:$0xff] }
   0x2   :  { %v39_v1 = vld [vmem:[%s74_s1] ss:$0 sm:$0xff] }
   0x3   :  { %v40_v2 = vld [vmem:[%s75_s2] ss:$0 sm:$0xff]  ;;  %v22_v3 = vmul.f32 %v39_v1, %v14_v0 }
   0x5   :  { %v30_v4 = vadd.f32 %v40_v2, %v22_v3 }
   0x7   :  { %v31_v5 = vmax.f32 %v30_v4, 0.0 }
   0x9   :  { %v32_v6 = vpack.c.bf16 %v31_v5, %v31_v5 }
   0xb   :  { %34 = vst.msk [vmem:[%s76_s3] sm:$0xf] %vm33_vm0, %v32_v6 }

// kernel: vae_forward.24
= control target key start
LH: loop header
LB: loop body
LE: loop exit
PB: predicated region body
PF: predicated region fallthrough
CT: control target
= control target key end

     0   :  { %v194_v0 = vmov 0   ;;  %vm94_vm0 = vcmask 130048   ;;  %vm138_vm1 = vcmask 261120   ;;  %vm147_vm2 = vcmask 253952   ;;  %s259_s1 = inlined_call_operand.vmem [shape: bf16[144,32], index: 1, kind: input, shape index: {}]   ;;  %s260_s0 = inlined_call_operand.vmem [shape: bf16[8,144], index: 0, kind: input, shape index: {}]   ;;  %s261_s2 = inlined_call_operand.vmem [shape: f32[8,32], index: 2, kind: output, shape index: {0}]   ;;  %s262_s3 = inlined_call_operand.vmem [shape: f32[1,32], index: 3, kind: output, shape index: {1}]   ;;  %s263_s4 = inlined_call_operand.vmem [shape: f32[1,32], index: 4, kind: output, shape index: {2}]  }
   0x1   :  { %98 = vmatprep.subr.bf16.mxu0 %v194_v0  ;;  %v183_v1 = vld [vmem:[%s259_s1] sm:$0xff]   ;;  %v184_v2 = vld [vmem:[%s259_s1 + $0x8] sm:$0xff]   ;;  %v185_v3 = vld [vmem:[%s259_s1 + $0x10] sm:$0xff]  }
   0x2   :  { %99 = vmatpush1.bf16.msra.mxu0 %v183_v1  ;;  %v15_v4 = vld [vmem:[%s260_s0] sm:$0xff]  ;;  %v186_v5 = vld [vmem:[%s259_s1 + $0x18] sm:$0xff]   ;;  %v188_v8 = vld [vmem:[%s259_s1 + $0x28] sm:$0xff]  }
   0x3   :  { %100 = vmatprep.subr.bf16.mxu0 %v194_v0  ;;  %v171_v6 = vcombine.high %v15_v4, %v15_v4  ;;  %v187_v7 = vld [vmem:[%s259_s1 + $0x20] sm:$0xff]   ;;  %v189_v9 = vld [vmem:[%s259_s1 + $0x30] sm:$0xff]   ;;  %v190_v10 = vld [vmem:[%s259_s1 + $0x38] sm:$0xff]   ;;  %v170_v12 = vcombine.low %v15_v4, %v15_v4 }
   0x4   :  { %v191_v11 = vld [vmem:[%s259_s1 + $0x40] sm:$0xff]  }
   0x5   :  { %181 = vmatprep.mubr.msk.bf16.mxu0 %vm94_vm0, %v171_v6 }
   0x6   :  { %101 = vmatpush1.bf16.msra.mxu0 %v184_v2 }
   0x7   :  { %102 = vmatprep.subr.bf16.mxu0 %v194_v0 }
   0xa   :  { %103 = vmatpush1.bf16.msra.mxu0 %v185_v3 }
   0xb   :  { %104 = vmatprep.subr.bf16.mxu0 %v194_v0 }
   0xe   :  { %105 = vmatpush1.bf16.msra.mxu0 %v186_v5 }
   0xf   :  { %106 = vmatprep.subr.bf16.mxu0 %v194_v0 }
  0x12   :  { %107 = vmatpush1.bf16.msra.mxu0 %v187_v7 }
  0x13   :  { %108 = vmatprep.subr.bf16.mxu0 %v194_v0 }
  0x16   :  { %109 = vmatpush1.bf16.msra.mxu0 %v188_v8 }
  0x17   :  { %110 = vmatprep.subr.bf16.mxu0 %v194_v0 }
  0x1a   :  { %111 = vmatpush1.bf16.msra.mxu0 %v189_v9 }
  0x1b   :  { %112 = vmatprep.subr.bf16.mxu0 %v194_v0 }
  0x1e   :  { %113 = vmatpush1.bf16.msra.mxu0 %v190_v10 }
  0x1f   :  { %114 = vmatprep.subr.bf16.mxu0 %v194_v0 }
  0x22   :  { %115 = vmatpush1.bf16.msra.mxu0 %v191_v11 }
  0x25   :  { %131 = vmatmul.mubr.bf16.vlgmr.msra.gmra.mrb[0].mxu0 %v170_v12 }
  0xf8   :  { %v132_v13 = vpop.f32.mrb[0].mxu0 }
  0xf9   :  { %139 = vst.msk [vmem:[%s261_s2] sm:$0xff] %vm138_vm1, %v132_v13  ;;  %v140_v14 = vsel %vm138_vm1, %v132_v13, 0.0  ;;  %v149_v15 = vmul.f32 %v132_v13, %v132_v13  ;;  %v134_v16 = vpop.f32.mrb[1].mxu0 }
  0xfa   :  { %v141_v17 = vrot.slane %v140_v14, 4  ;;  %v135_v18 = vpop.f32.mrb[2].mxu0 }
  0xfb   :  { %v150_v19 = vsel %vm138_vm1, %v149_v15, 0.0  ;;  %v136_v20 = vpop.f32.mrb[3].mxu0 }
  0xfc   :  { %v142_v21 = vadd.f32 %v141_v17, %v140_v14  ;;  %v151_v22 = vrot.slane %v150_v19, 4 }
  0xfe   :  { %v143_v23 = vrot.slane %v142_v21, 2  ;;  %v152_v24 = vadd.f32 %v151_v22, %v150_v19 }
 0x100   :  { %v144_v25 = vadd.f32 %v143_v23, %v142_v21  ;;  %v153_v26 = vrot.slane %v152_v24, 2 }
 0x102   :  { %v145_v27 = vrot.slane %v144_v25, 1  ;;  %v154_v28 = vadd.f32 %v153_v26, %v152_v24 }
 0x104   :  { %v146_v29 = vadd.f32 %v145_v27, %v144_v25  ;;  %v155_v30 = vrot.slane %v154_v28, 1 }
 0x106   :  { %148 = vst.msk [vmem:[%s262_s3] sm:$0x1] %vm147_vm2, %v146_v29  ;;  %v156_v31 = vadd.f32 %v155_v30, %v154_v28 }
 0x108   :  { %157 = vst.msk [vmem:[%s263_s4] sm:$0x1] %vm147_vm2, %v156_v31 }

// kernel: vae_forward.25
= control target key start
LH: loop header
LB: loop body
LE: loop exit
PB: predicated region body
PF: predicated region fallthrough
CT: control target
= control target key end

     0   :  { %vm33_vm0 = vcmask 257024   ;;  %s73_s0 = inlined_call_operand.vmem [shape: f32[8,32], index: 0, kind: input, shape index: {}]   ;;  %s74_s1 = inlined_call_operand.vmem [shape: f32[1,32], index: 1, kind: input, shape index: {}]   ;;  %s75_s2 = inlined_call_operand.vmem [shape: f32[1,32], index: 2, kind: input, shape index: {}]   ;;  %s76_s3 = inlined_call_operand.vmem [shape: bf16[8,32], index: 3, kind: output, shape index: {}]  }
   0x1   :  { %v14_v0 = vld [vmem:[%s73_s0] sm:$0xff] }
   0x2   :  { %v39_v1 = vld [vmem:[%s74_s1] ss:$0 sm:$0xff] }
   0x3   :  { %v40_v2 = vld [vmem:[%s75_s2] ss:$0 sm:$0xff]  ;;  %v22_v3 = vmul.f32 %v39_v1, %v14_v0 }
   0x5   :  { %v30_v4 = vadd.f32 %v40_v2, %v22_v3 }
   0x7   :  { %v31_v5 = vmax.f32 %v30_v4, 0.0 }
   0x9   :  { %v32_v6 = vpack.c.bf16 %v31_v5, %v31_v5 }
   0xb   :  { %34 = vst.msk [vmem:[%s76_s3] sm:$0xf] %vm33_vm0, %v32_v6 }

// kernel: tile.47
= control target key start
LH: loop header
LB: loop body
LE: loop exit
PB: predicated region body
PF: predicated region fallthrough
CT: control target
= control target key end

     0   :  { %s22_s0 = inlined_call_operand.vmem [shape: f32[16], index: 0, kind: input, shape index: {}]   ;;  %s23_s1 = inlined_call_operand.vmem [shape: f32[4,16], index: 1, kind: output, shape index: {}]  }
   0x1   :  { %v4_v0 = vld [vmem:[%s22_s0] ss:$0 sm:$0xff] }
   0x2   :  { %5 = vst [vmem:[%s23_s1] sm:$0xf] %v4_v0 }

// kernel: tile.49
= control target key start
LH: loop header
LB: loop body
LE: loop exit
PB: predicated region body
PF: predicated region fallthrough
CT: control target
= control target key end

     0   :  { %vm7_vm0 = vcmask 130048   ;;  %s37_s8 = smov 16   ;;  %s38_s9 = smov 32   ;;  %vm13_vm1 = vcmask 523648   ;;  %vm19_vm2 = vcmask 392448   ;;  %vm25_vm3 = vcmask 261248   ;;  %s55_s0 = inlined_call_operand.vmem [shape: f32[4,16], index: 0, kind: input, shape index: {}]   ;;  %s56_s1 = inlined_call_operand.vmem [shape: f32[1,64], index: 1, kind: output, shape index: {}]  }
   0x1   :  { %v4_v0 = vld [vmem:[%s55_s0] sm:$0xf]  ;;  %s36_s0 = smov 48  }
   0x2   :  { %5 = vst [vmem:[#allocation1] sm:$0xf] %v4_v0 }
   0x9   :  { %v10_v1 = vld [vmem:[#allocation1 + $0x3] sm:$0x1]   ;;  %v22_v2 = vld [vmem:[#allocation1 + $0x1] sm:$0x1]   ;;  %v6_v3 = vld [vmem:[#allocation1] sm:$0x1]  }
   0xa   :  { %11 = vrot.lane.b32.xlu0 %v10_v1, %s36_s0  ;;  %23 = vrot.lane.b32.xlu1 %v22_v2, %s37_s8  ;;  %v16_v4 = vld [vmem:[#allocation1 + $0x2] sm:$0x1]   ;;  %8 = vst.msk [vmem:[#allocation0] sm:$0x1] %vm7_vm0, %v6_v3  }
   0xe   :  { %17 = vrot.lane.b32.xlu0 %v16_v4, %s38_s9 }
  0x7c   :  { %v12_v5 = vpop.permute.xlu0 %11   ;;  %v24_v6 = vpop.permute.xlu1 %23  }
  0x7d   :  { %14 = vst.msk [vmem:[#allocation0] sm:$0x1] %vm13_vm1, %v12_v5  }
  0x80   :  { %v18_v7 = vpop.permute.xlu0 %17  }
  0x81   :  { %20 = vst.msk [vmem:[#allocation0] sm:$0x1] %vm19_vm2, %v18_v7  }
  0x82   :  { %26 = vst.msk [vmem:[#allocation0] sm:$0x1] %vm25_vm3, %v24_v6  }
  0x89   :  { %v30_v8 = vld [vmem:[#allocation0] sm:$0x1] }
  0x8a   :  { %32 = vst [vmem:[%s56_s1] sm:$0x1] %v30_v8 }

// kernel: vae_forward.26
= control target key start
LH: loop header
LB: loop body
LE: loop exit
PB: predicated region body
PF: predicated region fallthrough
CT: control target
= control target key end

     0   :  { %v371_v0 = vmov 0.0|0.0   ;;  %vm372_vm0 = vmmov 0   ;;  %v373_v4 = vmov 0.0   ;;  %vm44_vm1 = vcmask 261120   ;;  %s492_s3 = inlined_call_operand.vmem [shape: f32[32,16], index: 3, kind: input, shape index: {}]   ;;  %s493_s1 = inlined_call_operand.vmem [shape: f32[32,16], index: 1, kind: input, shape index: {}]   ;;  %s494_s0 = inlined_call_operand.vmem [shape: f32[8,32], index: 0, kind: input, shape index: {}]   ;;  %s495_s6 = inlined_call_operand.vmem [shape: f32[16,32], index: 6, kind: input, shape index: {}]   ;;  %s496_s4 = inlined_call_operand.vmem [shape: f32[1,16], index: 4, kind: input, shape index: {}, may-alias: {2,4}]   ;;  %s497_s2 = inlined_call_operand.vmem [shape: f32[1,16], index: 2, kind: input, shape index: {}, may-alias: {2,4}]   ;;  %s498_s9 = inlined_call_operand.vmem [shape: f32[8,16], index: 9, kind: output, shape index: {1}]   ;;  %s499_s8 = inlined_call_operand.vmem [shape: f32[8,16], index: 8, kind: output, shape index: {0}]   ;;  %s500_s5 = inlined_call_operand.vmem [shape: f32[8,16], index: 5, kind: input, shape index: {}]   ;;  %s501_s7 = inlined_call_operand.vmem [shape: f32[1,32], index: 7, kind: input, shape index: {}]   ;;  %s502_s10 = inlined_call_operand.vmem [shape: f32[8,32], index: 10, kind: output, shape index: {2}]  }
   0x1   :  { %357 = vmatprep.subr.bf16.mxu1 %v371_v0  ;;  %v118_v1 = vld [vmem:[%s492_s3] sm:$0xff]  ;;  %v119_v2 = vld [vmem:[%s492_s3 + $0x8] sm:$0xff]  ;;  %v120_v3 = vld [vmem:[%s492_s3 + $0x10] sm:$0xff]  ;;  %341 = vmatprep.mubr.msk.f32.mxu1 %vm372_vm0, %v373_v4  ;;  %vm214_vm2 = vcmask 130048  }
   0x2   :  { %v358_v5 = vpack.c.bf16 %v119_v2, %v118_v1  ;;  %v121_v6 = vld [vmem:[%s492_s3 + $0x18] sm:$0xff]  ;;  %351 = vmatprep.subr.bf16.mxu0 %v371_v0  ;;  %v33_v7 = vld [vmem:[%s493_s1] sm:$0xff]  ;;  %330 = vmatprep.mubr.msk.f32.mxu0 %vm372_vm0, %v373_v4  ;;  %v34_v8 = vld [vmem:[%s493_s1 + $0x8] sm:$0xff] }
   0x3   :  { %v35_v9 = vld [vmem:[%s493_s1 + $0x10] sm:$0xff]  ;;  %v36_v10 = vld [vmem:[%s493_s1 + $0x18] sm:$0xff]  ;;  %v361_v11 = vpack.c.bf16 %v121_v6, %v120_v3  ;;  %v352_v12 = vpack.c.bf16 %v34_v8, %v33_v7  ;;  %v32_v14 = vld [vmem:[%s494_s0] sm:$0xff] }
   0x4   :  { %359 = vmatpush3.bf16.msra.mxu1 %v358_v5  ;;  %v355_v13 = vpack.c.bf16 %v36_v10, %v35_v9  ;;  %v205_v15 = vld [vmem:[%s495_s6] sm:$0xff]  ;;  %v206_v16 = vld [vmem:[%s495_s6 + $0x8] sm:$0xff] }
   0x5   :  { %360 = vmatprep.subr.bf16.mxu1 %v371_v0  ;;  %353 = vmatpush3.bf16.msra.mxu0 %v352_v12  ;;  %v364_v17 = vpack.c.bf16 %v206_v16, %v205_v15  ;;  %v305_v18 = vld [vmem:[%s496_s4] ss:$0 sm:$0xff] }
   0x6   :  { %354 = vmatprep.subr.bf16.mxu0 %v371_v0  ;;  %v303_v20 = vld [vmem:[%s497_s2] ss:$0 sm:$0xff] }
   0x7   :  { %v199_v28 = vld [vmem:[%s500_s5] sm:$0xff] }
   0x8   :  { %362 = vmatpush3.bf16.msra.mxu1 %v361_v11  ;;  %v307_v32 = vld [vmem:[%s501_s7] ss:$0 sm:$0xff] }
   0x9   :  { %356 = vmatpush3.bf16.msra.mxu0 %v355_v13 }
   0xa   :  { %363 = vmatprep.subr.bf16.mxu0 %v371_v0 }
   0xb   :  { %342 = vmatmul.mubr.msk.f32.vlgmr.msra.gmra.mrb[0].mxu1 %vm44_vm1, %v32_v14 }
   0xc   :  { %331 = vmatmul.mubr.msk.f32.vlgmr.msra.gmra.mrb[0].mxu0 %vm44_vm1, %v32_v14 }
   0xd   :  { %348 = vmatprep.mubr.msk.f32.mxu0 %vm372_vm0, %v373_v4  ;;  %365 = vmatpush3.bf16.msra.mxu0 %v364_v17 }
  0xde   :  { %v195_v19 = vpop.f32.mrb[0].mxu1 }
  0xdf   :  { %v196_v21 = vadd.f32 %v305_v18, %v195_v19  ;;  %v343_v22 = vpop.f32.mrb[1].mxu1  ;;  %v114_v23 = vpop.f32.mrb[0].mxu0 }
  0xe0   :  { %v115_v25 = vadd.f32 %v303_v20, %v114_v23  ;;  %v332_v26 = vpop.f32.mrb[1].mxu0 }
  0xe1   :  { %v200_v24 = vmul.f32 0.5, %v196_v21  ;;  %289 = vst.msk [vmem:[%s498_s9] sm:$0xff] %vm214_vm2, %v196_v21 }
  0xe2   :  { %288 = vst.msk [vmem:[%s499_s8] sm:$0xff] %vm214_vm2, %v115_v25 }
  0xe3   :  { %v201_v27 = vmul.f32 1.442695, %v200_v24 }
  0xe5   :  { %369 = vpow2.f32 %v201_v27 }
  0xef   :  { %v370_v29 = vpop.eup %369 }
  0xf0   :  { %v203_v30 = vmul.f32 %v370_v29, %v199_v28 }
  0xf2   :  { %v204_v31 = vadd.f32 %v203_v30, %v115_v25 }
  0xf4   :  { %349 = vmatmul.mubr.msk.f32.vlgmr.msra.gmra.mrb[2].mxu0 %vm214_vm2, %v204_v31 }
 0x1c7   :  { %v284_v33 = vpop.f32.mrb[2].mxu0 }
 0x1c8   :  { %v285_v34 = vadd.f32 %v307_v32, %v284_v33  ;;  %v350_v35 = vpop.f32.mrb[3].mxu0 }
 0x1ca   :  { %290 = vst.msk [vmem:[%s502_s10] sm:$0xff] %vm44_vm1, %v285_v34 }

// kernel: vae_forward.27
= control target key start
LH: loop header
LB: loop body
LE: loop exit
PB: predicated region body
PF: predicated region fallthrough
CT: control target
= control target key end

     0   :  { %v199_v0 = vmov 0.0   ;;  %vm200_vm0 = vmmov 0   ;;  %vm120_vm1 = vcmask 523264   ;;  %vm129_vm2 = vcmask 516096   ;;  %s262_s1 = inlined_call_operand.vmem [shape: bf16[128,64], index: 1, kind: input, shape index: {}]   ;;  %s263_s0 = inlined_call_operand.vmem [shape: bf16[8,128], index: 0, kind: input, shape index: {}]   ;;  %s264_s2 = inlined_call_operand.vmem [shape: f32[8,64], index: 2, kind: output, shape index: {0}]   ;;  %s265_s3 = inlined_call_operand.vmem [shape: f32[1,64], index: 3, kind: output, shape index: {1}]   ;;  %s266_s4 = inlined_call_operand.vmem [shape: f32[1,64], index: 4, kind: output, shape index: {2}]  }
   0x1   :  { %169 = vmatprep.subr.bf16.mxu0 %v199_v0  ;;  %v191_v1 = vld [vmem:[%s262_s1] sm:$0xff]   ;;  %185 = vmatprep.mubr.msk.bf16.mxu0 %vm200_vm0, %v199_v0  ;;  %v192_v2 = vld [vmem:[%s262_s1 + $0x8] sm:$0xff]   ;;  %v193_v3 = vld [vmem:[%s262_s1 + $0x10] sm:$0xff]  }
   0x2   :  { %170 = vmatpush3.bf16.msra.mxu0 %v191_v1  ;;  %v194_v4 = vld [vmem:[%s262_s1 + $0x18] sm:$0xff]   ;;  %v195_v5 = vld [vmem:[%s262_s1 + $0x20] sm:$0xff]   ;;  %v196_v6 = vld [vmem:[%s262_s1 + $0x28] sm:$0xff]  }
   0x3   :  { %171 = vmatprep.subr.bf16.mxu0 %v199_v0  ;;  %v197_v7 = vld [vmem:[%s262_s1 + $0x30] sm:$0xff]   ;;  %v198_v8 = vld [vmem:[%s262_s1 + $0x38] sm:$0xff]   ;;  %v15_v9 = vld [vmem:[%s263_s0] sm:$0xf] }
   0x6   :  { %172 = vmatpush3.bf16.msra.mxu0 %v192_v2 }
   0x7   :  { %173 = vmatprep.subr.bf16.mxu0 %v199_v0 }
   0xa   :  { %174 = vmatpush3.bf16.msra.mxu0 %v193_v3 }
   0xb   :  { %175 = vmatprep.subr.bf16.mxu0 %v199_v0 }
   0xe   :  { %176 = vmatpush3.bf16.msra.mxu0 %v194_v4 }
   0xf   :  { %177 = vmatprep.subr.bf16.mxu0 %v199_v0 }
  0x12   :  { %178 = vmatpush3.bf16.msra.mxu0 %v195_v5 }
  0x13   :  { %179 = vmatprep.subr.bf16.mxu0 %v199_v0 }
  0x16   :  { %180 = vmatpush3.bf16.msra.mxu0 %v196_v6 }
  0x17   :  { %181 = vmatprep.subr.bf16.mxu0 %v199_v0 }
  0x1a   :  { %182 = vmatpush3.bf16.msra.mxu0 %v197_v7 }
  0x1b   :  { %183 = vmatprep.subr.bf16.mxu0 %v199_v0 }
  0x1e   :  { %184 = vmatpush3.bf16.msra.mxu0 %v198_v8 }
  0x21   :  { %186 = vmatmul.mubr.bf16.vlgmr.msra.gmra.mrb[0].mxu0 %v15_v9 }
  0xf4   :  { %v114_v10 = vpop.f32.mrb[0].mxu0 }
  0xf5   :  { %121 = vst.msk [vmem:[%s264_s2] sm:$0xff] %vm120_vm1, %v114_v10  ;;  %v122_v11 = vsel %vm120_vm1, %v114_v10, 0.0  ;;  %v131_v12 = vmul.f32 %v114_v10, %v114_v10  ;;  %v187_v13 = vpop.f32.mrb[1].mxu0 }
  0xf6   :  { %v123_v14 = vrot.slane %v122_v11, 4  ;;  %v117_v15 = vpop.f32.mrb[2].mxu0 }
  0xf7   :  { %v132_v16 = vsel %vm120_vm1, %v131_v12, 0.0  ;;  %v188_v17 = vpop.f32.mrb[3].mxu0 }
  0xf8   :  { %v124_v18 = vadd.f32 %v123_v14, %v122_v11  ;;  %v133_v19 = vrot.slane %v132_v16, 4 }
  0xfa   :  { %v125_v20 = vrot.slane %v124_v18, 2  ;;  %v134_v21 = vadd.f32 %v133_v19, %v132_v16 }
  0xfc   :  { %v126_v22 = vadd.f32 %v125_v20, %v124_v18  ;;  %v135_v23 = vrot.slane %v134_v21, 2 }
  0xfe   :  { %v127_v24 = vrot.slane %v126_v22, 1  ;;  %v136_v25 = vadd.f32 %v135_v23, %v134_v21 }
 0x100   :  { %v128_v26 = vadd.f32 %v127_v24, %v126_v22  ;;  %v137_v27 = vrot.slane %v136_v25, 1 }
 0x102   :  { %130 = vst.msk [vmem:[%s265_s3] sm:$0x1] %vm129_vm2, %v128_v26  ;;  %v138_v28 = vadd.f32 %v137_v27, %v136_v25 }
 0x104   :  { %139 = vst.msk [vmem:[%s266_s4] sm:$0x1] %vm129_vm2, %v138_v28 }

// kernel: tile.57
= control target key start
LH: loop header
LB: loop body
LE: loop exit
PB: predicated region body
PF: predicated region fallthrough
CT: control target
= control target key end

     0   :  { %s22_s0 = inlined_call_operand.vmem [shape: f32[8], index: 0, kind: input, shape index: {}]   ;;  %s23_s1 = inlined_call_operand.vmem [shape: f32[4,8], index: 1, kind: output, shape index: {}]  }
   0x1   :  { %v4_v0 = vld [vmem:[%s22_s0] ss:$0 sm:$0xff] }
   0x2   :  { %5 = vst [vmem:[%s23_s1] sm:$0xf] %v4_v0 }

// kernel: tile.59
= control target key start
LH: loop header
LB: loop body
LE: loop exit
PB: predicated region body
PF: predicated region fallthrough
CT: control target
= control target key end

     0   :  { %vm7_vm0 = vcmask 64512   ;;  %s37_s8 = smov 8   ;;  %s38_s9 = smov 16   ;;  %vm13_vm1 = vcmask 261312   ;;  %vm19_vm2 = vcmask 195712   ;;  %vm25_vm3 = vcmask 130112   ;;  %s55_s0 = inlined_call_operand.vmem [shape: f32[4,8], index: 0, kind: input, shape index: {}]   ;;  %s56_s1 = inlined_call_operand.vmem [shape: f32[1,32], index: 1, kind: output, shape index: {}]  }
   0x1   :  { %v4_v0 = vld [vmem:[%s55_s0] sm:$0xf]  ;;  %s36_s0 = smov 24  }
   0x2   :  { %5 = vst [vmem:[#allocation1] sm:$0xf] %v4_v0 }
   0x9   :  { %v10_v1 = vld [vmem:[#allocation1 + $0x3] sm:$0x1]   ;;  %v22_v2 = vld [vmem:[#allocation1 + $0x1] sm:$0x1]   ;;  %v6_v3 = vld [vmem:[#allocation1] sm:$0x1]  }
   0xa   :  { %11 = vrot.lane.b32.xlu0 %v10_v1, %s36_s0  ;;  %23 = vrot.lane.b32.xlu1 %v22_v2, %s37_s8  ;;  %v16_v4 = vld [vmem:[#allocation1 + $0x2] sm:$0x1]   ;;  %8 = vst.msk [vmem:[#allocation0] sm:$0x1] %vm7_vm0, %v6_v3  }
   0xe   :  { %17 = vrot.lane.b32.xlu0 %v16_v4, %s38_s9 }
  0x7c   :  { %v12_v5 = vpop.permute.xlu0 %11   ;;  %v24_v6 = vpop.permute.xlu1 %23  }
  0x7d   :  { %14 = vst.msk [vmem:[#allocation0] sm:$0x1] %vm13_vm1, %v12_v5  }
  0x80   :  { %v18_v7 = vpop.permute.xlu0 %17  }
  0x81   :  { %20 = vst.msk [vmem:[#allocation0] sm:$0x1] %vm19_vm2, %v18_v7  }
  0x82   :  { %26 = vst.msk [vmem:[#allocation0] sm:$0x1] %vm25_vm3, %v24_v6  }
  0x89   :  { %v30_v8 = vld [vmem:[#allocation0] sm:$0x1] }
  0x8a   :  { %32 = vst [vmem:[%s56_s1] sm:$0x1] %v30_v8 }

// kernel: vae_forward.28
= control target key start
LH: loop header
LB: loop body
LE: loop exit
PB: predicated region body
PF: predicated region fallthrough
CT: control target
= control target key end

     0   :  { %vm33_vm0 = vcmask 519168   ;;  %s73_s0 = inlined_call_operand.vmem [shape: f32[8,64], index: 0, kind: input, shape index: {}]   ;;  %s74_s1 = inlined_call_operand.vmem [shape: f32[1,64], index: 1, kind: input, shape index: {}]   ;;  %s75_s2 = inlined_call_operand.vmem [shape: f32[1,64], index: 2, kind: input, shape index: {}]   ;;  %s76_s3 = inlined_call_operand.vmem [shape: bf16[8,64], index: 3, kind: output, shape index: {}]  }
   0x1   :  { %v14_v0 = vld [vmem:[%s73_s0] sm:$0xff] }
   0x2   :  { %v39_v1 = vld [vmem:[%s74_s1] ss:$0 sm:$0xff] }
   0x3   :  { %v40_v2 = vld [vmem:[%s75_s2] ss:$0 sm:$0xff]  ;;  %v22_v3 = vmul.f32 %v39_v1, %v14_v0 }
   0x5   :  { %v30_v4 = vadd.f32 %v40_v2, %v22_v3 }
   0x7   :  { %v31_v5 = vmax.f32 %v30_v4, 0.0 }
   0x9   :  { %v32_v6 = vpack.c.bf16 %v31_v5, %v31_v5 }
   0xb   :  { %34 = vst.msk [vmem:[%s76_s3] sm:$0xf] %vm33_vm0, %v32_v6 }

// kernel: tile.67
= control target key start
LH: loop header
LB: loop body
LE: loop exit
PB: predicated region body
PF: predicated region fallthrough
CT: control target
= control target key end

     0   :  { %s22_s0 = inlined_call_operand.vmem [shape: f32[4], index: 0, kind: input, shape index: {}]   ;;  %s23_s1 = inlined_call_operand.vmem [shape: f32[4,4], index: 1, kind: output, shape index: {}]  }
   0x1   :  { %v4_v0 = vld [vmem:[%s22_s0] ss:$0 sm:$0xff] }
   0x2   :  { %5 = vst [vmem:[%s23_s1] sm:$0xf] %v4_v0 }

// kernel: tile.69
= control target key start
LH: loop header
LB: loop body
LE: loop exit
PB: predicated region body
PF: predicated region fallthrough
CT: control target
= control target key end

     0   :  { %vm7_vm0 = vcmask 31744   ;;  %s37_s8 = smov 4   ;;  %s38_s9 = smov 8   ;;  %vm13_vm1 = vcmask 130144   ;;  %vm19_vm2 = vcmask 97344   ;;  %vm25_vm3 = vcmask 64544   ;;  %s55_s0 = inlined_call_operand.vmem [shape: f32[4,4], index: 0, kind: input, shape index: {}]   ;;  %s56_s1 = inlined_call_operand.vmem [shape: f32[1,16], index: 1, kind: output, shape index: {}]  }
   0x1   :  { %v4_v0 = vld [vmem:[%s55_s0] sm:$0xf]  ;;  %s36_s0 = smov 12  }
   0x2   :  { %5 = vst [vmem:[#allocation1] sm:$0xf] %v4_v0 }
   0x9   :  { %v10_v1 = vld [vmem:[#allocation1 + $0x3] sm:$0x1]   ;;  %v22_v2 = vld [vmem:[#allocation1 + $0x1] sm:$0x1]   ;;  %v6_v3 = vld [vmem:[#allocation1] sm:$0x1]  }
   0xa   :  { %11 = vrot.lane.b32.xlu0 %v10_v1, %s36_s0  ;;  %23 = vrot.lane.b32.xlu1 %v22_v2, %s37_s8  ;;  %v16_v4 = vld [vmem:[#allocation1 + $0x2] sm:$0x1]   ;;  %8 = vst.msk [vmem:[#allocation0] sm:$0x1] %vm7_vm0, %v6_v3  }
   0xe   :  { %17 = vrot.lane.b32.xlu0 %v16_v4, %s38_s9 }
  0x7c   :  { %v12_v5 = vpop.permute.xlu0 %11   ;;  %v24_v6 = vpop.permute.xlu1 %23  }
  0x7d   :  { %14 = vst.msk [vmem:[#allocation0] sm:$0x1] %vm13_vm1, %v12_v5  }
  0x80   :  { %v18_v7 = vpop.permute.xlu0 %17  }
  0x81   :  { %20 = vst.msk [vmem:[#allocation0] sm:$0x1] %vm19_vm2, %v18_v7  }
  0x82   :  { %26 = vst.msk [vmem:[#allocation0] sm:$0x1] %vm25_vm3, %v24_v6  }
  0x89   :  { %v30_v8 = vld [vmem:[#allocation0] sm:$0x1] }
  0x8a   :  { %32 = vst [vmem:[%s56_s1] sm:$0x1] %v30_v8 }

// kernel: vae_forward.29
= control target key start
LH: loop header
LB: loop body
LE: loop exit
PB: predicated region body
PF: predicated region fallthrough
CT: control target
= control target key end

     0   :  { %v152_v0 = vmov 0.0   ;;  %vm153_vm0 = vmmov 0   ;;  %vm48_vm1 = vcmask 523264   ;;  %vm92_vm2 = vcmask 261120   ;;  %s203_s1 = inlined_call_operand.vmem [shape: bf16[64,32], index: 1, kind: input, shape index: {}]   ;;  %s204_s0 = inlined_call_operand.vmem [shape: bf16[8,64], index: 0, kind: input, shape index: {}]   ;;  %s205_s2 = inlined_call_operand.vmem [shape: f32[8,32], index: 2, kind: output, shape index: {0}]   ;;  %s206_s3 = inlined_call_operand.vmem [shape: f32[1,32], index: 3, kind: output, shape index: {1}]   ;;  %s207_s4 = inlined_call_operand.vmem [shape: f32[1,32], index: 4, kind: output, shape index: {2}]  }
   0x1   :  { %134 = vmatprep.subr.bf16.mxu0 %v152_v0  ;;  %v148_v1 = vld [vmem:[%s203_s1] sm:$0xff]   ;;  %142 = vmatprep.mubr.msk.bf16.mxu0 %vm153_vm0, %v152_v0  ;;  %v149_v2 = vld [vmem:[%s203_s1 + $0x8] sm:$0xff]   ;;  %v150_v3 = vld [vmem:[%s203_s1 + $0x10] sm:$0xff]   ;;  %vm101_vm3 = vcmask 253952  }
   0x2   :  { %135 = vmatpush3.bf16.msra.mxu0 %v148_v1  ;;  %v151_v4 = vld [vmem:[%s203_s1 + $0x18] sm:$0xff]   ;;  %v15_v5 = vld [vmem:[%s204_s0] sm:$0xf] }
   0x3   :  { %136 = vmatprep.subr.bf16.mxu0 %v152_v0 }
   0x6   :  { %137 = vmatpush3.bf16.msra.mxu0 %v149_v2 }
   0x7   :  { %138 = vmatprep.subr.bf16.mxu0 %v152_v0 }
   0xa   :  { %139 = vmatpush3.bf16.msra.mxu0 %v150_v3 }
   0xb   :  { %140 = vmatprep.subr.bf16.mxu0 %v152_v0 }
   0xe   :  { %141 = vmatpush3.bf16.msra.mxu0 %v151_v4 }
  0x11   :  { %143 = vmatmul.mubr.msk.bf16.vlgmr.msra.gmra.mrb[0].mxu0 %vm48_vm1, %v15_v5 }
  0xe4   :  { %v86_v6 = vpop.f32.mrb[0].mxu0 }
  0xe5   :  { %93 = vst.msk [vmem:[%s205_s2] sm:$0xff] %vm92_vm2, %v86_v6  ;;  %v94_v7 = vsel %vm92_vm2, %v86_v6, 0.0  ;;  %v103_v8 = vmul.f32 %v86_v6, %v86_v6  ;;  %v144_v9 = vpop.f32.mrb[1].mxu0 }
  0xe6   :  { %v95_v10 = vrot.slane %v94_v7, 4  ;;  %v89_v11 = vpop.f32.mrb[2].mxu0 }
  0xe7   :  { %v104_v12 = vsel %vm92_vm2, %v103_v8, 0.0  ;;  %v145_v13 = vpop.f32.mrb[3].mxu0 }
  0xe8   :  { %v96_v14 = vadd.f32 %v95_v10, %v94_v7  ;;  %v105_v15 = vrot.slane %v104_v12, 4 }
  0xea   :  { %v97_v16 = vrot.slane %v96_v14, 2  ;;  %v106_v17 = vadd.f32 %v105_v15, %v104_v12 }
  0xec   :  { %v98_v18 = vadd.f32 %v97_v16, %v96_v14  ;;  %v107_v19 = vrot.slane %v106_v17, 2 }
  0xee   :  { %v99_v20 = vrot.slane %v98_v18, 1  ;;  %v108_v21 = vadd.f32 %v107_v19, %v106_v17 }
  0xf0   :  { %v100_v22 = vadd.f32 %v99_v20, %v98_v18  ;;  %v109_v23 = vrot.slane %v108_v21, 1 }
  0xf2   :  { %102 = vst.msk [vmem:[%s206_s3] sm:$0x1] %vm101_vm3, %v100_v22  ;;  %v110_v24 = vadd.f32 %v109_v23, %v108_v21 }
  0xf4   :  { %111 = vst.msk [vmem:[%s207_s4] sm:$0x1] %vm101_vm3, %v110_v24 }

// kernel: vae_forward.31
= control target key start
LH: loop header
LB: loop body
LE: loop exit
PB: predicated region body
PF: predicated region fallthrough
CT: control target
= control target key end

     0   :  { %vm45_vm0 = vcmask 261120   ;;  %vm101_vm1 = vcmask 130048   ;;  %vm119_vm2 = vcmask 122880   ;;  %s240_s1 = inlined_call_operand.vmem [shape: bf16[32,16], index: 1, kind: input, shape index: {}]   ;;  %s241_s0 = inlined_call_operand.vmem [shape: bf16[32,32], index: 0, kind: input, shape index: {}]   ;;  %s242_s2 = inlined_call_operand.vmem [shape: f32[32,16], index: 2, kind: output, shape index: {0}]   ;;  %s243_s3 = inlined_call_operand.vmem [shape: f32[1,16], index: 3, kind: output, shape index: {1}]   ;;  %s244_s4 = inlined_call_operand.vmem [shape: f32[1,16], index: 4, kind: output, shape index: {2}]  }
   0x1   :  { %v169_v0 = vld [vmem:[%s240_s1] sm:$0xff]   ;;  %v170_v1 = vld [vmem:[%s240_s1 + $0x8] sm:$0xff]  }
   0x2   :  { %161 = vmatprep.subr.bf16.mxu0 %v169_v0  ;;  %v171_v2 = vld [vmem:[%s241_s0] sm:$0xff]   ;;  %v172_v3 = vld [vmem:[%s241_s0 + $0x8] sm:$0xff]  }
   0x3   :  { %162 = vmatpush3.bf16.msra.mxu0 %v169_v0  ;;  %165 = vmatprep.mubr.msk.bf16.mxu0 %vm45_vm0, %v171_v2 }
   0x4   :  { %163 = vmatprep.subr.bf16.mxu0 %v170_v1 }
   0x7   :  { %164 = vmatpush3.bf16.msra.mxu0 %v170_v1 }
   0xa   :  { %166 = vmatmul.mubr.msk.bf16.vlgmr.msra.gmra.mrb[0].mxu0 %vm45_vm0, %v172_v3 }
  0xdd   :  { %v167_v4 = vpop.f32.mrb[0].mxu0 }
  0xde   :  { %104 = vst.msk [vmem:[%s242_s2 + $0x10] sm:$0xff] %vm101_vm1, %v167_v4  ;;  %v86_v5 = vpop.f32.mrb[1].mxu0  ;;  %v123_v9 = vmul.f32 %v167_v4, %v167_v4  ;;  %v109_v14 = vsel %vm101_vm1, %v167_v4, 0.0 }
  0xdf   :  { %102 = vst.msk [vmem:[%s242_s2] sm:$0xff] %vm101_vm1, %v86_v5  ;;  %v121_v6 = vmul.f32 %v86_v5, %v86_v5  ;;  %v168_v7 = vpop.f32.mrb[2].mxu0  ;;  %v106_v10 = vsel %vm101_vm1, %v86_v5, 0.0 }
  0xe0   :  { %105 = vst.msk [vmem:[%s242_s2 + $0x18] sm:$0xff] %vm101_vm1, %v168_v7  ;;  %v89_v8 = vpop.f32.mrb[3].mxu0  ;;  %v124_v16 = vmul.f32 %v168_v7, %v168_v7  ;;  %v128_v20 = vsel %vm101_vm1, %v123_v9, 0.0  ;;  %v111_v21 = vsel %vm101_vm1, %v168_v7, 0.0 }
  0xe1   :  { %103 = vst.msk [vmem:[%s242_s2 + $0x8] sm:$0xff] %vm101_vm1, %v89_v8  ;;  %v107_v11 = vsel %vm101_vm1, %v89_v8, 0.0  ;;  %v122_v12 = vmul.f32 %v89_v8, %v89_v8  ;;  %v125_v15 = vsel %vm101_vm1, %v121_v6, 0.0 }
  0xe2   :  { %v108_v13 = vadd.f32 %v107_v11, %v106_v10  ;;  %v130_v24 = vsel %vm101_vm1, %v124_v16, 0.0 }
  0xe3   :  { %v126_v17 = vsel %vm101_vm1, %v122_v12, 0.0 }
  0xe4   :  { %v110_v18 = vadd.f32 %v109_v14, %v108_v13  ;;  %v127_v19 = vadd.f32 %v126_v17, %v125_v15 }
  0xe6   :  { %v112_v22 = vadd.f32 %v111_v21, %v110_v18  ;;  %v129_v23 = vadd.f32 %v128_v20, %v127_v19 }
  0xe8   :  { %v113_v25 = vrot.slane %v112_v22, 4  ;;  %v131_v26 = vadd.f32 %v130_v24, %v129_v23 }
  0xea   :  { %v114_v27 = vadd.f32 %v113_v25, %v112_v22  ;;  %v132_v28 = vrot.slane %v131_v26, 4 }
  0xec   :  { %v115_v29 = vrot.slane %v114_v27, 2  ;;  %v133_v30 = vadd.f32 %v132_v28, %v131_v26 }
  0xee   :  { %v116_v31 = vadd.f32 %v115_v29, %v114_v27  ;;  %v134_v32 = vrot.slane %v133_v30, 2 }
  0xf0   :  { %v117_v33 = vrot.slane %v116_v31, 1  ;;  %v135_v34 = vadd.f32 %v134_v32, %v133_v30 }
  0xf2   :  { %v118_v35 = vadd.f32 %v117_v33, %v116_v31  ;;  %v136_v36 = vrot.slane %v135_v34, 1 }
  0xf4   :  { %120 = vst.msk [vmem:[%s243_s3] sm:$0x1] %vm119_vm2, %v118_v35  ;;  %v137_v37 = vadd.f32 %v136_v36, %v135_v34 }
  0xf6   :  { %138 = vst.msk [vmem:[%s244_s4] sm:$0x1] %vm119_vm2, %v137_v37 }

// kernel: vae_forward.32
= control target key start
LH: loop header
LB: loop body
LE: loop exit
PB: predicated region body
PF: predicated region fallthrough
CT: control target
= control target key end

     0   :  { %vm60_vm0 = vcmask 125952   ;;  %s129_s0 = inlined_call_operand.vmem [shape: f32[32,16], index: 0, kind: input, shape index: {}]   ;;  %s130_s1 = inlined_call_operand.vmem [shape: f32[1,16], index: 1, kind: input, shape index: {}]   ;;  %s131_s2 = inlined_call_operand.vmem [shape: f32[1,16], index: 2, kind: input, shape index: {}]   ;;  %s132_s3 = inlined_call_operand.vmem [shape: bf16[32,16], index: 3, kind: output, shape index: {}]  }
   0x1   :  { %v14_v0 = vld [vmem:[%s129_s0] sm:$0xff]  ;;  %v15_v4 = vld [vmem:[%s129_s0 + $0x8] sm:$0xff]  ;;  %v16_v5 = vld [vmem:[%s129_s0 + $0x10] sm:$0xff] }
   0x2   :  { %v69_v1 = vld [vmem:[%s130_s1] ss:$0 sm:$0xff]  ;;  %v17_v6 = vld [vmem:[%s129_s0 + $0x18] sm:$0xff] }
   0x3   :  { %v70_v2 = vld [vmem:[%s131_s2] ss:$0 sm:$0xff]  ;;  %v25_v3 = vmul.f32 %v69_v1, %v14_v0  ;;  %v26_v7 = vmul.f32 %v69_v1, %v15_v4  ;;  %v27_v8 = vmul.f32 %v69_v1, %v16_v5  ;;  %v28_v9 = vmul.f32 %v69_v1, %v17_v6 }
   0x5   :  { %v36_v10 = vadd.f32 %v70_v2, %v25_v3  ;;  %v37_v11 = vadd.f32 %v70_v2, %v26_v7  ;;  %v38_v12 = vadd.f32 %v70_v2, %v27_v8  ;;  %v39_v13 = vadd.f32 %v70_v2, %v28_v9 }
   0x7   :  { %v40_v14 = vmax.f32 %v36_v10, 0.0  ;;  %v41_v15 = vmax.f32 %v37_v11, 0.0  ;;  %v42_v16 = vmax.f32 %v38_v12, 0.0  ;;  %v43_v17 = vmax.f32 %v39_v13, 0.0 }
   0x9   :  { %v75_v18 = vpack.c.bf16 %v40_v14, %v40_v14  ;;  %v76_v19 = vpack.c.bf16 %v41_v15, %v41_v15  ;;  %v77_v20 = vpack.c.bf16 %v42_v16, %v42_v16  ;;  %v78_v21 = vpack.c.bf16 %v43_v17, %v43_v17 }
   0xb   :  { %61 = vst.msk [vmem:[%s132_s3] sm:$0xf] %vm60_vm0, %v75_v18  ;;  %62 = vst.msk [vmem:[%s132_s3 + $0x4] sm:$0xf] %vm60_vm0, %v76_v19 }
   0xc   :  { %63 = vst.msk [vmem:[%s132_s3 + $0x8] sm:$0xf] %vm60_vm0, %v77_v20  ;;  %64 = vst.msk [vmem:[%s132_s3 + $0xc] sm:$0xf] %vm60_vm0, %v78_v21 }

// kernel: vae_forward.34
= control target key start
LH: loop header
LB: loop body
LE: loop exit
PB: predicated region body
PF: predicated region fallthrough
CT: control target
= control target key end

     0   :  { %vm156_vm0 = vcmask 125952   ;;  %s385_s0 = inlined_call_operand.vmem [shape: f32[128,16], index: 0, kind: input, shape index: {}]   ;;  %s386_s1 = inlined_call_operand.vmem [shape: f32[1,16], index: 1, kind: input, shape index: {}]   ;;  %s387_s2 = inlined_call_operand.vmem [shape: f32[1,16], index: 2, kind: input, shape index: {}]   ;;  %s388_s3 = inlined_call_operand.vmem [shape: bf16[128,16], index: 3, kind: output, shape index: {}]  }
   0x1   :  { %v14_v0 = vld [vmem:[%s385_s0] sm:$0xff]  ;;  %v15_v4 = vld [vmem:[%s385_s0 + $0x8] sm:$0xff]  ;;  %v16_v5 = vld [vmem:[%s385_s0 + $0x10] sm:$0xff] }
   0x2   :  { %v237_v1 = vld [vmem:[%s386_s1] ss:$0 sm:$0xff]  ;;  %v17_v6 = vld [vmem:[%s385_s0 + $0x18] sm:$0xff]  ;;  %v19_v11 = vld [vmem:[%s385_s0 + $0x28] sm:$0xff] }
   0x3   :  { %v242_v2 = vld [vmem:[%s387_s2] ss:$0 sm:$0xff]  ;;  %v37_v3 = vmul.f32 %v237_v1, %v14_v0  ;;  %v38_v7 = vmul.f32 %v237_v1, %v15_v4  ;;  %v39_v8 = vmul.f32 %v237_v1, %v16_v5  ;;  %v40_v9 = vmul.f32 %v237_v1, %v17_v6  ;;  %v20_v12 = vld [vmem:[%s385_s0 + $0x30] sm:$0xff]  ;;  %v21_v17 = vld [vmem:[%s385_s0 + $0x38] sm:$0xff] }
   0x4   :  { %v18_v10 = vld [vmem:[%s385_s0 + $0x20] sm:$0xff]  ;;  %v42_v15 = vmul.f32 %v237_v1, %v19_v11  ;;  %v43_v16 = vmul.f32 %v237_v1, %v20_v12  ;;  %v44_v21 = vmul.f32 %v237_v1, %v21_v17  ;;  %v23_v35 = vld [vmem:[%s385_s0 + $0x48] sm:$0xff]  ;;  %v24_v36 = vld [vmem:[%s385_s0 + $0x50] sm:$0xff] }
   0x5   :  { %v60_v13 = vadd.f32 %v242_v2, %v37_v3  ;;  %v41_v14 = vmul.f32 %v237_v1, %v18_v10  ;;  %v61_v18 = vadd.f32 %v242_v2, %v38_v7  ;;  %v62_v19 = vadd.f32 %v242_v2, %v39_v8  ;;  %v22_v30 = vld [vmem:[%s385_s0 + $0x40] sm:$0xff]  ;;  %v25_v37 = vld [vmem:[%s385_s0 + $0x58] sm:$0xff]  ;;  %v27_v43 = vld [vmem:[%s385_s0 + $0x68] sm:$0xff] }
   0x6   :  { %v63_v20 = vadd.f32 %v242_v2, %v40_v9  ;;  %v65_v24 = vadd.f32 %v242_v2, %v42_v15  ;;  %v66_v25 = vadd.f32 %v242_v2, %v43_v16  ;;  %v67_v29 = vadd.f32 %v242_v2, %v44_v21  ;;  %v26_v42 = vld [vmem:[%s385_s0 + $0x60] sm:$0xff]  ;;  %v28_v44 = vld [vmem:[%s385_s0 + $0x70] sm:$0xff]  ;;  %v29_v49 = vld [vmem:[%s385_s0 + $0x78] sm:$0xff] }
   0x7   :  { %v76_v22 = vmax.f32 %v60_v13, 0.0  ;;  %v64_v23 = vadd.f32 %v242_v2, %v41_v14  ;;  %v77_v26 = vmax.f32 %v61_v18, 0.0  ;;  %v78_v27 = vmax.f32 %v62_v19, 0.0 }
   0x8   :  { %v79_v28 = vmax.f32 %v63_v20, 0.0  ;;  %v81_v33 = vmax.f32 %v65_v24, 0.0  ;;  %v82_v34 = vmax.f32 %v66_v25, 0.0  ;;  %v83_v41 = vmax.f32 %v67_v29, 0.0 }
   0x9   :  { %v195_v31 = vpack.c.bf16 %v76_v22, %v76_v22  ;;  %v80_v32 = vmax.f32 %v64_v23, 0.0  ;;  %v196_v38 = vpack.c.bf16 %v77_v26, %v77_v26  ;;  %v197_v39 = vpack.c.bf16 %v78_v27, %v78_v27 }
   0xa   :  { %v198_v40 = vpack.c.bf16 %v79_v28, %v79_v28  ;;  %v200_v46 = vpack.c.bf16 %v81_v33, %v81_v33  ;;  %v201_v47 = vpack.c.bf16 %v82_v34, %v82_v34  ;;  %v45_v48 = vmul.f32 %v237_v1, %v22_v30 }
   0xb   :  { %157 = vst.msk [vmem:[%s388_s3] sm:$0xf] %vm156_vm0, %v195_v31  ;;  %v199_v45 = vpack.c.bf16 %v80_v32, %v80_v32  ;;  %158 = vst.msk [vmem:[%s388_s3 + $0x4] sm:$0xf] %vm156_vm0, %v196_v38  ;;  %v202_v50 = vpack.c.bf16 %v83_v41, %v83_v41  ;;  %v46_v51 = vmul.f32 %v237_v1, %v23_v35 }
   0xc   :  { %159 = vst.msk [vmem:[%s388_s3 + $0x8] sm:$0xf] %vm156_vm0, %v197_v39  ;;  %160 = vst.msk [vmem:[%s388_s3 + $0xc] sm:$0xf] %vm156_vm0, %v198_v40  ;;  %v47_v52 = vmul.f32 %v237_v1, %v24_v36  ;;  %v48_v53 = vmul.f32 %v237_v1, %v25_v37  ;;  %v68_v54 = vadd.f32 %v242_v2, %v45_v48 }
   0xd   :  { %161 = vst.msk [vmem:[%s388_s3 + $0x10] sm:$0xf] %vm156_vm0, %v199_v45  ;;  %162 = vst.msk [vmem:[%s388_s3 + $0x14] sm:$0xf] %vm156_vm0, %v200_v46  ;;  %v49_v55 = vmul.f32 %v237_v1, %v26_v42  ;;  %v50_v56 = vmul.f32 %v237_v1, %v27_v43  ;;  %v51_v57 = vmul.f32 %v237_v1, %v28_v44 }
   0xe   :  { %163 = vst.msk [vmem:[%s388_s3 + $0x18] sm:$0xf] %vm156_vm0, %v201_v47  ;;  %164 = vst.msk [vmem:[%s388_s3 + $0x1c] sm:$0xf] %vm156_vm0, %v202_v50  ;;  %v69_v58 = vadd.f32 %v242_v2, %v46_v51  ;;  %v70_v59 = vadd.f32 %v242_v2, %v47_v52  ;;  %v71_v60 = vadd.f32 %v242_v2, %v48_v53  ;;  %v84_v62 = vmax.f32 %v68_v54, 0.0 }
   0xf   :  { %v52_v61 = vmul.f32 %v237_v1, %v29_v49  ;;  %v72_v63 = vadd.f32 %v242_v2, %v49_v55  ;;  %v73_v0 = vadd.f32 %v242_v2, %v50_v56  ;;  %v74_v3 = vadd.f32 %v242_v2, %v51_v57 }
  0x10   :  { %v85_v4 = vmax.f32 %v69_v58, 0.0  ;;  %v86_v5 = vmax.f32 %v70_v59, 0.0  ;;  %v87_v6 = vmax.f32 %v71_v60, 0.0  ;;  %v203_v8 = vpack.c.bf16 %v84_v62, %v84_v62 }
  0x11   :  { %v75_v7 = vadd.f32 %v242_v2, %v52_v61  ;;  %v88_v9 = vmax.f32 %v72_v63, 0.0  ;;  %v89_v10 = vmax.f32 %v73_v0, 0.0  ;;  %v90_v11 = vmax.f32 %v74_v3, 0.0 }
  0x12   :  { %v204_v12 = vpack.c.bf16 %v85_v4, %v85_v4  ;;  %v205_v13 = vpack.c.bf16 %v86_v5, %v86_v5  ;;  %v206_v14 = vpack.c.bf16 %v87_v6, %v87_v6  ;;  %165 = vst.msk [vmem:[%s388_s3 + $0x20] sm:$0xf] %vm156_vm0, %v203_v8 }
  0x13   :  { %v91_v1 = vmax.f32 %v75_v7, 0.0  ;;  %v207_v15 = vpack.c.bf16 %v88_v9, %v88_v9  ;;  %v208_v16 = vpack.c.bf16 %v89_v10, %v89_v10  ;;  %v209_v17 = vpack.c.bf16 %v90_v11, %v90_v11 }
  0x14   :  { %166 = vst.msk [vmem:[%s388_s3 + $0x24] sm:$0xf] %vm156_vm0, %v204_v12  ;;  %167 = vst.msk [vmem:[%s388_s3 + $0x28] sm:$0xf] %vm156_vm0, %v205_v13 }
  0x15   :  { %168 = vst.msk [vmem:[%s388_s3 + $0x2c] sm:$0xf] %vm156_vm0, %v206_v14  ;;  %v210_v2 = vpack.c.bf16 %v91_v1, %v91_v1  ;;  %169 = vst.msk [vmem:[%s388_s3 + $0x30] sm:$0xf] %vm156_vm0, %v207_v15 }
  0x16   :  { %170 = vst.msk [vmem:[%s388_s3 + $0x34] sm:$0xf] %vm156_vm0, %v208_v16  ;;  %171 = vst.msk [vmem:[%s388_s3 + $0x38] sm:$0xf] %vm156_vm0, %v209_v17 }
  0x17   :  { %172 = vst.msk [vmem:[%s388_s3 + $0x3c] sm:$0xf] %vm156_vm0, %v210_v2 }

// kernel: vae_forward.33
= control target key start
LH: loop header
LB: loop body
LE: loop exit
PB: predicated region body
PF: predicated region fallthrough
CT: control target
= control target key end

     0   :  { %vm79_vm0 = vcmask 130048   ;;  %vm254_vm1 = vcmask 122880   ;;  %s551_s1 = inlined_call_operand.vmem [shape: bf16[16,16], index: 1, kind: input, shape index: {}]   ;;  %s552_s0 = inlined_call_operand.vmem [shape: bf16[128,16], index: 0, kind: input, shape index: {}]   ;;  %s553_s2 = inlined_call_operand.vmem [shape: f32[128,16], index: 2, kind: output, shape index: {0}]   ;;  %s554_s3 = inlined_call_operand.vmem [shape: f32[1,16], index: 3, kind: output, shape index: {1}]   ;;  %s555_s4 = inlined_call_operand.vmem [shape: f32[1,16], index: 4, kind: output, shape index: {2}]  }
   0x1   :  { %v368_v0 = vld [vmem:[%s551_s1] sm:$0xff]   ;;  %v370_v2 = vld [vmem:[%s552_s0 + $0x8] sm:$0xff]   ;;  %v371_v3 = vld [vmem:[%s552_s0 + $0x10] sm:$0xff]  }
   0x2   :  { %v369_v1 = vld [vmem:[%s552_s0] sm:$0xff]   ;;  %348 = vmatprep.subr.bf16.mxu0 %v368_v0  ;;  %366 = vmatprep.subr.bf16.mxu1 %v368_v0  ;;  %v374_v5 = vld [vmem:[%s552_s0 + $0x28] sm:$0xff]   ;;  %v375_v6 = vld [vmem:[%s552_s0 + $0x30] sm:$0xff]  }
   0x3   :  { %349 = vmatpush3.bf16.msra.mxu0 %v368_v0  ;;  %350 = vmatprep.mubr.msk.bf16.mxu0 %vm79_vm0, %v369_v1  ;;  %v373_v4 = vld [vmem:[%s552_s0 + $0x20] sm:$0xff]   ;;  %v372_v7 = vld [vmem:[%s552_s0 + $0x18] sm:$0xff]  }
   0x4   :  { %367 = vmatpush3.bf16.msra.mxu1 %v368_v0  ;;  %358 = vmatprep.mubr.msk.bf16.mxu1 %vm79_vm0, %v373_v4  ;;  %v376_v8 = vld [vmem:[%s552_s0 + $0x38] sm:$0xff]  }
   0x6   :  { %351 = vmatmul.mubr.msk.bf16.vlgmr.msra.gmra.mrb[0].mxu0 %vm79_vm0, %v370_v2 }
   0x7   :  { %354 = vmatprep.mubr.msk.bf16.mxu0 %vm79_vm0, %v371_v3  ;;  %359 = vmatmul.mubr.msk.bf16.vlgmr.msra.gmra.mrb[0].mxu1 %vm79_vm0, %v374_v5 }
   0x8   :  { %362 = vmatprep.mubr.msk.bf16.mxu1 %vm79_vm0, %v375_v6 }
   0xe   :  { %355 = vmatmul.mubr.msk.bf16.gmra.mrb[4].mxu0 %vm79_vm0, %v372_v7 }
   0xf   :  { %363 = vmatmul.mubr.msk.bf16.gmra.mrb[4].mxu1 %vm79_vm0, %v376_v8 }
  0xd9   :  { %v352_v9 = vpop.f32.mrb[0].mxu0 }
  0xda   :  { %203 = vst.msk [vmem:[%s553_s2 + $0x10] sm:$0xff] %vm79_vm0, %v352_v9  ;;  %v138_v10 = vpop.f32.mrb[1].mxu0  ;;  %v445_v13 = vpop.f32.mrb[0].mxu1  ;;  %v258_v16 = vmul.f32 %v352_v9, %v352_v9  ;;  %v220_v23 = vsel %vm79_vm0, %v352_v9, 0.0 }
  0xdb   :  { %201 = vst.msk [vmem:[%s553_s2] sm:$0xff] %vm79_vm0, %v138_v10  ;;  %v256_v11 = vmul.f32 %v138_v10, %v138_v10  ;;  %v353_v12 = vpop.f32.mrb[2].mxu0  ;;  %211 = vst.msk [vmem:[%s553_s2 + $0x50] sm:$0xff] %vm79_vm0, %v445_v13  ;;  %v170_v15 = vpop.f32.mrb[1].mxu1  ;;  %v217_v17 = vsel %vm79_vm0, %v138_v10, 0.0  ;;  %v266_v4 = vmul.f32 %v445_v13, %v445_v13  ;;  %v236_v8 = vsel %vm79_vm0, %v445_v13, 0.0 }
  0xdc   :  { %204 = vst.msk [vmem:[%s553_s2 + $0x18] sm:$0xff] %vm79_vm0, %v353_v12  ;;  %v141_v14 = vpop.f32.mrb[3].mxu0  ;;  %209 = vst.msk [vmem:[%s553_s2 + $0x40] sm:$0xff] %vm79_vm0, %v170_v15  ;;  %v466_v20 = vpop.f32.mrb[2].mxu1  ;;  %v259_v25 = vmul.f32 %v353_v12, %v353_v12  ;;  %v275_v29 = vsel %vm79_vm0, %v258_v16, 0.0  ;;  %v222_v30 = vsel %vm79_vm0, %v353_v12, 0.0  ;;  %v264_v55 = vmul.f32 %v170_v15, %v170_v15 }
  0xdd   :  { %202 = vst.msk [vmem:[%s553_s2 + $0x8] sm:$0xff] %vm79_vm0, %v141_v14  ;;  %v218_v18 = vsel %vm79_vm0, %v141_v14, 0.0  ;;  %v257_v19 = vmul.f32 %v141_v14, %v141_v14  ;;  %212 = vst.msk [vmem:[%s553_s2 + $0x58] sm:$0xff] %vm79_vm0, %v466_v20  ;;  %v173_v22 = vpop.f32.mrb[3].mxu1  ;;  %v272_v24 = vsel %vm79_vm0, %v256_v11, 0.0  ;;  %v232_v60 = vsel %vm79_vm0, %v170_v15, 0.0 }
  0xde   :  { %v219_v21 = vadd.f32 %v218_v18, %v217_v17  ;;  %210 = vst.msk [vmem:[%s553_s2 + $0x48] sm:$0xff] %vm79_vm0, %v173_v22  ;;  %v277_v35 = vsel %vm79_vm0, %v259_v25, 0.0  ;;  %v287_v0 = vsel %vm79_vm0, %v264_v55, 0.0  ;;  %v265_v1 = vmul.f32 %v173_v22, %v173_v22 }
  0xdf   :  { %v273_v26 = vsel %vm79_vm0, %v257_v19, 0.0  ;;  %v234_v5 = vsel %vm79_vm0, %v173_v22, 0.0  ;;  %v267_v9 = vmul.f32 %v466_v20, %v466_v20  ;;  %v291_v15 = vsel %vm79_vm0, %v266_v4, 0.0 }
  0xe0   :  { %v221_v27 = vadd.f32 %v220_v23, %v219_v21  ;;  %v274_v28 = vadd.f32 %v273_v26, %v272_v24  ;;  %v289_v10 = vsel %vm79_vm0, %v265_v1, 0.0  ;;  %v238_v16 = vsel %vm79_vm0, %v466_v20, 0.0 }
  0xe1   :  { %v356_v31 = vpop.f32.mrb[4].mxu0  ;;  %v293_v21 = vsel %vm79_vm0, %v267_v9, 0.0 }
  0xe2   :  { %v276_v32 = vadd.f32 %v275_v29, %v274_v28  ;;  %207 = vst.msk [vmem:[%s553_s2 + $0x30] sm:$0xff] %vm79_vm0, %v356_v31  ;;  %v154_v33 = vpop.f32.mrb[5].mxu0  ;;  %v223_v34 = vadd.f32 %v222_v30, %v221_v27  ;;  %v364_v39 = vpop.f32.mrb[4].mxu1  ;;  %v262_v44 = vmul.f32 %v356_v31, %v356_v31  ;;  %v228_v52 = vsel %vm79_vm0, %v356_v31, 0.0 }
  0xe3   :  { %205 = vst.msk [vmem:[%s553_s2 + $0x20] sm:$0xff] %vm79_vm0, %v154_v33  ;;  %v224_v36 = vsel %vm79_vm0, %v154_v33, 0.0  ;;  %v260_v37 = vmul.f32 %v154_v33, %v154_v33  ;;  %v357_v38 = vpop.f32.mrb[6].mxu0  ;;  %215 = vst.msk [vmem:[%s553_s2 + $0x70] sm:$0xff] %vm79_vm0, %v364_v39  ;;  %v186_v43 = vpop.f32.mrb[5].mxu1  ;;  %v270_v25 = vmul.f32 %v364_v39, %v364_v39  ;;  %v244_v29 = vsel %vm79_vm0, %v364_v39, 0.0 }
  0xe4   :  { %v225_v40 = vadd.f32 %v224_v36, %v223_v34  ;;  %v278_v41 = vadd.f32 %v277_v35, %v276_v32  ;;  %208 = vst.msk [vmem:[%s553_s2 + $0x38] sm:$0xff] %vm79_vm0, %v357_v38  ;;  %v157_v42 = vpop.f32.mrb[7].mxu0  ;;  %213 = vst.msk [vmem:[%s553_s2 + $0x60] sm:$0xff] %vm79_vm0, %v186_v43  ;;  %v365_v48 = vpop.f32.mrb[6].mxu1  ;;  %v263_v53 = vmul.f32 %v357_v38, %v357_v38  ;;  %v283_v58 = vsel %vm79_vm0, %v262_v44, 0.0 }
  0xe5   :  { %v279_v45 = vsel %vm79_vm0, %v260_v37, 0.0  ;;  %206 = vst.msk [vmem:[%s553_s2 + $0x28] sm:$0xff] %vm79_vm0, %v157_v42  ;;  %v226_v46 = vsel %vm79_vm0, %v157_v42, 0.0  ;;  %v261_v47 = vmul.f32 %v157_v42, %v157_v42  ;;  %216 = vst.msk [vmem:[%s553_s2 + $0x78] sm:$0xff] %vm79_vm0, %v365_v48  ;;  %v189_v51 = vpop.f32.mrb[7].mxu1  ;;  %v230_v59 = vsel %vm79_vm0, %v357_v38, 0.0 }
  0xe6   :  { %v280_v49 = vadd.f32 %v279_v45, %v278_v41  ;;  %v227_v50 = vadd.f32 %v226_v46, %v225_v40  ;;  %214 = vst.msk [vmem:[%s553_s2 + $0x68] sm:$0xff] %vm79_vm0, %v189_v51  ;;  %v285_v63 = vsel %vm79_vm0, %v263_v53, 0.0  ;;  %v268_v11 = vmul.f32 %v186_v43, %v186_v43 }
  0xe7   :  { %v281_v54 = vsel %vm79_vm0, %v261_v47, 0.0  ;;  %v240_v17 = vsel %vm79_vm0, %v186_v43, 0.0  ;;  %v269_v22 = vmul.f32 %v189_v51, %v189_v51  ;;  %v242_v26 = vsel %vm79_vm0, %v189_v51, 0.0 }
  0xe8   :  { %v229_v56 = vadd.f32 %v228_v52, %v227_v50  ;;  %v282_v57 = vadd.f32 %v281_v54, %v280_v49  ;;  %v295_v13 = vsel %vm79_vm0, %v268_v11, 0.0  ;;  %v271_v30 = vmul.f32 %v365_v48, %v365_v48 }
  0xe9   :  { %v297_v20 = vsel %vm79_vm0, %v269_v22, 0.0  ;;  %v299_v33 = vsel %vm79_vm0, %v270_v25, 0.0  ;;  %v246_v34 = vsel %vm79_vm0, %v365_v48, 0.0 }
  0xea   :  { %v284_v61 = vadd.f32 %v283_v58, %v282_v57  ;;  %v231_v62 = vadd.f32 %v230_v59, %v229_v56  ;;  %v301_v37 = vsel %vm79_vm0, %v271_v30, 0.0 }
  0xec   :  { %v233_v2 = vadd.f32 %v232_v60, %v231_v62  ;;  %v286_v3 = vadd.f32 %v285_v63, %v284_v61 }
  0xee   :  { %v288_v6 = vadd.f32 %v287_v0, %v286_v3  ;;  %v235_v7 = vadd.f32 %v234_v5, %v233_v2 }
  0xf0   :  { %v237_v12 = vadd.f32 %v236_v8, %v235_v7  ;;  %v290_v14 = vadd.f32 %v289_v10, %v288_v6 }
  0xf2   :  { %v292_v18 = vadd.f32 %v291_v15, %v290_v14  ;;  %v239_v19 = vadd.f32 %v238_v16, %v237_v12 }
  0xf4   :  { %v241_v23 = vadd.f32 %v240_v17, %v239_v19  ;;  %v294_v24 = vadd.f32 %v293_v21, %v292_v18 }
  0xf6   :  { %v296_v27 = vadd.f32 %v295_v13, %v294_v24  ;;  %v243_v28 = vadd.f32 %v242_v26, %v241_v23 }
  0xf8   :  { %v245_v31 = vadd.f32 %v244_v29, %v243_v28  ;;  %v298_v32 = vadd.f32 %v297_v20, %v296_v27 }
  0xfa   :  { %v247_v35 = vadd.f32 %v246_v34, %v245_v31  ;;  %v300_v36 = vadd.f32 %v299_v33, %v298_v32 }
  0xfc   :  { %v248_v38 = vrot.slane %v247_v35, 4  ;;  %v302_v40 = vadd.f32 %v301_v37, %v300_v36 }
  0xfe   :  { %v249_v41 = vadd.f32 %v248_v38, %v247_v35  ;;  %v303_v42 = vrot.slane %v302_v40, 4 }
 0x100   :  { %v250_v43 = vrot.slane %v249_v41, 2  ;;  %v304_v44 = vadd.f32 %v303_v42, %v302_v40 }
 0x102   :  { %v251_v39 = vadd.f32 %v250_v43, %v249_v41  ;;  %v305_v45 = vrot.slane %v304_v44, 2 }
 0x104   :  { %v252_v46 = vrot.slane %v251_v39, 1  ;;  %v306_v47 = vadd.f32 %v305_v45, %v304_v44 }
 0x106   :  { %v253_v49 = vadd.f32 %v252_v46, %v251_v39  ;;  %v307_v50 = vrot.slane %v306_v47, 1 }
 0x108   :  { %255 = vst.msk [vmem:[%s554_s3] sm:$0x1] %vm254_vm1, %v253_v49  ;;  %v308_v48 = vadd.f32 %v307_v50, %v306_v47 }
 0x10a   :  { %309 = vst.msk [vmem:[%s555_s4] sm:$0x1] %vm254_vm1, %v308_v48 }

// kernel: vae_forward.35
= control target key start
LH: loop header
LB: loop body
LE: loop exit
PB: predicated region body
PF: predicated region fallthrough
CT: control target
= control target key end

     0   :  { %vm266_vm0 = vcmask 293888   ;;  %vm363_vm1 = vcmask 1041408   ;;  %vm720_vm2 = vcmask 23552   ;;  %s1487_s1 = inlined_call_operand.vmem [shape: bf16[36,3], index: 1, kind: input, shape index: {}]   ;;  %s1488_s0 = inlined_call_operand.vmem [shape: bf16[512,36], index: 0, kind: input, shape index: {}]   ;;  %s1489_s2 = inlined_call_operand.vmem [shape: f32[1,3], index: 2, kind: input, shape index: {}]   ;;  %s1490_s3 = inlined_call_operand.vmem [shape: f32[512,3], index: 3, kind: output, shape index: {}]  }
   0x1   :  { %v970_v0 = vld [vmem:[%s1487_s1] sm:$0xff]   ;;  %v971_v1 = vld [vmem:[%s1487_s1 + $0x8] sm:$0xff]   ;;  %v972_v2 = vld [vmem:[%s1487_s1 + $0x10] ss:$0 sps:$4 sm:$0x33]  }
   0x2   :  { %892 = vmatprep.subr.bf16.mxu0 %v970_v0  ;;  %962 = vmatprep.subr.bf16.mxu1 %v970_v0  ;;  %v973_v3 = vld [vmem:[%s1488_s0] sm:$0xff]   ;;  %v365_v5 = vsel %vm363_vm1, %v972_v2, 0  ;;  %v975_v6 = vld [vmem:[%s1488_s0 + $0x8] sm:$0xff]   ;;  %v977_v8 = vld [vmem:[%s1488_s0 + $0x10] sm:$0xff]  }
   0x3   :  { %893 = vmatpush3.bf16.msra.mxu0 %v970_v0  ;;  %965 = vmatpush3.bf16.msra.mxu1 %v970_v0  ;;  %v974_v4 = vld [vmem:[%s1488_s0 + $0x80] sm:$0xff]   ;;  %v976_v7 = vld [vmem:[%s1488_s0 + $0x88] sm:$0xff]   ;;  %v978_v9 = vld [vmem:[%s1488_s0 + $0x90] sm:$0xff]  }
   0x4   :  { %894 = vmatprep.subr.bf16.mxu0 %v971_v1  ;;  %963 = vmatprep.subr.bf16.mxu1 %v971_v1  ;;  %v979_v10 = vld [vmem:[%s1488_s0 + $0x18] sm:$0xff]   ;;  %v981_v12 = vld [vmem:[%s1488_s0 + $0x20] sm:$0xff]   ;;  %v983_v14 = vld [vmem:[%s1488_s0 + $0x28] sm:$0xff]  }
   0x5   :  { %898 = vmatprep.mubr.msk.bf16.mxu0 %vm266_vm0, %v973_v3  ;;  %930 = vmatprep.mubr.msk.bf16.mxu1 %vm266_vm0, %v974_v4  ;;  %v980_v11 = vld [vmem:[%s1488_s0 + $0x98] sm:$0xff]   ;;  %v982_v13 = vld [vmem:[%s1488_s0 + $0xa0] sm:$0xff]   ;;  %v984_v15 = vld [vmem:[%s1488_s0 + $0xa8] sm:$0xff]  }
   0x6   :  { %v985_v16 = vld [vmem:[%s1488_s0 + $0x30] sm:$0xff]   ;;  %v987_v18 = vld [vmem:[%s1488_s0 + $0x38] sm:$0xff]   ;;  %v989_v20 = vld [vmem:[%s1488_s0 + $0x40] sm:$0xff]  }
   0x7   :  { %895 = vmatpush3.bf16.msra.mxu0 %v971_v1  ;;  %966 = vmatpush3.bf16.msra.mxu1 %v971_v1  ;;  %v986_v17 = vld [vmem:[%s1488_s0 + $0xb0] sm:$0xff]   ;;  %v988_v19 = vld [vmem:[%s1488_s0 + $0xb8] sm:$0xff]   ;;  %v990_v21 = vld [vmem:[%s1488_s0 + $0xc0] sm:$0xff]  }
   0x8   :  { %968 = vmatprep.subr.msk.bf16.mxu0 %vm363_vm1, %v972_v2  ;;  %969 = vmatprep.subr.msk.bf16.mxu1 %vm363_vm1, %v972_v2  ;;  %v991_v22 = vld [vmem:[%s1488_s0 + $0x48] sm:$0xff]   ;;  %v993_v24 = vld [vmem:[%s1488_s0 + $0x50] sm:$0xff]   ;;  %v995_v26 = vld [vmem:[%s1488_s0 + $0x58] sm:$0xff]  }
   0x9   :  { %v992_v23 = vld [vmem:[%s1488_s0 + $0xc8] sm:$0xff]   ;;  %v994_v25 = vld [vmem:[%s1488_s0 + $0xd0] sm:$0xff]   ;;  %v996_v27 = vld [vmem:[%s1488_s0 + $0xd8] sm:$0xff]  }
   0xa   :  { %v997_v28 = vld [vmem:[%s1488_s0 + $0x60] sm:$0xff]   ;;  %v999_v30 = vld [vmem:[%s1488_s0 + $0x68] sm:$0xff]   ;;  %v1001_v32 = vld [vmem:[%s1488_s0 + $0x70] sm:$0xff]  }
   0xb   :  { %897 = vmatpush3.bf16.msra.mxu0 %v365_v5  ;;  %967 = vmatpush3.bf16.msra.mxu1 %v365_v5  ;;  %v998_v29 = vld [vmem:[%s1488_s0 + $0xe0] sm:$0xff]   ;;  %v1000_v31 = vld [vmem:[%s1488_s0 + $0xe8] sm:$0xff]   ;;  %v1002_v33 = vld [vmem:[%s1488_s0 + $0xf0] sm:$0xff]  }
   0xc   :  { %v1003_v34 = vld [vmem:[%s1488_s0 + $0x78] sm:$0xff]   ;;  %v1165_v36 = vld [vmem:[%s1489_s2] ss:$0 sm:$0xff] }
   0xd   :  { %v1004_v35 = vld [vmem:[%s1488_s0 + $0xf8] sm:$0xff]  }
   0xe   :  { %899 = vmatmul.mubr.msk.bf16.vlgmr.msra.gmra.mrb[0].mxu0 %vm266_vm0, %v975_v6  ;;  %931 = vmatmul.mubr.msk.bf16.vlgmr.msra.gmra.mrb[0].mxu1 %vm266_vm0, %v976_v7 }
   0xf   :  { %902 = vmatprep.mubr.msk.bf16.mxu0 %vm266_vm0, %v977_v8  ;;  %934 = vmatprep.mubr.msk.bf16.mxu1 %vm266_vm0, %v978_v9 }
  0x16   :  { %903 = vmatmul.mubr.msk.bf16.gmra.mrb[4].mxu0 %vm266_vm0, %v979_v10  ;;  %935 = vmatmul.mubr.msk.bf16.gmra.mrb[4].mxu1 %vm266_vm0, %v980_v11 }
  0x17   :  { %906 = vmatprep.mubr.msk.bf16.mxu0 %vm266_vm0, %v981_v12  ;;  %938 = vmatprep.mubr.msk.bf16.mxu1 %vm266_vm0, %v982_v13 }
  0x1e   :  { %907 = vmatmul.mubr.msk.bf16.gmra.mrb[8].mxu0 %vm266_vm0, %v983_v14  ;;  %939 = vmatmul.mubr.msk.bf16.gmra.mrb[8].mxu1 %vm266_vm0, %v984_v15 }
  0x1f   :  { %910 = vmatprep.mubr.msk.bf16.mxu0 %vm266_vm0, %v985_v16  ;;  %942 = vmatprep.mubr.msk.bf16.mxu1 %vm266_vm0, %v986_v17 }
  0x26   :  { %911 = vmatmul.mubr.msk.bf16.gmra.mrb[12].mxu0 %vm266_vm0, %v987_v18  ;;  %943 = vmatmul.mubr.msk.bf16.gmra.mrb[12].mxu1 %vm266_vm0, %v988_v19 }
  0x27   :  { %914 = vmatprep.mubr.msk.bf16.mxu0 %vm266_vm0, %v989_v20  ;;  %946 = vmatprep.mubr.msk.bf16.mxu1 %vm266_vm0, %v990_v21 }
  0x2e   :  { %915 = vmatmul.mubr.msk.bf16.gmra.mrb[16].mxu0 %vm266_vm0, %v991_v22  ;;  %947 = vmatmul.mubr.msk.bf16.gmra.mrb[16].mxu1 %vm266_vm0, %v992_v23 }
  0x2f   :  { %918 = vmatprep.mubr.msk.bf16.mxu0 %vm266_vm0, %v993_v24  ;;  %950 = vmatprep.mubr.msk.bf16.mxu1 %vm266_vm0, %v994_v25 }
  0x36   :  { %919 = vmatmul.mubr.msk.bf16.gmra.mrb[20].mxu0 %vm266_vm0, %v995_v26  ;;  %951 = vmatmul.mubr.msk.bf16.gmra.mrb[20].mxu1 %vm266_vm0, %v996_v27 }
  0x37   :  { %922 = vmatprep.mubr.msk.bf16.mxu0 %vm266_vm0, %v997_v28  ;;  %954 = vmatprep.mubr.msk.bf16.mxu1 %vm266_vm0, %v998_v29 }
  0x3e   :  { %923 = vmatmul.mubr.msk.bf16.gmra.mrb[24].mxu0 %vm266_vm0, %v999_v30  ;;  %955 = vmatmul.mubr.msk.bf16.gmra.mrb[24].mxu1 %vm266_vm0, %v1000_v31 }
  0x3f   :  { %926 = vmatprep.mubr.msk.bf16.mxu0 %vm266_vm0, %v1001_v32  ;;  %958 = vmatprep.mubr.msk.bf16.mxu1 %vm266_vm0, %v1002_v33 }
  0x46   :  { %927 = vmatmul.mubr.msk.bf16.gmra.mrb[28].mxu0 %vm266_vm0, %v1003_v34  ;;  %959 = vmatmul.mubr.msk.bf16.gmra.mrb[28].mxu1 %vm266_vm0, %v1004_v35 }
  0xe1   :  { %v900_v37 = vpop.f32.mrb[0].mxu0  ;;  %v932_v38 = vpop.f32.mrb[0].mxu1 }
  0xe2   :  { %v410_v39 = vadd.f32 %v900_v37, %v1165_v36  ;;  %v538_v40 = vadd.f32 %v932_v38, %v1165_v36  ;;  %v401_v41 = vpop.f32.mrb[1].mxu0  ;;  %v529_v42 = vpop.f32.mrb[1].mxu1 }
  0xe3   :  { %v402_v43 = vadd.f32 %v1165_v36, %v401_v41  ;;  %v530_v44 = vadd.f32 %v1165_v36, %v529_v42  ;;  %v901_v45 = vpop.f32.mrb[2].mxu0  ;;  %v933_v46 = vpop.f32.mrb[2].mxu1 }
  0xe4   :  { %v658_v47 = vmax.f32 %v410_v39, 0.0  ;;  %v690_v48 = vmax.f32 %v538_v40, 0.0  ;;  %v413_v49 = vadd.f32 %v901_v45, %v1165_v36  ;;  %v541_v50 = vadd.f32 %v933_v46, %v1165_v36  ;;  %v404_v51 = vpop.f32.mrb[3].mxu0  ;;  %v532_v52 = vpop.f32.mrb[3].mxu1 }
  0xe5   :  { %v656_v53 = vmax.f32 %v402_v43, 0.0  ;;  %v688_v54 = vmax.f32 %v530_v44, 0.0  ;;  %v405_v55 = vadd.f32 %v1165_v36, %v404_v51  ;;  %v533_v56 = vadd.f32 %v1165_v36, %v532_v52 }
  0xe6   :  { %723 = vst.msk [vmem:[%s1490_s3 + $0x10] sm:$0xff] %vm720_vm2, %v658_v47  ;;  %755 = vst.msk [vmem:[%s1490_s3 + $0x110] sm:$0xff] %vm720_vm2, %v690_v48  ;;  %v659_v57 = vmax.f32 %v413_v49, 0.0  ;;  %v691_v58 = vmax.f32 %v541_v50, 0.0 }
  0xe7   :  { %721 = vst.msk [vmem:[%s1490_s3] sm:$0xff] %vm720_vm2, %v656_v53  ;;  %753 = vst.msk [vmem:[%s1490_s3 + $0x100] sm:$0xff] %vm720_vm2, %v688_v54  ;;  %v657_v59 = vmax.f32 %v405_v55, 0.0  ;;  %v689_v60 = vmax.f32 %v533_v56, 0.0 }
  0xe8   :  { %724 = vst.msk [vmem:[%s1490_s3 + $0x18] sm:$0xff] %vm720_vm2, %v659_v57  ;;  %756 = vst.msk [vmem:[%s1490_s3 + $0x118] sm:$0xff] %vm720_vm2, %v691_v58 }
  0xe9   :  { %722 = vst.msk [vmem:[%s1490_s3 + $0x8] sm:$0xff] %vm720_vm2, %v657_v59  ;;  %754 = vst.msk [vmem:[%s1490_s3 + $0x108] sm:$0xff] %vm720_vm2, %v689_v60  ;;  %v904_v61 = vpop.f32.mrb[4].mxu0  ;;  %v936_v62 = vpop.f32.mrb[4].mxu1 }
  0xea   :  { %v426_v63 = vadd.f32 %v904_v61, %v1165_v36  ;;  %v554_v0 = vadd.f32 %v936_v62, %v1165_v36  ;;  %v417_v1 = vpop.f32.mrb[5].mxu0  ;;  %v545_v2 = vpop.f32.mrb[5].mxu1 }
  0xeb   :  { %v418_v3 = vadd.f32 %v1165_v36, %v417_v1  ;;  %v546_v4 = vadd.f32 %v1165_v36, %v545_v2  ;;  %v905_v5 = vpop.f32.mrb[6].mxu0  ;;  %v937_v6 = vpop.f32.mrb[6].mxu1 }
  0xec   :  { %v662_v7 = vmax.f32 %v426_v63, 0.0  ;;  %v694_v8 = vmax.f32 %v554_v0, 0.0  ;;  %v429_v9 = vadd.f32 %v905_v5, %v1165_v36  ;;  %v557_v10 = vadd.f32 %v937_v6, %v1165_v36  ;;  %v420_v11 = vpop.f32.mrb[7].mxu0  ;;  %v548_v12 = vpop.f32.mrb[7].mxu1 }
  0xed   :  { %v660_v13 = vmax.f32 %v418_v3, 0.0  ;;  %v692_v14 = vmax.f32 %v546_v4, 0.0  ;;  %v421_v15 = vadd.f32 %v1165_v36, %v420_v11  ;;  %v549_v16 = vadd.f32 %v1165_v36, %v548_v12 }
  0xee   :  { %727 = vst.msk [vmem:[%s1490_s3 + $0x30] sm:$0xff] %vm720_vm2, %v662_v7  ;;  %759 = vst.msk [vmem:[%s1490_s3 + $0x130] sm:$0xff] %vm720_vm2, %v694_v8  ;;  %v663_v17 = vmax.f32 %v429_v9, 0.0  ;;  %v695_v18 = vmax.f32 %v557_v10, 0.0 }
  0xef   :  { %725 = vst.msk [vmem:[%s1490_s3 + $0x20] sm:$0xff] %vm720_vm2, %v660_v13  ;;  %757 = vst.msk [vmem:[%s1490_s3 + $0x120] sm:$0xff] %vm720_vm2, %v692_v14  ;;  %v661_v19 = vmax.f32 %v421_v15, 0.0  ;;  %v693_v20 = vmax.f32 %v549_v16, 0.0 }
  0xf0   :  { %728 = vst.msk [vmem:[%s1490_s3 + $0x38] sm:$0xff] %vm720_vm2, %v663_v17  ;;  %760 = vst.msk [vmem:[%s1490_s3 + $0x138] sm:$0xff] %vm720_vm2, %v695_v18 }
  0xf1   :  { %726 = vst.msk [vmem:[%s1490_s3 + $0x28] sm:$0xff] %vm720_vm2, %v661_v19  ;;  %758 = vst.msk [vmem:[%s1490_s3 + $0x128] sm:$0xff] %vm720_vm2, %v693_v20  ;;  %v908_v21 = vpop.f32.mrb[8].mxu0  ;;  %v940_v22 = vpop.f32.mrb[8].mxu1 }
  0xf2   :  { %v442_v23 = vadd.f32 %v908_v21, %v1165_v36  ;;  %v570_v24 = vadd.f32 %v940_v22, %v1165_v36  ;;  %v433_v25 = vpop.f32.mrb[9].mxu0  ;;  %v561_v26 = vpop.f32.mrb[9].mxu1 }
  0xf3   :  { %v434_v27 = vadd.f32 %v1165_v36, %v433_v25  ;;  %v562_v28 = vadd.f32 %v1165_v36, %v561_v26  ;;  %v909_v29 = vpop.f32.mrb[10].mxu0  ;;  %v941_v30 = vpop.f32.mrb[10].mxu1 }
  0xf4   :  { %v666_v31 = vmax.f32 %v442_v23, 0.0  ;;  %v698_v32 = vmax.f32 %v570_v24, 0.0  ;;  %v445_v33 = vadd.f32 %v909_v29, %v1165_v36  ;;  %v573_v34 = vadd.f32 %v941_v30, %v1165_v36  ;;  %v436_v35 = vpop.f32.mrb[11].mxu0  ;;  %v564_v37 = vpop.f32.mrb[11].mxu1 }
  0xf5   :  { %v664_v38 = vmax.f32 %v434_v27, 0.0  ;;  %v696_v39 = vmax.f32 %v562_v28, 0.0  ;;  %v437_v40 = vadd.f32 %v1165_v36, %v436_v35  ;;  %v565_v41 = vadd.f32 %v1165_v36, %v564_v37 }
  0xf6   :  { %731 = vst.msk [vmem:[%s1490_s3 + $0x50] sm:$0xff] %vm720_vm2, %v666_v31  ;;  %763 = vst.msk [vmem:[%s1490_s3 + $0x150] sm:$0xff] %vm720_vm2, %v698_v32  ;;  %v667_v42 = vmax.f32 %v445_v33, 0.0  ;;  %v699_v43 = vmax.f32 %v573_v34, 0.0 }
  0xf7   :  { %729 = vst.msk [vmem:[%s1490_s3 + $0x40] sm:$0xff] %vm720_vm2, %v664_v38  ;;  %761 = vst.msk [vmem:[%s1490_s3 + $0x140] sm:$0xff] %vm720_vm2, %v696_v39  ;;  %v665_v44 = vmax.f32 %v437_v40, 0.0  ;;  %v697_v45 = vmax.f32 %v565_v41, 0.0 }
  0xf8   :  { %732 = vst.msk [vmem:[%s1490_s3 + $0x58] sm:$0xff] %vm720_vm2, %v667_v42  ;;  %764 = vst.msk [vmem:[%s1490_s3 + $0x158] sm:$0xff] %vm720_vm2, %v699_v43 }
  0xf9   :  { %730 = vst.msk [vmem:[%s1490_s3 + $0x48] sm:$0xff] %vm720_vm2, %v665_v44  ;;  %762 = vst.msk [vmem:[%s1490_s3 + $0x148] sm:$0xff] %vm720_vm2, %v697_v45  ;;  %v912_v46 = vpop.f32.mrb[12].mxu0  ;;  %v944_v47 = vpop.f32.mrb[12].mxu1 }
  0xfa   :  { %v458_v48 = vadd.f32 %v912_v46, %v1165_v36  ;;  %v586_v49 = vadd.f32 %v944_v47, %v1165_v36  ;;  %v449_v50 = vpop.f32.mrb[13].mxu0  ;;  %v577_v51 = vpop.f32.mrb[13].mxu1 }
  0xfb   :  { %v450_v52 = vadd.f32 %v1165_v36, %v449_v50  ;;  %v578_v53 = vadd.f32 %v1165_v36, %v577_v51  ;;  %v913_v54 = vpop.f32.mrb[14].mxu0  ;;  %v945_v55 = vpop.f32.mrb[14].mxu1 }
  0xfc   :  { %v670_v56 = vmax.f32 %v458_v48, 0.0  ;;  %v702_v57 = vmax.f32 %v586_v49, 0.0  ;;  %v461_v58 = vadd.f32 %v913_v54, %v1165_v36  ;;  %v589_v59 = vadd.f32 %v945_v55, %v1165_v36  ;;  %v452_v60 = vpop.f32.mrb[15].mxu0  ;;  %v580_v61 = vpop.f32.mrb[15].mxu1 }
  0xfd   :  { %v668_v62 = vmax.f32 %v450_v52, 0.0  ;;  %v700_v63 = vmax.f32 %v578_v53, 0.0  ;;  %v453_v0 = vadd.f32 %v1165_v36, %v452_v60  ;;  %v581_v1 = vadd.f32 %v1165_v36, %v580_v61 }
  0xfe   :  { %735 = vst.msk [vmem:[%s1490_s3 + $0x70] sm:$0xff] %vm720_vm2, %v670_v56  ;;  %767 = vst.msk [vmem:[%s1490_s3 + $0x170] sm:$0xff] %vm720_vm2, %v702_v57  ;;  %v671_v2 = vmax.f32 %v461_v58, 0.0  ;;  %v703_v3 = vmax.f32 %v589_v59, 0.0 }
  0xff   :  { %733 = vst.msk [vmem:[%s1490_s3 + $0x60] sm:$0xff] %vm720_vm2, %v668_v62  ;;  %765 = vst.msk [vmem:[%s1490_s3 + $0x160] sm:$0xff] %vm720_vm2, %v700_v63  ;;  %v669_v4 = vmax.f32 %v453_v0, 0.0  ;;  %v701_v5 = vmax.f32 %v581_v1, 0.0 }
 0x100   :  { %736 = vst.msk [vmem:[%s1490_s3 + $0x78] sm:$0xff] %vm720_vm2, %v671_v2  ;;  %768 = vst.msk [vmem:[%s1490_s3 + $0x178] sm:$0xff] %vm720_vm2, %v703_v3 }
 0x101   :  { %734 = vst.msk [vmem:[%s1490_s3 + $0x68] sm:$0xff] %vm720_vm2, %v669_v4  ;;  %766 = vst.msk [vmem:[%s1490_s3 + $0x168] sm:$0xff] %vm720_vm2, %v701_v5  ;;  %v916_v6 = vpop.f32.mrb[16].mxu0  ;;  %v948_v7 = vpop.f32.mrb[16].mxu1 }
 0x102   :  { %v474_v8 = vadd.f32 %v916_v6, %v1165_v36  ;;  %v602_v9 = vadd.f32 %v948_v7, %v1165_v36  ;;  %v465_v10 = vpop.f32.mrb[17].mxu0  ;;  %v593_v11 = vpop.f32.mrb[17].mxu1 }
 0x103   :  { %v466_v12 = vadd.f32 %v1165_v36, %v465_v10  ;;  %v594_v13 = vadd.f32 %v1165_v36, %v593_v11  ;;  %v917_v14 = vpop.f32.mrb[18].mxu0  ;;  %v949_v15 = vpop.f32.mrb[18].mxu1 }
 0x104   :  { %v674_v16 = vmax.f32 %v474_v8, 0.0  ;;  %v706_v17 = vmax.f32 %v602_v9, 0.0  ;;  %v477_v18 = vadd.f32 %v917_v14, %v1165_v36  ;;  %v605_v19 = vadd.f32 %v949_v15, %v1165_v36  ;;  %v468_v20 = vpop.f32.mrb[19].mxu0  ;;  %v596_v21 = vpop.f32.mrb[19].mxu1 }
 0x105   :  { %v672_v22 = vmax.f32 %v466_v12, 0.0  ;;  %v704_v23 = vmax.f32 %v594_v13, 0.0  ;;  %v469_v24 = vadd.f32 %v1165_v36, %v468_v20  ;;  %v597_v25 = vadd.f32 %v1165_v36, %v596_v21 }
 0x106   :  { %739 = vst.msk [vmem:[%s1490_s3 + $0x90] sm:$0xff] %vm720_vm2, %v674_v16  ;;  %771 = vst.msk [vmem:[%s1490_s3 + $0x190] sm:$0xff] %vm720_vm2, %v706_v17  ;;  %v675_v26 = vmax.f32 %v477_v18, 0.0  ;;  %v707_v27 = vmax.f32 %v605_v19, 0.0 }
 0x107   :  { %737 = vst.msk [vmem:[%s1490_s3 + $0x80] sm:$0xff] %vm720_vm2, %v672_v22  ;;  %769 = vst.msk [vmem:[%s1490_s3 + $0x180] sm:$0xff] %vm720_vm2, %v704_v23  ;;  %v673_v28 = vmax.f32 %v469_v24, 0.0  ;;  %v705_v29 = vmax.f32 %v597_v25, 0.0 }
 0x108   :  { %740 = vst.msk [vmem:[%s1490_s3 + $0x98] sm:$0xff] %vm720_vm2, %v675_v26  ;;  %772 = vst.msk [vmem:[%s1490_s3 + $0x198] sm:$0xff] %vm720_vm2, %v707_v27 }
 0x109   :  { %738 = vst.msk [vmem:[%s1490_s3 + $0x88] sm:$0xff] %vm720_vm2, %v673_v28  ;;  %770 = vst.msk [vmem:[%s1490_s3 + $0x188] sm:$0xff] %vm720_vm2, %v705_v29  ;;  %v920_v30 = vpop.f32.mrb[20].mxu0  ;;  %v952_v31 = vpop.f32.mrb[20].mxu1 }
 0x10a   :  { %v490_v32 = vadd.f32 %v920_v30, %v1165_v36  ;;  %v618_v33 = vadd.f32 %v952_v31, %v1165_v36  ;;  %v481_v34 = vpop.f32.mrb[21].mxu0  ;;  %v609_v35 = vpop.f32.mrb[21].mxu1 }
 0x10b   :  { %v482_v37 = vadd.f32 %v1165_v36, %v481_v34  ;;  %v610_v38 = vadd.f32 %v1165_v36, %v609_v35  ;;  %v921_v39 = vpop.f32.mrb[22].mxu0  ;;  %v953_v40 = vpop.f32.mrb[22].mxu1 }
 0x10c   :  { %v678_v41 = vmax.f32 %v490_v32, 0.0  ;;  %v710_v42 = vmax.f32 %v618_v33, 0.0  ;;  %v493_v43 = vadd.f32 %v921_v39, %v1165_v36  ;;  %v621_v44 = vadd.f32 %v953_v40, %v1165_v36  ;;  %v484_v45 = vpop.f32.mrb[23].mxu0  ;;  %v612_v46 = vpop.f32.mrb[23].mxu1 }
 0x10d   :  { %v676_v47 = vmax.f32 %v482_v37, 0.0  ;;  %v708_v48 = vmax.f32 %v610_v38, 0.0  ;;  %v485_v49 = vadd.f32 %v1165_v36, %v484_v45  ;;  %v613_v50 = vadd.f32 %v1165_v36, %v612_v46 }
 0x10e   :  { %743 = vst.msk [vmem:[%s1490_s3 + $0xb0] sm:$0xff] %vm720_vm2, %v678_v41  ;;  %775 = vst.msk [vmem:[%s1490_s3 + $0x1b0] sm:$0xff] %vm720_vm2, %v710_v42  ;;  %v679_v51 = vmax.f32 %v493_v43, 0.0  ;;  %v711_v52 = vmax.f32 %v621_v44, 0.0 }
 0x10f   :  { %741 = vst.msk [vmem:[%s1490_s3 + $0xa0] sm:$0xff] %vm720_vm2, %v676_v47  ;;  %773 = vst.msk [vmem:[%s1490_s3 + $0x1a0] sm:$0xff] %vm720_vm2, %v708_v48  ;;  %v677_v53 = vmax.f32 %v485_v49, 0.0  ;;  %v709_v54 = vmax.f32 %v613_v50, 0.0 }
 0x110   :  { %744 = vst.msk [vmem:[%s1490_s3 + $0xb8] sm:$0xff] %vm720_vm2, %v679_v51  ;;  %776 = vst.msk [vmem:[%s1490_s3 + $0x1b8] sm:$0xff] %vm720_vm2, %v711_v52 }
 0x111   :  { %742 = vst.msk [vmem:[%s1490_s3 + $0xa8] sm:$0xff] %vm720_vm2, %v677_v53  ;;  %774 = vst.msk [vmem:[%s1490_s3 + $0x1a8] sm:$0xff] %vm720_vm2, %v709_v54  ;;  %v924_v55 = vpop.f32.mrb[24].mxu0  ;;  %v956_v56 = vpop.f32.mrb[24].mxu1 }
 0x112   :  { %v506_v57 = vadd.f32 %v924_v55, %v1165_v36  ;;  %v634_v58 = vadd.f32 %v956_v56, %v1165_v36  ;;  %v497_v59 = vpop.f32.mrb[25].mxu0  ;;  %v625_v60 = vpop.f32.mrb[25].mxu1 }
 0x113   :  { %v498_v61 = vadd.f32 %v1165_v36, %v497_v59  ;;  %v626_v62 = vadd.f32 %v1165_v36, %v625_v60  ;;  %v925_v63 = vpop.f32.mrb[26].mxu0  ;;  %v957_v0 = vpop.f32.mrb[26].mxu1 }
 0x114   :  { %v682_v1 = vmax.f32 %v506_v57, 0.0  ;;  %v714_v2 = vmax.f32 %v634_v58, 0.0  ;;  %v509_v3 = vadd.f32 %v925_v63, %v1165_v36  ;;  %v637_v4 = vadd.f32 %v957_v0, %v1165_v36  ;;  %v500_v5 = vpop.f32.mrb[27].mxu0  ;;  %v628_v6 = vpop.f32.mrb[27].mxu1 }
 0x115   :  { %v680_v7 = vmax.f32 %v498_v61, 0.0  ;;  %v712_v8 = vmax.f32 %v626_v62, 0.0  ;;  %v501_v9 = vadd.f32 %v1165_v36, %v500_v5  ;;  %v629_v10 = vadd.f32 %v1165_v36, %v628_v6 }
 0x116   :  { %747 = vst.msk [vmem:[%s1490_s3 + $0xd0] sm:$0xff] %vm720_vm2, %v682_v1  ;;  %779 = vst.msk [vmem:[%s1490_s3 + $0x1d0] sm:$0xff] %vm720_vm2, %v714_v2  ;;  %v683_v11 = vmax.f32 %v509_v3, 0.0  ;;  %v715_v12 = vmax.f32 %v637_v4, 0.0 }
 0x117   :  { %745 = vst.msk [vmem:[%s1490_s3 + $0xc0] sm:$0xff] %vm720_vm2, %v680_v7  ;;  %777 = vst.msk [vmem:[%s1490_s3 + $0x1c0] sm:$0xff] %vm720_vm2, %v712_v8  ;;  %v681_v13 = vmax.f32 %v501_v9, 0.0  ;;  %v713_v14 = vmax.f32 %v629_v10, 0.0 }
 0x118   :  { %748 = vst.msk [vmem:[%s1490_s3 + $0xd8] sm:$0xff] %vm720_vm2, %v683_v11  ;;  %780 = vst.msk [vmem:[%s1490_s3 + $0x1d8] sm:$0xff] %vm720_vm2, %v715_v12 }
 0x119   :  { %746 = vst.msk [vmem:[%s1490_s3 + $0xc8] sm:$0xff] %vm720_vm2, %v681_v13  ;;  %778 = vst.msk [vmem:[%s1490_s3 + $0x1c8] sm:$0xff] %vm720_vm2, %v713_v14  ;;  %v928_v15 = vpop.f32.mrb[28].mxu0  ;;  %v960_v16 = vpop.f32.mrb[28].mxu1 }
 0x11a   :  { %v522_v17 = vadd.f32 %v928_v15, %v1165_v36  ;;  %v650_v18 = vadd.f32 %v960_v16, %v1165_v36  ;;  %v513_v19 = vpop.f32.mrb[29].mxu0  ;;  %v641_v20 = vpop.f32.mrb[29].mxu1 }
 0x11b   :  { %v514_v21 = vadd.f32 %v1165_v36, %v513_v19  ;;  %v642_v22 = vadd.f32 %v1165_v36, %v641_v20  ;;  %v929_v23 = vpop.f32.mrb[30].mxu0  ;;  %v961_v24 = vpop.f32.mrb[30].mxu1 }
 0x11c   :  { %v686_v25 = vmax.f32 %v522_v17, 0.0  ;;  %v718_v26 = vmax.f32 %v650_v18, 0.0  ;;  %v525_v27 = vadd.f32 %v929_v23, %v1165_v36  ;;  %v653_v28 = vadd.f32 %v961_v24, %v1165_v36  ;;  %v516_v29 = vpop.f32.mrb[31].mxu0  ;;  %v644_v30 = vpop.f32.mrb[31].mxu1 }
 0x11d   :  { %v684_v31 = vmax.f32 %v514_v21, 0.0  ;;  %v716_v32 = vmax.f32 %v642_v22, 0.0  ;;  %v517_v33 = vadd.f32 %v1165_v36, %v516_v29  ;;  %v645_v34 = vadd.f32 %v1165_v36, %v644_v30 }
 0x11e   :  { %751 = vst.msk [vmem:[%s1490_s3 + $0xf0] sm:$0xff] %vm720_vm2, %v686_v25  ;;  %783 = vst.msk [vmem:[%s1490_s3 + $0x1f0] sm:$0xff] %vm720_vm2, %v718_v26  ;;  %v687_v35 = vmax.f32 %v525_v27, 0.0  ;;  %v719_v37 = vmax.f32 %v653_v28, 0.0 }
 0x11f   :  { %749 = vst.msk [vmem:[%s1490_s3 + $0xe0] sm:$0xff] %vm720_vm2, %v684_v31  ;;  %781 = vst.msk [vmem:[%s1490_s3 + $0x1e0] sm:$0xff] %vm720_vm2, %v716_v32  ;;  %v685_v36 = vmax.f32 %v517_v33, 0.0  ;;  %v717_v38 = vmax.f32 %v645_v34, 0.0 }
 0x120   :  { %752 = vst.msk [vmem:[%s1490_s3 + $0xf8] sm:$0xff] %vm720_vm2, %v687_v35  ;;  %784 = vst.msk [vmem:[%s1490_s3 + $0x1f8] sm:$0xff] %vm720_vm2, %v719_v37 }
 0x121   :  { %750 = vst.msk [vmem:[%s1490_s3 + $0xe8] sm:$0xff] %vm720_vm2, %v685_v36  ;;  %782 = vst.msk [vmem:[%s1490_s3 + $0x1e8] sm:$0xff] %vm720_vm2, %v717_v38 }

</bundles_post_ra>
